<compile_context>
chip_gen: v7x
topology: tpu7x:2x2x1
jax: 0.10.0
libtpu: 0.0.40
codegen_flags: <defaults>
</compile_context>

<pallas_src>
import functools

import jax
import jax.numpy as jnp
from jax.experimental import pallas as pl
from jax.experimental.pallas import tpu as pltpu

IN_CH = 3
OUT_CH = 1
HIDDEN = 40
N_LAYERS = 7          # 6x (Linear + Tanh) followed by a final Linear
GROUP = 128           # one vreg-width of batch columns processed at a time

# Column layout of the packed "small params" array sm: (HIDDEN, IN_CH + 8)
COL_W1 = 0            # cols [0, IN_CH)          : W1 (HIDDEN, IN_CH)
COL_B = IN_CH         # cols [IN_CH, IN_CH + 6)  : b1..b6 as columns
COL_W7 = IN_CH + 6    # col                      : W7^T (HIDDEN, 1)
COL_B7 = IN_CH + 7    # col                      : b7 broadcast down the column


def mlp_kernel(x_ref, sm_ref, wmid_ref, o_ref):
    # x_ref:   (IN_CH, tm)            batch-on-lanes input tile
    # sm_ref:  (HIDDEN, IN_CH + 8)    packed [W1 | b1..b6 | W7^T | b7]
    # wmid_ref:(5, HIDDEN, HIDDEN)    W2..W6, PyTorch (out, in) layout
    # o_ref:   (OUT_CH, tm)           lane-dense output tile
    n_groups = x_ref.shape[-1] // GROUP

    # Static Python loop: group count is small & static, so every lane offset
    # is a compile-time constant (aligned vector loads/stores), and each group
    # body is independent -> live ranges stay bounded at (40, 128) = 5 vregs.
    for g in range(n_groups):
        lo, hi = g * GROUP, (g + 1) * GROUP
        xg = x_ref[:, lo:hi]                                   # (IN_CH, GROUP)

        # Layer 1 (K = IN_CH = 3): outer-product FMAs on the VPU.  A matmul
        # would run the MXU at ~3/128..3/256 occupancy and pay weight-push /
        # result-pop latency for almost no work.
        h = sm_ref[:, COL_B:COL_B + 1]                         # b1, (HIDDEN, 1)
        for c in range(IN_CH):
            h = h + sm_ref[:, COL_W1 + c:COL_W1 + c + 1] * xg[c:c + 1, :]
        h = jnp.tanh(h)                                        # (HIDDEN, GROUP)

        # Layers 2..6: (40, 40) @ (40, 128) MXU matmuls, f32 accumulation.
        # Weights reloaded from VMEM per layer (cheap vld); h stays in vregs.
        for l in range(1, 6):
            h = jnp.dot(wmid_ref[l - 1], h,
                        preferred_element_type=jnp.float32)
            h = jnp.tanh(h + sm_ref[:, COL_B + l:COL_B + l + 1])

        # Final layer (out_features = 1): weighted cross-sublane reduction
        # (XLU) instead of a 1-row matmul.
        out = (jnp.sum(sm_ref[:, COL_W7:COL_W7 + 1] * h, axis=0, keepdims=True)
               + sm_ref[0:1, COL_B7:COL_B7 + 1])               # (1, GROUP)
        o_ref[:, lo:hi] = out


def init_params(key, in_ch=IN_CH, out_ch=OUT_CH, hidden=HIDDEN):
    """Xavier-normal weights in PyTorch (out, in) layout, zero biases."""
    dims = [in_ch] + [hidden] * (N_LAYERS - 1) + [out_ch]
    keys = jax.random.split(key, N_LAYERS)
    params = []
    for i in range(N_LAYERS):
        fan_in, fan_out = dims[i], dims[i + 1]
        std = (2.0 / (fan_in + fan_out)) ** 0.5
        w = std * jax.random.normal(keys[i], (fan_out, fan_in), dtype=jnp.float32)
        b = jnp.zeros((fan_out,), dtype=jnp.float32)
        params.append((w, b))
    return params


def pack_params(params):
    """Pack the 14 PyTorch (W, b) tensors into 2 kernel inputs (do this once)."""
    (w1, _), (w7, b7) = params[0], params[-1]
    wmid = jnp.stack([w for w, _ in params[1:6]])                 # (5, H, H)
    cols = [w1]                                                   # (H, IN_CH)
    cols += [b.reshape(HIDDEN, 1) for _, b in params[:6]]         # b1..b6
    cols += [w7.T]                                                # (H, 1)
    cols += [jnp.full((HIDDEN, 1), b7[0], dtype=jnp.float32)]     # b7 column
    sm = jnp.concatenate(cols, axis=1).astype(jnp.float32)        # (H, IN_CH+8)
    return sm, wmid.astype(jnp.float32)


def _mlp_pallas(xt, sm, wmid, *, tm):
    """xt: (IN_CH, N) float32 -> (OUT_CH, N) float32."""
    in_ch, N = xt.shape
    assert in_ch == IN_CH
    assert tm % GROUP == 0, "row tile must be a whole number of 128-lane groups"
    n_tiles = pl.cdiv(N, tm)

    cost = pl.CostEstimate(
        flops=N * (2 * IN_CH * HIDDEN + 5 * 2 * HIDDEN * HIDDEN
                   + 2 * HIDDEN * OUT_CH),
        transcendentals=N * 6 * HIDDEN,
        bytes_accessed=4 * (N * (IN_CH + OUT_CH) + sm.size + wmid.size),
    )

    return pl.pallas_call(
        mlp_kernel,
        out_shape=jax.ShapeDtypeStruct((OUT_CH, N), jnp.float32),
        grid_spec=pltpu.PrefetchScalarGridSpec(
            num_scalar_prefetch=0,
            grid=(n_tiles,),
            in_specs=[
                pl.BlockSpec((IN_CH, tm), lambda i: (0, i)),
                # Grid-invariant packed params: full-array blocks, VMEM-resident
                # for the whole run (index_map constant across the grid).
                pl.BlockSpec(sm.shape, lambda i: (0, 0)),
                pl.BlockSpec(wmid.shape, lambda i: (0, 0, 0)),
            ],
            out_specs=pl.BlockSpec((OUT_CH, tm), lambda i: (0, i)),
        ),
        compiler_params=pltpu.CompilerParams(
            dimension_semantics=("parallel",)),
        cost_estimate=cost,
    )(xt, sm, wmid)


@functools.partial(jax.jit, static_argnames=("tm",))
def mlp_forward_t(xt, sm, wmid, *, tm=512):
    """Pre-transposed entry point: xt (IN_CH, N) -> (OUT_CH, N).
    Lets large-N callers avoid the x.T HBM relayout pass entirely."""
    return _mlp_pallas(xt.astype(jnp.float32), sm, wmid, tm=tm)


@functools.partial(jax.jit, static_argnames=("tm",))
def mlp_forward(x, sm, wmid, *, tm=512):
    """PyTorch-layout entry point: x (N, IN_CH) -> (N, OUT_CH)."""
    xt = x.astype(jnp.float32).T          # single relayout pass (no pad pass)
    return _mlp_pallas(xt, sm, wmid, tm=tm).T


def mlp_reference(x, params):
    h = x.astype(jnp.float32)
    for i, (w, b) in enumerate(params):
        h = h @ w.T + b
        if i < N_LAYERS - 1:
            h = jnp.tanh(h)
    return h


if __name__ == "__main__":
    key = jax.random.PRNGKey(0)
    k_param, k_x = jax.random.split(key)

    params = init_params(k_param)
    sm, wmid = pack_params(params)        # pack once, reuse across calls

    # tm=512, N=1024 -> 2 "parallel" grid steps (both v7x TensorCores busy);
    # each step processes its tile in 4 register-resident column groups.
    N = 1024
    x = jax.random.uniform(k_x, (N, IN_CH), dtype=jnp.float32,
                           minval=-1.0, maxval=1.0)

    out = jax.block_until_ready(mlp_forward(x, sm, wmid, tm=512))

    ref = mlp_reference(x, params)
    assert out.shape == (N, OUT_CH)
    assert jnp.allclose(out, ref, atol=1e-5, rtol=1e-5), \
        float(jnp.max(jnp.abs(out - ref)))

    print("KERNEL_OK")
</pallas_src>

<mosaic_0001>
module attributes {stable_mosaic.version = 11 : i64} {
  func.func @mlp_kernel(%arg0: i32, %arg1: memref<3x512xf32, #tpu.memory_space<vmem>>, %arg2: memref<40x11xf32, #tpu.memory_space<vmem>>, %arg3: memref<5x40x40xf32, #tpu.memory_space<vmem>>, %arg4: memref<1x512xf32, #tpu.memory_space<vmem>>) attributes {dimension_semantics = [#tpu.dimension_semantics<parallel>], iteration_bounds = array<i64: 2>, scalar_prefetch = 0 : i64, scratch_operands = 0 : i64, tpu.core_type = #tpu.core_type<tc>, window_params = [{transform_indices = @transform_0, window_bounds = array<i64: 3, 512>}, {pipeline_mode = #tpu.pipeline_mode<synchronous>, transform_indices = @transform_1, window_bounds = array<i64: 40, 11>}, {pipeline_mode = #tpu.pipeline_mode<synchronous>, transform_indices = @transform_2, window_bounds = array<i64: 5, 40, 40>}, {transform_indices = @transform_3, window_bounds = array<i64: 1, 512>}]} {
    %c0 = arith.constant 0 : index
    %c0_0 = arith.constant 0 : index
    %0 = vector.load %arg1[%c0, %c0_0] : memref<3x512xf32, #tpu.memory_space<vmem>>, vector<3x128xf32>
    %c0_1 = arith.constant 0 : index
    %c3 = arith.constant 3 : index
    %1 = vector.load %arg2[%c0_1, %c3] : memref<40x11xf32, #tpu.memory_space<vmem>>, vector<40x1xf32>
    %c0_2 = arith.constant 0 : index
    %c0_3 = arith.constant 0 : index
    %2 = vector.load %arg2[%c0_2, %c0_3] : memref<40x11xf32, #tpu.memory_space<vmem>>, vector<40x1xf32>
    %3 = vector.extract_strided_slice %0 {offsets = [0, 0], sizes = [1, 128], strides = [1, 1]} : vector<3x128xf32> to vector<1x128xf32>
    %4 = vector.broadcast %2 : vector<40x1xf32> to vector<40x128xf32>
    %5 = vector.broadcast %3 : vector<1x128xf32> to vector<40x128xf32>
    %6 = arith.mulf %4, %5 : vector<40x128xf32>
    %7 = vector.broadcast %1 : vector<40x1xf32> to vector<40x128xf32>
    %8 = arith.addf %7, %6 : vector<40x128xf32>
    %c0_4 = arith.constant 0 : index
    %c1 = arith.constant 1 : index
    %9 = vector.load %arg2[%c0_4, %c1] : memref<40x11xf32, #tpu.memory_space<vmem>>, vector<40x1xf32>
    %10 = vector.extract_strided_slice %0 {offsets = [1, 0], sizes = [1, 128], strides = [1, 1]} : vector<3x128xf32> to vector<1x128xf32>
    %11 = vector.broadcast %9 : vector<40x1xf32> to vector<40x128xf32>
    %12 = vector.broadcast %10 : vector<1x128xf32> to vector<40x128xf32>
    %13 = arith.mulf %11, %12 : vector<40x128xf32>
    %14 = arith.addf %8, %13 : vector<40x128xf32>
    %c0_5 = arith.constant 0 : index
    %c2 = arith.constant 2 : index
    %15 = vector.load %arg2[%c0_5, %c2] : memref<40x11xf32, #tpu.memory_space<vmem>>, vector<40x1xf32>
    %16 = vector.extract_strided_slice %0 {offsets = [2, 0], sizes = [1, 128], strides = [1, 1]} : vector<3x128xf32> to vector<1x128xf32>
    %17 = vector.broadcast %15 : vector<40x1xf32> to vector<40x128xf32>
    %18 = vector.broadcast %16 : vector<1x128xf32> to vector<40x128xf32>
    %19 = arith.mulf %17, %18 : vector<40x128xf32>
    %20 = arith.addf %14, %19 : vector<40x128xf32>
    %21 = math.tanh %20 : vector<40x128xf32>
    %c0_6 = arith.constant 0 : index
    %c0_7 = arith.constant 0 : index
    %c0_8 = arith.constant 0 : index
    %22 = vector.load %arg3[%c0_6, %c0_7, %c0_8] : memref<5x40x40xf32, #tpu.memory_space<vmem>>, vector<1x40x40xf32>
    %23 = vector.shape_cast %22 : vector<1x40x40xf32> to vector<40x40xf32>
    %cst = arith.constant dense<0.000000e+00> : vector<40x128xf32>
    %24 = tpu.matmul %23, %21, %cst {dimension_numbers = #tpu.dot_dimension_numbers<[1], [0], [0], [1], [0, 0, 1, 1], [], []>} : vector<40x40xf32>, vector<40x128xf32>, vector<40x128xf32> -> vector<40x128xf32>
    %c0_9 = arith.constant 0 : index
    %c4 = arith.constant 4 : index
    %25 = vector.load %arg2[%c0_9, %c4] : memref<40x11xf32, #tpu.memory_space<vmem>>, vector<40x1xf32>
    %26 = vector.broadcast %25 : vector<40x1xf32> to vector<40x128xf32>
    %27 = arith.addf %24, %26 : vector<40x128xf32>
    %28 = math.tanh %27 : vector<40x128xf32>
    %c1_10 = arith.constant 1 : index
    %c0_11 = arith.constant 0 : index
    %c0_12 = arith.constant 0 : index
    %29 = vector.load %arg3[%c1_10, %c0_11, %c0_12] : memref<5x40x40xf32, #tpu.memory_space<vmem>>, vector<1x40x40xf32>
    %30 = vector.shape_cast %29 : vector<1x40x40xf32> to vector<40x40xf32>
    %cst_13 = arith.constant dense<0.000000e+00> : vector<40x128xf32>
    %31 = tpu.matmul %30, %28, %cst_13 {dimension_numbers = #tpu.dot_dimension_numbers<[1], [0], [0], [1], [0, 0, 1, 1], [], []>} : vector<40x40xf32>, vector<40x128xf32>, vector<40x128xf32> -> vector<40x128xf32>
    %c0_14 = arith.constant 0 : index
    %c5 = arith.constant 5 : index
    %32 = vector.load %arg2[%c0_14, %c5] : memref<40x11xf32, #tpu.memory_space<vmem>>, vector<40x1xf32>
    %33 = vector.broadcast %32 : vector<40x1xf32> to vector<40x128xf32>
    %34 = arith.addf %31, %33 : vector<40x128xf32>
    %35 = math.tanh %34 : vector<40x128xf32>
    %c2_15 = arith.constant 2 : index
    %c0_16 = arith.constant 0 : index
    %c0_17 = arith.constant 0 : index
    %36 = vector.load %arg3[%c2_15, %c0_16, %c0_17] : memref<5x40x40xf32, #tpu.memory_space<vmem>>, vector<1x40x40xf32>
    %37 = vector.shape_cast %36 : vector<1x40x40xf32> to vector<40x40xf32>
    %cst_18 = arith.constant dense<0.000000e+00> : vector<40x128xf32>
    %38 = tpu.matmul %37, %35, %cst_18 {dimension_numbers = #tpu.dot_dimension_numbers<[1], [0], [0], [1], [0, 0, 1, 1], [], []>} : vector<40x40xf32>, vector<40x128xf32>, vector<40x128xf32> -> vector<40x128xf32>
    %c0_19 = arith.constant 0 : index
    %c6 = arith.constant 6 : index
    %39 = vector.load %arg2[%c0_19, %c6] : memref<40x11xf32, #tpu.memory_space<vmem>>, vector<40x1xf32>
    %40 = vector.broadcast %39 : vector<40x1xf32> to vector<40x128xf32>
    %41 = arith.addf %38, %40 : vector<40x128xf32>
    %42 = math.tanh %41 : vector<40x128xf32>
    %c3_20 = arith.constant 3 : index
    %c0_21 = arith.constant 0 : index
    %c0_22 = arith.constant 0 : index
    %43 = vector.load %arg3[%c3_20, %c0_21, %c0_22] : memref<5x40x40xf32, #tpu.memory_space<vmem>>, vector<1x40x40xf32>
    %44 = vector.shape_cast %43 : vector<1x40x40xf32> to vector<40x40xf32>
    %cst_23 = arith.constant dense<0.000000e+00> : vector<40x128xf32>
    %45 = tpu.matmul %44, %42, %cst_23 {dimension_numbers = #tpu.dot_dimension_numbers<[1], [0], [0], [1], [0, 0, 1, 1], [], []>} : vector<40x40xf32>, vector<40x128xf32>, vector<40x128xf32> -> vector<40x128xf32>
    %c0_24 = arith.constant 0 : index
    %c7 = arith.constant 7 : index
    %46 = vector.load %arg2[%c0_24, %c7] : memref<40x11xf32, #tpu.memory_space<vmem>>, vector<40x1xf32>
    %47 = vector.broadcast %46 : vector<40x1xf32> to vector<40x128xf32>
    %48 = arith.addf %45, %47 : vector<40x128xf32>
    %49 = math.tanh %48 : vector<40x128xf32>
    %c4_25 = arith.constant 4 : index
    %c0_26 = arith.constant 0 : index
    %c0_27 = arith.constant 0 : index
    %50 = vector.load %arg3[%c4_25, %c0_26, %c0_27] : memref<5x40x40xf32, #tpu.memory_space<vmem>>, vector<1x40x40xf32>
    %51 = vector.shape_cast %50 : vector<1x40x40xf32> to vector<40x40xf32>
    %cst_28 = arith.constant dense<0.000000e+00> : vector<40x128xf32>
    %52 = tpu.matmul %51, %49, %cst_28 {dimension_numbers = #tpu.dot_dimension_numbers<[1], [0], [0], [1], [0, 0, 1, 1], [], []>} : vector<40x40xf32>, vector<40x128xf32>, vector<40x128xf32> -> vector<40x128xf32>
    %c0_29 = arith.constant 0 : index
    %c8 = arith.constant 8 : index
    %53 = vector.load %arg2[%c0_29, %c8] : memref<40x11xf32, #tpu.memory_space<vmem>>, vector<40x1xf32>
    %54 = vector.broadcast %53 : vector<40x1xf32> to vector<40x128xf32>
    %55 = arith.addf %52, %54 : vector<40x128xf32>
    %56 = math.tanh %55 : vector<40x128xf32>
    %c0_30 = arith.constant 0 : index
    %c9 = arith.constant 9 : index
    %57 = vector.load %arg2[%c0_30, %c9] : memref<40x11xf32, #tpu.memory_space<vmem>>, vector<40x1xf32>
    %58 = vector.broadcast %57 : vector<40x1xf32> to vector<40x128xf32>
    %59 = arith.mulf %58, %56 : vector<40x128xf32>
    %cst_31 = arith.constant dense<0.000000e+00> : vector<128xf32>
    %60 = vector.multi_reduction <add>, %59, %cst_31 [0] : vector<40x128xf32> to vector<128xf32>
    %61 = vector.shape_cast %60 : vector<128xf32> to vector<1x128xf32>
    %c0_32 = arith.constant 0 : index
    %c10 = arith.constant 10 : index
    %62 = vector.load %arg2[%c0_32, %c10] : memref<40x11xf32, #tpu.memory_space<vmem>>, vector<1x1xf32>
    %63 = vector.broadcast %62 : vector<1x1xf32> to vector<1x128xf32>
    %64 = arith.addf %61, %63 : vector<1x128xf32>
    %c0_33 = arith.constant 0 : index
    %c0_34 = arith.constant 0 : index
    %65 = vector.load %arg4[%c0_33, %c0_34] : memref<1x512xf32, #tpu.memory_space<vmem>>, vector<1x128xf32>
    tpu.vector_store %arg4[%c0_33, %c0_34], %64 {strides = array<i32>} : memref<1x512xf32, #tpu.memory_space<vmem>>, vector<1x128xf32>,
    %c0_35 = arith.constant 0 : index
    %c128 = arith.constant 128 : index
    %66 = vector.load %arg1[%c0_35, %c128] : memref<3x512xf32, #tpu.memory_space<vmem>>, vector<3x128xf32>
    %c0_36 = arith.constant 0 : index
    %c3_37 = arith.constant 3 : index
    %67 = vector.load %arg2[%c0_36, %c3_37] : memref<40x11xf32, #tpu.memory_space<vmem>>, vector<40x1xf32>
    %c0_38 = arith.constant 0 : index
    %c0_39 = arith.constant 0 : index
    %68 = vector.load %arg2[%c0_38, %c0_39] : memref<40x11xf32, #tpu.memory_space<vmem>>, vector<40x1xf32>
    %69 = vector.extract_strided_slice %66 {offsets = [0, 0], sizes = [1, 128], strides = [1, 1]} : vector<3x128xf32> to vector<1x128xf32>
    %70 = vector.broadcast %68 : vector<40x1xf32> to vector<40x128xf32>
    %71 = vector.broadcast %69 : vector<1x128xf32> to vector<40x128xf32>
    %72 = arith.mulf %70, %71 : vector<40x128xf32>
    %73 = vector.broadcast %67 : vector<40x1xf32> to vector<40x128xf32>
    %74 = arith.addf %73, %72 : vector<40x128xf32>
    %c0_40 = arith.constant 0 : index
    %c1_41 = arith.constant 1 : index
    %75 = vector.load %arg2[%c0_40, %c1_41] : memref<40x11xf32, #tpu.memory_space<vmem>>, vector<40x1xf32>
    %76 = vector.extract_strided_slice %66 {offsets = [1, 0], sizes = [1, 128], strides = [1, 1]} : vector<3x128xf32> to vector<1x128xf32>
    %77 = vector.broadcast %75 : vector<40x1xf32> to vector<40x128xf32>
    %78 = vector.broadcast %76 : vector<1x128xf32> to vector<40x128xf32>
    %79 = arith.mulf %77, %78 : vector<40x128xf32>
    %80 = arith.addf %74, %79 : vector<40x128xf32>
    %c0_42 = arith.constant 0 : index
    %c2_43 = arith.constant 2 : index
    %81 = vector.load %arg2[%c0_42, %c2_43] : memref<40x11xf32, #tpu.memory_space<vmem>>, vector<40x1xf32>
    %82 = vector.extract_strided_slice %66 {offsets = [2, 0], sizes = [1, 128], strides = [1, 1]} : vector<3x128xf32> to vector<1x128xf32>
    %83 = vector.broadcast %81 : vector<40x1xf32> to vector<40x128xf32>
    %84 = vector.broadcast %82 : vector<1x128xf32> to vector<40x128xf32>
    %85 = arith.mulf %83, %84 : vector<40x128xf32>
    %86 = arith.addf %80, %85 : vector<40x128xf32>
    %87 = math.tanh %86 : vector<40x128xf32>
    %c0_44 = arith.constant 0 : index
    %c0_45 = arith.constant 0 : index
    %c0_46 = arith.constant 0 : index
    %88 = vector.load %arg3[%c0_44, %c0_45, %c0_46] : memref<5x40x40xf32, #tpu.memory_space<vmem>>, vector<1x40x40xf32>
    %89 = vector.shape_cast %88 : vector<1x40x40xf32> to vector<40x40xf32>
    %cst_47 = arith.constant dense<0.000000e+00> : vector<40x128xf32>
    %90 = tpu.matmul %89, %87, %cst_47 {dimension_numbers = #tpu.dot_dimension_numbers<[1], [0], [0], [1], [0, 0, 1, 1], [], []>} : vector<40x40xf32>, vector<40x128xf32>, vector<40x128xf32> -> vector<40x128xf32>
    %c0_48 = arith.constant 0 : index
    %c4_49 = arith.constant 4 : index
    %91 = vector.load %arg2[%c0_48, %c4_49] : memref<40x11xf32, #tpu.memory_space<vmem>>, vector<40x1xf32>
    %92 = vector.broadcast %91 : vector<40x1xf32> to vector<40x128xf32>
    %93 = arith.addf %90, %92 : vector<40x128xf32>
    %94 = math.tanh %93 : vector<40x128xf32>
    %c1_50 = arith.constant 1 : index
    %c0_51 = arith.constant 0 : index
    %c0_52 = arith.constant 0 : index
    %95 = vector.load %arg3[%c1_50, %c0_51, %c0_52] : memref<5x40x40xf32, #tpu.memory_space<vmem>>, vector<1x40x40xf32>
    %96 = vector.shape_cast %95 : vector<1x40x40xf32> to vector<40x40xf32>
    %cst_53 = arith.constant dense<0.000000e+00> : vector<40x128xf32>
    %97 = tpu.matmul %96, %94, %cst_53 {dimension_numbers = #tpu.dot_dimension_numbers<[1], [0], [0], [1], [0, 0, 1, 1], [], []>} : vector<40x40xf32>, vector<40x128xf32>, vector<40x128xf32> -> vector<40x128xf32>
    %c0_54 = arith.constant 0 : index
    %c5_55 = arith.constant 5 : index
    %98 = vector.load %arg2[%c0_54, %c5_55] : memref<40x11xf32, #tpu.memory_space<vmem>>, vector<40x1xf32>
    %99 = vector.broadcast %98 : vector<40x1xf32> to vector<40x128xf32>
    %100 = arith.addf %97, %99 : vector<40x128xf32>
    %101 = math.tanh %100 : vector<40x128xf32>
    %c2_56 = arith.constant 2 : index
    %c0_57 = arith.constant 0 : index
    %c0_58 = arith.constant 0 : index
    %102 = vector.load %arg3[%c2_56, %c0_57, %c0_58] : memref<5x40x40xf32, #tpu.memory_space<vmem>>, vector<1x40x40xf32>
    %103 = vector.shape_cast %102 : vector<1x40x40xf32> to vector<40x40xf32>
    %cst_59 = arith.constant dense<0.000000e+00> : vector<40x128xf32>
    %104 = tpu.matmul %103, %101, %cst_59 {dimension_numbers = #tpu.dot_dimension_numbers<[1], [0], [0], [1], [0, 0, 1, 1], [], []>} : vector<40x40xf32>, vector<40x128xf32>, vector<40x128xf32> -> vector<40x128xf32>
    %c0_60 = arith.constant 0 : index
    %c6_61 = arith.constant 6 : index
    %105 = vector.load %arg2[%c0_60, %c6_61] : memref<40x11xf32, #tpu.memory_space<vmem>>, vector<40x1xf32>
    %106 = vector.broadcast %105 : vector<40x1xf32> to vector<40x128xf32>
    %107 = arith.addf %104, %106 : vector<40x128xf32>
    %108 = math.tanh %107 : vector<40x128xf32>
    %c3_62 = arith.constant 3 : index
    %c0_63 = arith.constant 0 : index
    %c0_64 = arith.constant 0 : index
    %109 = vector.load %arg3[%c3_62, %c0_63, %c0_64] : memref<5x40x40xf32, #tpu.memory_space<vmem>>, vector<1x40x40xf32>
    %110 = vector.shape_cast %109 : vector<1x40x40xf32> to vector<40x40xf32>
    %cst_65 = arith.constant dense<0.000000e+00> : vector<40x128xf32>
    %111 = tpu.matmul %110, %108, %cst_65 {dimension_numbers = #tpu.dot_dimension_numbers<[1], [0], [0], [1], [0, 0, 1, 1], [], []>} : vector<40x40xf32>, vector<40x128xf32>, vector<40x128xf32> -> vector<40x128xf32>
    %c0_66 = arith.constant 0 : index
    %c7_67 = arith.constant 7 : index
    %112 = vector.load %arg2[%c0_66, %c7_67] : memref<40x11xf32, #tpu.memory_space<vmem>>, vector<40x1xf32>
    %113 = vector.broadcast %112 : vector<40x1xf32> to vector<40x128xf32>
    %114 = arith.addf %111, %113 : vector<40x128xf32>
    %115 = math.tanh %114 : vector<40x128xf32>
    %c4_68 = arith.constant 4 : index
    %c0_69 = arith.constant 0 : index
    %c0_70 = arith.constant 0 : index
    %116 = vector.load %arg3[%c4_68, %c0_69, %c0_70] : memref<5x40x40xf32, #tpu.memory_space<vmem>>, vector<1x40x40xf32>
    %117 = vector.shape_cast %116 : vector<1x40x40xf32> to vector<40x40xf32>
    %cst_71 = arith.constant dense<0.000000e+00> : vector<40x128xf32>
    %118 = tpu.matmul %117, %115, %cst_71 {dimension_numbers = #tpu.dot_dimension_numbers<[1], [0], [0], [1], [0, 0, 1, 1], [], []>} : vector<40x40xf32>, vector<40x128xf32>, vector<40x128xf32> -> vector<40x128xf32>
    %c0_72 = arith.constant 0 : index
    %c8_73 = arith.constant 8 : index
    %119 = vector.load %arg2[%c0_72, %c8_73] : memref<40x11xf32, #tpu.memory_space<vmem>>, vector<40x1xf32>
    %120 = vector.broadcast %119 : vector<40x1xf32> to vector<40x128xf32>
    %121 = arith.addf %118, %120 : vector<40x128xf32>
    %122 = math.tanh %121 : vector<40x128xf32>
    %c0_74 = arith.constant 0 : index
    %c9_75 = arith.constant 9 : index
    %123 = vector.load %arg2[%c0_74, %c9_75] : memref<40x11xf32, #tpu.memory_space<vmem>>, vector<40x1xf32>
    %124 = vector.broadcast %123 : vector<40x1xf32> to vector<40x128xf32>
    %125 = arith.mulf %124, %122 : vector<40x128xf32>
    %cst_76 = arith.constant dense<0.000000e+00> : vector<128xf32>
    %126 = vector.multi_reduction <add>, %125, %cst_76 [0] : vector<40x128xf32> to vector<128xf32>
    %127 = vector.shape_cast %126 : vector<128xf32> to vector<1x128xf32>
    %c0_77 = arith.constant 0 : index
    %c10_78 = arith.constant 10 : index
    %128 = vector.load %arg2[%c0_77, %c10_78] : memref<40x11xf32, #tpu.memory_space<vmem>>, vector<1x1xf32>
    %129 = vector.broadcast %128 : vector<1x1xf32> to vector<1x128xf32>
    %130 = arith.addf %127, %129 : vector<1x128xf32>
    %c0_79 = arith.constant 0 : index
    %c128_80 = arith.constant 128 : index
    %131 = vector.load %arg4[%c0_79, %c128_80] : memref<1x512xf32, #tpu.memory_space<vmem>>, vector<1x128xf32>
    tpu.vector_store %arg4[%c0_79, %c128_80], %130 {strides = array<i32>} : memref<1x512xf32, #tpu.memory_space<vmem>>, vector<1x128xf32>,
    %c0_81 = arith.constant 0 : index
    %c256 = arith.constant 256 : index
    %132 = vector.load %arg1[%c0_81, %c256] : memref<3x512xf32, #tpu.memory_space<vmem>>, vector<3x128xf32>
    %c0_82 = arith.constant 0 : index
    %c3_83 = arith.constant 3 : index
    %133 = vector.load %arg2[%c0_82, %c3_83] : memref<40x11xf32, #tpu.memory_space<vmem>>, vector<40x1xf32>
    %c0_84 = arith.constant 0 : index
    %c0_85 = arith.constant 0 : index
    %134 = vector.load %arg2[%c0_84, %c0_85] : memref<40x11xf32, #tpu.memory_space<vmem>>, vector<40x1xf32>
    %135 = vector.extract_strided_slice %132 {offsets = [0, 0], sizes = [1, 128], strides = [1, 1]} : vector<3x128xf32> to vector<1x128xf32>
    %136 = vector.broadcast %134 : vector<40x1xf32> to vector<40x128xf32>
    %137 = vector.broadcast %135 : vector<1x128xf32> to vector<40x128xf32>
    %138 = arith.mulf %136, %137 : vector<40x128xf32>
    %139 = vector.broadcast %133 : vector<40x1xf32> to vector<40x128xf32>
    %140 = arith.addf %139, %138 : vector<40x128xf32>
    %c0_86 = arith.constant 0 : index
    %c1_87 = arith.constant 1 : index
    %141 = vector.load %arg2[%c0_86, %c1_87] : memref<40x11xf32, #tpu.memory_space<vmem>>, vector<40x1xf32>
    %142 = vector.extract_strided_slice %132 {offsets = [1, 0], sizes = [1, 128], strides = [1, 1]} : vector<3x128xf32> to vector<1x128xf32>
    %143 = vector.broadcast %141 : vector<40x1xf32> to vector<40x128xf32>
    %144 = vector.broadcast %142 : vector<1x128xf32> to vector<40x128xf32>
    %145 = arith.mulf %143, %144 : vector<40x128xf32>
    %146 = arith.addf %140, %145 : vector<40x128xf32>
    %c0_88 = arith.constant 0 : index
    %c2_89 = arith.constant 2 : index
    %147 = vector.load %arg2[%c0_88, %c2_89] : memref<40x11xf32, #tpu.memory_space<vmem>>, vector<40x1xf32>
    %148 = vector.extract_strided_slice %132 {offsets = [2, 0], sizes = [1, 128], strides = [1, 1]} : vector<3x128xf32> to vector<1x128xf32>
    %149 = vector.broadcast %147 : vector<40x1xf32> to vector<40x128xf32>
    %150 = vector.broadcast %148 : vector<1x128xf32> to vector<40x128xf32>
    %151 = arith.mulf %149, %150 : vector<40x128xf32>
    %152 = arith.addf %146, %151 : vector<40x128xf32>
    %153 = math.tanh %152 : vector<40x128xf32>
    %c0_90 = arith.constant 0 : index
    %c0_91 = arith.constant 0 : index
    %c0_92 = arith.constant 0 : index
    %154 = vector.load %arg3[%c0_90, %c0_91, %c0_92] : memref<5x40x40xf32, #tpu.memory_space<vmem>>, vector<1x40x40xf32>
    %155 = vector.shape_cast %154 : vector<1x40x40xf32> to vector<40x40xf32>
    %cst_93 = arith.constant dense<0.000000e+00> : vector<40x128xf32>
    %156 = tpu.matmul %155, %153, %cst_93 {dimension_numbers = #tpu.dot_dimension_numbers<[1], [0], [0], [1], [0, 0, 1, 1], [], []>} : vector<40x40xf32>, vector<40x128xf32>, vector<40x128xf32> -> vector<40x128xf32>
    %c0_94 = arith.constant 0 : index
    %c4_95 = arith.constant 4 : index
    %157 = vector.load %arg2[%c0_94, %c4_95] : memref<40x11xf32, #tpu.memory_space<vmem>>, vector<40x1xf32>
    %158 = vector.broadcast %157 : vector<40x1xf32> to vector<40x128xf32>
    %159 = arith.addf %156, %158 : vector<40x128xf32>
    %160 = math.tanh %159 : vector<40x128xf32>
    %c1_96 = arith.constant 1 : index
    %c0_97 = arith.constant 0 : index
    %c0_98 = arith.constant 0 : index
    %161 = vector.load %arg3[%c1_96, %c0_97, %c0_98] : memref<5x40x40xf32, #tpu.memory_space<vmem>>, vector<1x40x40xf32>
    %162 = vector.shape_cast %161 : vector<1x40x40xf32> to vector<40x40xf32>
    %cst_99 = arith.constant dense<0.000000e+00> : vector<40x128xf32>
    %163 = tpu.matmul %162, %160, %cst_99 {dimension_numbers = #tpu.dot_dimension_numbers<[1], [0], [0], [1], [0, 0, 1, 1], [], []>} : vector<40x40xf32>, vector<40x128xf32>, vector<40x128xf32> -> vector<40x128xf32>
    %c0_100 = arith.constant 0 : index
    %c5_101 = arith.constant 5 : index
    %164 = vector.load %arg2[%c0_100, %c5_101] : memref<40x11xf32, #tpu.memory_space<vmem>>, vector<40x1xf32>
    %165 = vector.broadcast %164 : vector<40x1xf32> to vector<40x128xf32>
    %166 = arith.addf %163, %165 : vector<40x128xf32>
    %167 = math.tanh %166 : vector<40x128xf32>
    %c2_102 = arith.constant 2 : index
    %c0_103 = arith.constant 0 : index
    %c0_104 = arith.constant 0 : index
    %168 = vector.load %arg3[%c2_102, %c0_103, %c0_104] : memref<5x40x40xf32, #tpu.memory_space<vmem>>, vector<1x40x40xf32>
    %169 = vector.shape_cast %168 : vector<1x40x40xf32> to vector<40x40xf32>
    %cst_105 = arith.constant dense<0.000000e+00> : vector<40x128xf32>
    %170 = tpu.matmul %169, %167, %cst_105 {dimension_numbers = #tpu.dot_dimension_numbers<[1], [0], [0], [1], [0, 0, 1, 1], [], []>} : vector<40x40xf32>, vector<40x128xf32>, vector<40x128xf32> -> vector<40x128xf32>
    %c0_106 = arith.constant 0 : index
    %c6_107 = arith.constant 6 : index
    %171 = vector.load %arg2[%c0_106, %c6_107] : memref<40x11xf32, #tpu.memory_space<vmem>>, vector<40x1xf32>
    %172 = vector.broadcast %171 : vector<40x1xf32> to vector<40x128xf32>
    %173 = arith.addf %170, %172 : vector<40x128xf32>
    %174 = math.tanh %173 : vector<40x128xf32>
    %c3_108 = arith.constant 3 : index
    %c0_109 = arith.constant 0 : index
    %c0_110 = arith.constant 0 : index
    %175 = vector.load %arg3[%c3_108, %c0_109, %c0_110] : memref<5x40x40xf32, #tpu.memory_space<vmem>>, vector<1x40x40xf32>
    %176 = vector.shape_cast %175 : vector<1x40x40xf32> to vector<40x40xf32>
    %cst_111 = arith.constant dense<0.000000e+00> : vector<40x128xf32>
    %177 = tpu.matmul %176, %174, %cst_111 {dimension_numbers = #tpu.dot_dimension_numbers<[1], [0], [0], [1], [0, 0, 1, 1], [], []>} : vector<40x40xf32>, vector<40x128xf32>, vector<40x128xf32> -> vector<40x128xf32>
    %c0_112 = arith.constant 0 : index
    %c7_113 = arith.constant 7 : index
    %178 = vector.load %arg2[%c0_112, %c7_113] : memref<40x11xf32, #tpu.memory_space<vmem>>, vector<40x1xf32>
    %179 = vector.broadcast %178 : vector<40x1xf32> to vector<40x128xf32>
    %180 = arith.addf %177, %179 : vector<40x128xf32>
    %181 = math.tanh %180 : vector<40x128xf32>
    %c4_114 = arith.constant 4 : index
    %c0_115 = arith.constant 0 : index
    %c0_116 = arith.constant 0 : index
    %182 = vector.load %arg3[%c4_114, %c0_115, %c0_116] : memref<5x40x40xf32, #tpu.memory_space<vmem>>, vector<1x40x40xf32>
    %183 = vector.shape_cast %182 : vector<1x40x40xf32> to vector<40x40xf32>
    %cst_117 = arith.constant dense<0.000000e+00> : vector<40x128xf32>
    %184 = tpu.matmul %183, %181, %cst_117 {dimension_numbers = #tpu.dot_dimension_numbers<[1], [0], [0], [1], [0, 0, 1, 1], [], []>} : vector<40x40xf32>, vector<40x128xf32>, vector<40x128xf32> -> vector<40x128xf32>
    %c0_118 = arith.constant 0 : index
    %c8_119 = arith.constant 8 : index
    %185 = vector.load %arg2[%c0_118, %c8_119] : memref<40x11xf32, #tpu.memory_space<vmem>>, vector<40x1xf32>
    %186 = vector.broadcast %185 : vector<40x1xf32> to vector<40x128xf32>
    %187 = arith.addf %184, %186 : vector<40x128xf32>
    %188 = math.tanh %187 : vector<40x128xf32>
    %c0_120 = arith.constant 0 : index
    %c9_121 = arith.constant 9 : index
    %189 = vector.load %arg2[%c0_120, %c9_121] : memref<40x11xf32, #tpu.memory_space<vmem>>, vector<40x1xf32>
    %190 = vector.broadcast %189 : vector<40x1xf32> to vector<40x128xf32>
    %191 = arith.mulf %190, %188 : vector<40x128xf32>
    %cst_122 = arith.constant dense<0.000000e+00> : vector<128xf32>
    %192 = vector.multi_reduction <add>, %191, %cst_122 [0] : vector<40x128xf32> to vector<128xf32>
    %193 = vector.shape_cast %192 : vector<128xf32> to vector<1x128xf32>
    %c0_123 = arith.constant 0 : index
    %c10_124 = arith.constant 10 : index
    %194 = vector.load %arg2[%c0_123, %c10_124] : memref<40x11xf32, #tpu.memory_space<vmem>>, vector<1x1xf32>
    %195 = vector.broadcast %194 : vector<1x1xf32> to vector<1x128xf32>
    %196 = arith.addf %193, %195 : vector<1x128xf32>
    %c0_125 = arith.constant 0 : index
    %c256_126 = arith.constant 256 : index
    %197 = vector.load %arg4[%c0_125, %c256_126] : memref<1x512xf32, #tpu.memory_space<vmem>>, vector<1x128xf32>
    tpu.vector_store %arg4[%c0_125, %c256_126], %196 {strides = array<i32>} : memref<1x512xf32, #tpu.memory_space<vmem>>, vector<1x128xf32>,
    %c0_127 = arith.constant 0 : index
    %c384 = arith.constant 384 : index
    %198 = vector.load %arg1[%c0_127, %c384] : memref<3x512xf32, #tpu.memory_space<vmem>>, vector<3x128xf32>
    %c0_128 = arith.constant 0 : index
    %c3_129 = arith.constant 3 : index
    %199 = vector.load %arg2[%c0_128, %c3_129] : memref<40x11xf32, #tpu.memory_space<vmem>>, vector<40x1xf32>
    %c0_130 = arith.constant 0 : index
    %c0_131 = arith.constant 0 : index
    %200 = vector.load %arg2[%c0_130, %c0_131] : memref<40x11xf32, #tpu.memory_space<vmem>>, vector<40x1xf32>
    %201 = vector.extract_strided_slice %198 {offsets = [0, 0], sizes = [1, 128], strides = [1, 1]} : vector<3x128xf32> to vector<1x128xf32>
    %202 = vector.broadcast %200 : vector<40x1xf32> to vector<40x128xf32>
    %203 = vector.broadcast %201 : vector<1x128xf32> to vector<40x128xf32>
    %204 = arith.mulf %202, %203 : vector<40x128xf32>
    %205 = vector.broadcast %199 : vector<40x1xf32> to vector<40x128xf32>
    %206 = arith.addf %205, %204 : vector<40x128xf32>
    %c0_132 = arith.constant 0 : index
    %c1_133 = arith.constant 1 : index
    %207 = vector.load %arg2[%c0_132, %c1_133] : memref<40x11xf32, #tpu.memory_space<vmem>>, vector<40x1xf32>
    %208 = vector.extract_strided_slice %198 {offsets = [1, 0], sizes = [1, 128], strides = [1, 1]} : vector<3x128xf32> to vector<1x128xf32>
    %209 = vector.broadcast %207 : vector<40x1xf32> to vector<40x128xf32>
    %210 = vector.broadcast %208 : vector<1x128xf32> to vector<40x128xf32>
    %211 = arith.mulf %209, %210 : vector<40x128xf32>
    %212 = arith.addf %206, %211 : vector<40x128xf32>
    %c0_134 = arith.constant 0 : index
    %c2_135 = arith.constant 2 : index
    %213 = vector.load %arg2[%c0_134, %c2_135] : memref<40x11xf32, #tpu.memory_space<vmem>>, vector<40x1xf32>
    %214 = vector.extract_strided_slice %198 {offsets = [2, 0], sizes = [1, 128], strides = [1, 1]} : vector<3x128xf32> to vector<1x128xf32>
    %215 = vector.broadcast %213 : vector<40x1xf32> to vector<40x128xf32>
    %216 = vector.broadcast %214 : vector<1x128xf32> to vector<40x128xf32>
    %217 = arith.mulf %215, %216 : vector<40x128xf32>
    %218 = arith.addf %212, %217 : vector<40x128xf32>
    %219 = math.tanh %218 : vector<40x128xf32>
    %c0_136 = arith.constant 0 : index
    %c0_137 = arith.constant 0 : index
    %c0_138 = arith.constant 0 : index
    %220 = vector.load %arg3[%c0_136, %c0_137, %c0_138] : memref<5x40x40xf32, #tpu.memory_space<vmem>>, vector<1x40x40xf32>
    %221 = vector.shape_cast %220 : vector<1x40x40xf32> to vector<40x40xf32>
    %cst_139 = arith.constant dense<0.000000e+00> : vector<40x128xf32>
    %222 = tpu.matmul %221, %219, %cst_139 {dimension_numbers = #tpu.dot_dimension_numbers<[1], [0], [0], [1], [0, 0, 1, 1], [], []>} : vector<40x40xf32>, vector<40x128xf32>, vector<40x128xf32> -> vector<40x128xf32>
    %c0_140 = arith.constant 0 : index
    %c4_141 = arith.constant 4 : index
    %223 = vector.load %arg2[%c0_140, %c4_141] : memref<40x11xf32, #tpu.memory_space<vmem>>, vector<40x1xf32>
    %224 = vector.broadcast %223 : vector<40x1xf32> to vector<40x128xf32>
    %225 = arith.addf %222, %224 : vector<40x128xf32>
    %226 = math.tanh %225 : vector<40x128xf32>
    %c1_142 = arith.constant 1 : index
    %c0_143 = arith.constant 0 : index
    %c0_144 = arith.constant 0 : index
    %227 = vector.load %arg3[%c1_142, %c0_143, %c0_144] : memref<5x40x40xf32, #tpu.memory_space<vmem>>, vector<1x40x40xf32>
    %228 = vector.shape_cast %227 : vector<1x40x40xf32> to vector<40x40xf32>
    %cst_145 = arith.constant dense<0.000000e+00> : vector<40x128xf32>
    %229 = tpu.matmul %228, %226, %cst_145 {dimension_numbers = #tpu.dot_dimension_numbers<[1], [0], [0], [1], [0, 0, 1, 1], [], []>} : vector<40x40xf32>, vector<40x128xf32>, vector<40x128xf32> -> vector<40x128xf32>
    %c0_146 = arith.constant 0 : index
    %c5_147 = arith.constant 5 : index
    %230 = vector.load %arg2[%c0_146, %c5_147] : memref<40x11xf32, #tpu.memory_space<vmem>>, vector<40x1xf32>
    %231 = vector.broadcast %230 : vector<40x1xf32> to vector<40x128xf32>
    %232 = arith.addf %229, %231 : vector<40x128xf32>
    %233 = math.tanh %232 : vector<40x128xf32>
    %c2_148 = arith.constant 2 : index
    %c0_149 = arith.constant 0 : index
    %c0_150 = arith.constant 0 : index
    %234 = vector.load %arg3[%c2_148, %c0_149, %c0_150] : memref<5x40x40xf32, #tpu.memory_space<vmem>>, vector<1x40x40xf32>
    %235 = vector.shape_cast %234 : vector<1x40x40xf32> to vector<40x40xf32>
    %cst_151 = arith.constant dense<0.000000e+00> : vector<40x128xf32>
    %236 = tpu.matmul %235, %233, %cst_151 {dimension_numbers = #tpu.dot_dimension_numbers<[1], [0], [0], [1], [0, 0, 1, 1], [], []>} : vector<40x40xf32>, vector<40x128xf32>, vector<40x128xf32> -> vector<40x128xf32>
    %c0_152 = arith.constant 0 : index
    %c6_153 = arith.constant 6 : index
    %237 = vector.load %arg2[%c0_152, %c6_153] : memref<40x11xf32, #tpu.memory_space<vmem>>, vector<40x1xf32>
    %238 = vector.broadcast %237 : vector<40x1xf32> to vector<40x128xf32>
    %239 = arith.addf %236, %238 : vector<40x128xf32>
    %240 = math.tanh %239 : vector<40x128xf32>
    %c3_154 = arith.constant 3 : index
    %c0_155 = arith.constant 0 : index
    %c0_156 = arith.constant 0 : index
    %241 = vector.load %arg3[%c3_154, %c0_155, %c0_156] : memref<5x40x40xf32, #tpu.memory_space<vmem>>, vector<1x40x40xf32>
    %242 = vector.shape_cast %241 : vector<1x40x40xf32> to vector<40x40xf32>
    %cst_157 = arith.constant dense<0.000000e+00> : vector<40x128xf32>
    %243 = tpu.matmul %242, %240, %cst_157 {dimension_numbers = #tpu.dot_dimension_numbers<[1], [0], [0], [1], [0, 0, 1, 1], [], []>} : vector<40x40xf32>, vector<40x128xf32>, vector<40x128xf32> -> vector<40x128xf32>
    %c0_158 = arith.constant 0 : index
    %c7_159 = arith.constant 7 : index
    %244 = vector.load %arg2[%c0_158, %c7_159] : memref<40x11xf32, #tpu.memory_space<vmem>>, vector<40x1xf32>
    %245 = vector.broadcast %244 : vector<40x1xf32> to vector<40x128xf32>
    %246 = arith.addf %243, %245 : vector<40x128xf32>
    %247 = math.tanh %246 : vector<40x128xf32>
    %c4_160 = arith.constant 4 : index
    %c0_161 = arith.constant 0 : index
    %c0_162 = arith.constant 0 : index
    %248 = vector.load %arg3[%c4_160, %c0_161, %c0_162] : memref<5x40x40xf32, #tpu.memory_space<vmem>>, vector<1x40x40xf32>
    %249 = vector.shape_cast %248 : vector<1x40x40xf32> to vector<40x40xf32>
    %cst_163 = arith.constant dense<0.000000e+00> : vector<40x128xf32>
    %250 = tpu.matmul %249, %247, %cst_163 {dimension_numbers = #tpu.dot_dimension_numbers<[1], [0], [0], [1], [0, 0, 1, 1], [], []>} : vector<40x40xf32>, vector<40x128xf32>, vector<40x128xf32> -> vector<40x128xf32>
    %c0_164 = arith.constant 0 : index
    %c8_165 = arith.constant 8 : index
    %251 = vector.load %arg2[%c0_164, %c8_165] : memref<40x11xf32, #tpu.memory_space<vmem>>, vector<40x1xf32>
    %252 = vector.broadcast %251 : vector<40x1xf32> to vector<40x128xf32>
    %253 = arith.addf %250, %252 : vector<40x128xf32>
    %254 = math.tanh %253 : vector<40x128xf32>
    %c0_166 = arith.constant 0 : index
    %c9_167 = arith.constant 9 : index
    %255 = vector.load %arg2[%c0_166, %c9_167] : memref<40x11xf32, #tpu.memory_space<vmem>>, vector<40x1xf32>
    %256 = vector.broadcast %255 : vector<40x1xf32> to vector<40x128xf32>
    %257 = arith.mulf %256, %254 : vector<40x128xf32>
    %cst_168 = arith.constant dense<0.000000e+00> : vector<128xf32>
    %258 = vector.multi_reduction <add>, %257, %cst_168 [0] : vector<40x128xf32> to vector<128xf32>
    %259 = vector.shape_cast %258 : vector<128xf32> to vector<1x128xf32>
    %c0_169 = arith.constant 0 : index
    %c10_170 = arith.constant 10 : index
    %260 = vector.load %arg2[%c0_169, %c10_170] : memref<40x11xf32, #tpu.memory_space<vmem>>, vector<1x1xf32>
    %261 = vector.broadcast %260 : vector<1x1xf32> to vector<1x128xf32>
    %262 = arith.addf %259, %261 : vector<1x128xf32>
    %c0_171 = arith.constant 0 : index
    %c384_172 = arith.constant 384 : index
    %263 = vector.load %arg4[%c0_171, %c384_172] : memref<1x512xf32, #tpu.memory_space<vmem>>, vector<1x128xf32>
    tpu.vector_store %arg4[%c0_171, %c384_172], %262 {strides = array<i32>} : memref<1x512xf32, #tpu.memory_space<vmem>>, vector<1x128xf32>,
    return
  }
  func.func @transform_0(%arg0: i32) -> (i32, i32) {
    %c0_i32 = arith.constant 0 : i32
    %c0_i32_0 = arith.constant 0 : i32
    return %c0_i32, %arg0 : i32, i32
  }
  func.func @transform_1(%arg0: i32) -> (i32, i32) {
    %c0_i32 = arith.constant 0 : i32
    %c0_i32_0 = arith.constant 0 : i32
    %c0_i32_1 = arith.constant 0 : i32
    return %c0_i32, %c0_i32_0 : i32, i32
  }
  func.func @transform_2(%arg0: i32) -> (i32, i32, i32) {
    %c0_i32 = arith.constant 0 : i32
    %c0_i32_0 = arith.constant 0 : i32
    %c0_i32_1 = arith.constant 0 : i32
    %c0_i32_2 = arith.constant 0 : i32
    return %c0_i32, %c0_i32_0, %c0_i32_1 : i32, i32, i32
  }
  func.func @transform_3(%arg0: i32) -> (i32, i32) {
    %c0_i32 = arith.constant 0 : i32
    %c0_i32_0 = arith.constant 0 : i32
    return %c0_i32, %arg0 : i32, i32
  }
}

</mosaic_0001>

<bundles_post_ra>
// kernel: mlp_forward.1
= control target key start
LH: loop header
LB: loop body
LE: loop exit
PB: predicated region body
PF: predicated region fallthrough
CT: control target
= control target key end

     0   :  { %8 = vsyncpa [#allocation3], 0  ;;  %s6651_s0 = inlined_call_operand.vmem [shape: f32[3,1024], index: 0, kind: input, shape index: {}]   ;;  %s6652_s1 = inlined_call_operand.vmem [shape: f32[40,11], index: 1, kind: input, shape index: {}]   ;;  %s6653_s2 = inlined_call_operand.hbm [shape: f32[5,40,40], index: 2, kind: input, shape index: {}]   ;;  %s6654_s3 = inlined_call_operand.hbm [shape: f32[1,1024], index: 3, kind: output, shape index: {}]  }
   0x1   :  { %9 = vsyncpa [#allocation4], 0 }
   0x2   :  { %11 = vsyncpa [#allocation4 + $0x1], 0  ;;  %s5193_s12 = smov 0   ;;  %s5195_s13 = smov 0  }
   0x3   :  { %s5197_s14 = smov 0   ;;  %s5199_s15 = smov 0  }
   0x4 LB: > { %s5214_s16 = sadd.s32 4294967295, %s5153_s15   ;;  %s3706_s17 = sadd.s32 4294967294, %s5153_s15   ;;  %s5153_s15 = sphi %s5199_s15, %s6795_s15   ;;  %s5149_s14 = sphi %s5197_s14, %s6794_s14   ;;  %s5145_s13 = sphi %s5195_s13, %s6793_s13   ;;  %s5141_s12 = sphi %s5193_s12, %s6792_s12  }
   0x5   : > { %s5218_s18 = sadd.s32 1, %s5153_s15   ;;  %s92_s19 = sadd.s32 1, %s5149_s14 }
   0x6   : > { %s89_s20 = ssub.s32 %s5153_s15, %s5218_s18  ;;  %p102_p0 = scmp.ne.s32.totalorder %s5149_s14, %s5145_s13 }
   0x7   : > { %p90_p1 = scmp.eq.s32.totalorder %s89_s20, 0  ;;  %p103_p2 = scmp.eq.s32.totalorder %s5214_s16, 1 }
   0x8   : > { %p108_p3 = scmp.ne.s32.totalorder %s5145_s13, %s5141_s12  ;;  %p109_p4 = scmp.eq.s32.totalorder %s3706_s17, 1 }
   0x9   : > { %s5229_s21 = scalar_select %p90_p1, %s5149_s14, %s92_s19  }
   0xa   : > { %p5231_p5 = por %p103_p2, %p102_p0  ;;  %p5235_p6 = por %p109_p4, %p108_p3 }
   0xb   : > { %p3707_p7 = scmp.ge.s32.totalorder %s5153_s15, 1  ;;  %p116_p8 = scmp.lt.s32.totalorder %s5153_s15, 3 }
   0xc   : > { %s6669_s22 = scalar_select %p5231_p5, 1, 0 }
   0xd   : > { %s6670_s23 = scalar_select %p5235_p6, 1, 0 }
   0xe   : > { %p6655_p9 = scmp.eq.s32.totalorder %s5214_s16, 0  ;;  %p5242_p10 = pnand %p3707_p7, %p116_p8 }
   0xf   : > { %s5155_s25 = smov [#allocation2]   ;;  %s5059_s30 = scalar_lea.hbm %s6653_s2, 3200 }
  0x10   : > { %s6671_s24 = scalar_select %p5242_p10, 1, 0 }
  0x11   : > { %s131_s26 = sshll.u32 %s5155_s25, 4  ;;  %p4647_p11 = pneg %p5242_p10  ;;  %s132_s26 = int_to_ptr.vmem [resolvable:$true] %s131_s26 }
  0x12   : > { %p5060_p13 = scmp.ne.s32.totalorder %s6653_s2, %s5059_s30  ;;  %p5066_p3 = scmp.lt.u32.totalorder %s5059_s30, %s6653_s2 }
  0x13   : > { %p5250_p12 = pnand %p6655_p9, %p4647_p11 }
  0x15   : > { %p5061_p0 = pneg %p5250_p12 }
  0x17   : > { %p5062_p1 = pnand %p5061_p0, %p5060_p13 }
  0x19   : > { %p5063_p2 = pneg %p5062_p1 }
  0x1b   : > { %p5068_p4 = pnand %p5066_p3, %p5063_p2 }
  0x1d   : > { %5071 = shalt.err (!%p5068_p4)
}
  0x1e   : > { %s5072_s8 = scalar_lea.vmem %s132_s26, 3200  ;;  %p5080_p9 = scmp.lt.s32.totalorder %s132_s26, %s132_s26 }
  0x1f   : > { %p5073_p7 = scmp.ne.s32.totalorder %s132_s26, %s5072_s8  ;;  %p5081_p6 = scmp.lt.s32.totalorder %s5072_s8, %s5072_s8 }
  0x21   : > { %p5075_p8 = pnand %p5073_p7, %p5061_p0  ;;  %p5082_p5 = por %p5081_p6, %p5080_p9 }
  0x23   : > { %p5076_p11 = pneg %p5075_p8 }
  0x25   : > { %p5083_p10 = pnand %p5082_p5, %p5076_p11 }
  0x27   : > { %5086 = shalt.err (!%p5083_p10)
}
  0x28   : > { %s5156_s9 = smov 128   ;;  %s5157_s10 = smov 8  }
  0x29   : > { %4650 = dma.hbm_to_vmem [thread:$0]  (!%p5250_p12), %s6653_s2, 3200, %s132_s26, [#allocation3], %s5156_s9, %s5156_s9, %s5157_s10  }
  0x2a   : > { %p6673_p13 = scmp.ne.s32.totalorder %s6671_s24, 0 }
  0x2c   : > { %156 = sbr.rel (%p6673_p13) target bundleno = 3759 (0xeaf), region = 32 }
  0x33   : > { %p6674_p1 = scmp.eq.s32.totalorder %s5214_s16, 0 }
  0x35   : > { %5132 = dma.done.wait (%p6674_p1), [#allocation3], 3200   ;;  %p6675_p0 = pmov %p6674_p1 }
  0x36   : > { %v5158_v0 = vmov 3   ;;  %v5281_v1 = vld [vmem:[%s6652_s1 + $0x10] sm:$0xff]  ;;  %v5286_v2 = vld [vmem:[%s6652_s1] sm:$0xff]  ;;  %v5293_v3 = vld [vmem:[%s6652_s1 + $0x8] sm:$0xff]  ;;  %v5159_v4 = vmov 1   ;;  %v5160_v6 = vmov 0   ;;  %v6658_v14 = vlaneseq }
  0x37   : > { %5134 = vsyncadd (%p6675_p0), [#allocation3], 4294964096  ;;  %4711 = vset.pattern.permute.xlu0 %v5158_v0  ;;  %4707 = vset.pattern.permute.xlu1 %v5158_v0  ;;  %v5301_v5 = vld [vmem:[%s6652_s1 + $0x18] sm:$0xff]  ;;  %v5161_v7 = vmov 2   ;;  %v5318_v8 = vld [vmem:[%s6652_s1 + $0x20] sm:$0xff]  ;;  %v6661_v9 = vmov 0.0|0.0  }
  0x38   : > { %236 = vperm.xlu0 %4711, %v5281_v1   ;;  %228 = vperm.xlu1 %4707, %v5286_v2   ;;  %vm5163_vm0 = vmmov 0   ;;  %v6659_v10 = vmov 0.0   ;;  %v5165_v11 = vmov 4   ;;  %s3713_s5 = sshll.u32 %s5214_s16, 2  ;;  %v219_v16 = vshrl.u32 %v6658_v14, 7  ;;  %s3820_s30 = sshll.u32 %s5214_s16, 6 }
  0x39   : > { %4521 = vmatprep.subr.bf16.mxu0 %v6661_v9  ;;  %4527 = vmatprep.subr.bf16.mxu1 %v6661_v9  ;;  %p181_p5 = scmp.lt.s32.totalorder %s3713_s5, 7  ;;  %vm350_vm1 = vcmask 326656   ;;  %s6604_s7 = scalar_lea.hbm %s6654_s3, %s3820_s30 }
  0x3a   : > { %4031 = vmatprep.mubr.msk.f32.mxu0 %vm5163_vm0, %v6659_v10  ;;  %4056 = vmatprep.mubr.msk.f32.mxu1 %vm5163_vm0, %v6659_v10  ;;  %v5354_v18 = vsub.s32 0, %v219_v16  ;;  %v5356_v19 = vsub.s32 1, %v219_v16  ;;  %v5360_v24 = vsub.s32 2, %v219_v16  ;;  %p6790_p9 = scmp.ne.s32.totalorder %s6669_s22, 0  ;;  %s5172_s10 = smov [#allocation5]  }
  0x3b   : > { %s6797_s5 = smov (!%p181_p5, %s3713_s5), 7  ;;  %s5091_s11 = sshll.u32 %s5172_s10, 4  ;;  %s5092_s11 = int_to_ptr.vmem [resolvable:$false] %s5091_s11 }
  0x3c   : > { %4712 = vset.pattern.permute.xlu0 %v5159_v4  ;;  %232 = vperm.xlu1 %4707, %v5293_v3   ;;  %s3714_s6 = sshll.u32 %s6797_s5, 2  ;;  %s5093_s17 = scalar_lea.vmem %s5092_s11, 128 }
  0x3d   : > { %253 = vperm.xlu0 %4712, %v5286_v2   ;;  %s5352_s9 = scalar_lea.vmem %s6651_s0, %s3714_s6 }
  0x3e   : > { %v187_v22 = vld [vmem:[%s5352_s9] sm:$0x7] }
  0x3f   : > { %v221_v23 = vrot.slane %v187_v22, %v5354_v18  ;;  %v275_v25 = vrot.slane %v187_v22, %v5356_v19  ;;  %v309_v30 = vrot.slane %v187_v22, %v5360_v24 }
  0x40   : > { %4708 = vset.pattern.permute.xlu1 %v5159_v4 }
  0x41   : > { %265 = vperm.xlu0 %4712, %v5301_v5   ;;  %257 = vperm.xlu1 %4708, %v5293_v3  }
  0x45   : > { %4715 = vset.pattern.permute.xlu0 %v5160_v6  ;;  %4709 = vset.pattern.permute.xlu1 %v5160_v6 }
  0x46   : > { %195 = vperm.xlu0 %4715, %v5286_v2   ;;  %205 = vperm.xlu1 %4709, %v5281_v1  }
  0x4a   : > { %200 = vperm.xlu0 %4715, %v5293_v3   ;;  %4710 = vset.pattern.permute.xlu1 %v5161_v7 }
  0x4b   : > { %287 = vperm.xlu1 %4710, %v5286_v2  }
  0x4e   : > { %210 = vperm.xlu0 %4715, %v5301_v5  }
  0x4f   : > { %291 = vperm.xlu1 %4710, %v5293_v3  }
  0x52   : > { %215 = vperm.xlu0 %4715, %v5318_v8  }
  0x53   : > { %4713 = vset.pattern.permute.xlu1 %v5158_v0 }
  0x54   : > { %240 = vperm.xlu1 %4713, %v5301_v5  }
  0x56   : > { %4719 = vset.pattern.permute.xlu0 %v5161_v7 }
  0x57   : > { %303 = vperm.xlu0 %4719, %v5318_v8  }
  0x58   : > { %4714 = vset.pattern.permute.xlu1 %v5159_v4 }
  0x59   : > { %261 = vperm.xlu1 %4714, %v5281_v1  }
  0x5b   : > { %4721 = vset.pattern.permute.xlu0 %v5165_v11 }
  0x5c   : > { %339 = vperm.xlu0 %4721, %v5281_v1  }
  0x5d   : > { %4716 = vset.pattern.permute.xlu1 %v5161_v7 }
  0x5e   : > { %295 = vperm.xlu1 %4716, %v5281_v1  }
  0x62   : > { %299 = vperm.xlu1 %4716, %v5301_v5  }
  0x66   : > { %4717 = vset.pattern.permute.xlu1 %v5158_v0 }
  0x67   : > { %244 = vperm.xlu1 %4717, %v5318_v8  }
  0x6b   : > { %4718 = vset.pattern.permute.xlu1 %v5159_v4 }
  0x6c   : > { %269 = vperm.xlu1 %4718, %v5318_v8  }
  0x70   : > { %4720 = vset.pattern.permute.xlu1 %v5165_v11 }
  0x71   : > { %331 = vperm.xlu1 %4720, %v5286_v2  }
  0x75   : > { %335 = vperm.xlu1 %4720, %v5293_v3  }
  0x79   : > { %343 = vperm.xlu1 %4720, %v5301_v5  }
  0x7d   : > { %347 = vperm.xlu1 %4720, %v5318_v8  }
  0xb7   : > { %v229_v12 = vpop.permute.xlu1 %228  ;;  %v237_v13 = vpop.permute.xlu0 %236 }
  0xbb   : > { %v233_v15 = vpop.permute.xlu1 %232 }
  0xbc   : > { %v254_v17 = vpop.permute.xlu0 %253 }
  0xbd   : > { %v276_v28 = vmul.f32 %v275_v25, %v254_v17 }
  0xc0   : > { %v258_v20 = vpop.permute.xlu1 %257  ;;  %v266_v21 = vpop.permute.xlu0 %265 }
  0xc1   : > { %v277_v37 = vmul.f32 %v275_v25, %v258_v20  ;;  %v279_v54 = vmul.f32 %v275_v25, %v266_v21 }
  0xc5   : > { %v196_v26 = vpop.permute.xlu0 %195  ;;  %v206_v27 = vpop.permute.xlu1 %205 }
  0xc6   : > { %v222_v29 = vmul.f32 %v221_v23, %v196_v26  ;;  %v224_v47 = vmul.f32 %v221_v23, %v206_v27 }
  0xc8   : > { %v247_v31 = vadd.f32 %v229_v12, %v222_v29  ;;  %v249_v52 = vadd.f32 %v237_v13, %v224_v47 }
  0xc9   : > { %v201_v32 = vpop.permute.xlu0 %200 }
  0xca   : > { %v223_v33 = vmul.f32 %v221_v23, %v201_v32  ;;  %v288_v34 = vpop.permute.xlu1 %287  ;;  %v281_v35 = vadd.f32 %v276_v28, %v247_v31  ;;  %v5366_v32 = vld [vmem:[#allocation2] sm:$0xff] }
  0xcb   : > { %v310_v36 = vmul.f32 %v309_v30, %v288_v34  ;;  %v5391_v34 = vld [vmem:[#allocation2 + $0x20] sm:$0xff] }
  0xcc   : > { %v248_v38 = vadd.f32 %v233_v15, %v223_v33 }
  0xcd   : > { %v315_v39 = vadd.f32 %v310_v36, %v281_v35  ;;  %v211_v45 = vpop.permute.xlu0 %210  ;;  %v5166_v35 = vmov 5  }
  0xce   : > { %v292_v40 = vpop.permute.xlu1 %291  ;;  %v282_v41 = vadd.f32 %v277_v37, %v248_v38  ;;  %v225_v48 = vmul.f32 %v221_v23, %v211_v45  ;;  %4723 = vset.pattern.permute.xlu1 %v5166_v35  ;;  %4722 = vset.pattern.permute.xlu0 %v5166_v35 }
  0xcf   : > { %v311_v42 = vmul.f32 %v309_v30, %v292_v40  ;;  %4809 = vtanh.f32 %v315_v39  ;;  %472 = vperm.xlu1 %4723, %v5293_v3   ;;  %468 = vperm.xlu0 %4722, %v5286_v2  }
  0xd1   : > { %v316_v43 = vadd.f32 %v311_v42, %v282_v41  ;;  %v216_v12 = vpop.permute.xlu0 %215 }
  0xd2   : > { %v226_v13 = vmul.f32 %v221_v23, %v216_v12  ;;  %v5373_v23 = vld [vmem:[#allocation2 + $0x8] sm:$0xff]  ;;  %v463_v12 = vld [vmem:[#allocation2 + $0x30] sm:$0xff] }
  0xd3   : > { %4811 = vtanh.f32 %v316_v43  ;;  %v241_v44 = vpop.permute.xlu1 %240  ;;  %476 = vperm.xlu1 %4723, %v5281_v1   ;;  %480 = vperm.xlu0 %4722, %v5301_v5  }
  0xd4   : > { %v250_v55 = vadd.f32 %v241_v44, %v225_v48 }
  0xd6   : > { %v284_v61 = vadd.f32 %v279_v54, %v250_v55  ;;  %v304_v16 = vpop.permute.xlu0 %303 }
  0xd7   : > { %v314_v22 = vmul.f32 %v309_v30, %v304_v16  ;;  %484 = vperm.xlu1 %4723, %v5318_v8   ;;  %v465_v16 = vld [vmem:[#allocation2 + $0x40] sm:$0xff] }
  0xd8   : > { %v262_v46 = vpop.permute.xlu1 %261 }
  0xd9   : > { %v278_v49 = vmul.f32 %v275_v25, %v262_v46  ;;  %v4810_v50 = vpop.eup %4809 }
  0xdb   : > { %v283_v58 = vadd.f32 %v278_v49, %v249_v52  ;;  %v340_v44 = vpop.permute.xlu0 %339 }
  0xdd   : > { %v4812_v51 = vpop.eup %4811  ;;  %v296_v53 = vpop.permute.xlu1 %295 }
  0xde   : > { %v312_v56 = vmul.f32 %v309_v30, %v296_v53  ;;  %v4522_v57 = vpack.c.bf16 %v4812_v51, %v4810_v50 }
  0xe0   : > { %4523 = vmatpush3.bf16.msra.mxu0 %v4522_v57  ;;  %v317_v59 = vadd.f32 %v312_v56, %v283_v58 }
  0xe1   : > { %v300_v60 = vpop.permute.xlu1 %299  ;;  %4524 = vmatprep.subr.bf16.mxu0 %v6661_v9 }
  0xe2   : > { %v313_v62 = vmul.f32 %v309_v30, %v300_v60  ;;  %4813 = vtanh.f32 %v317_v59  ;;  %v5385_v30 = vld [vmem:[#allocation2 + $0x18] sm:$0xff] }
  0xe4   : > { %v318_v63 = vadd.f32 %v313_v62, %v284_v61  ;;  %v462_v62 = vld [vmem:[#allocation2 + $0x28] sm:$0xff] }
  0xe6   : > { %4815 = vtanh.f32 %v318_v63  ;;  %v245_v15 = vpop.permute.xlu1 %244 }
  0xe7   : > { %v251_v20 = vadd.f32 %v245_v15, %v226_v13  ;;  %v464_v15 = vld [vmem:[#allocation2 + $0x38] sm:$0xff]  ;;  %v466_v13 = vld [vmem:[#allocation2 + $0x48] sm:$0xff] }
  0xeb   : > { %v270_v17 = vpop.permute.xlu1 %269 }
  0xec   : > { %v280_v21 = vmul.f32 %v275_v25, %v270_v17  ;;  %v4814_v27 = vpop.eup %4813  ;;  %v5379_v25 = vld [vmem:[#allocation2 + $0x10] sm:$0xff]  ;;  %v5167_v17 = vmov 6  }
  0xed   : > { %4725 = vset.pattern.permute.xlu1 %v5167_v17  ;;  %4724 = vset.pattern.permute.xlu0 %v5167_v17 }
  0xee   : > { %v285_v26 = vadd.f32 %v280_v21, %v251_v20  ;;  %608 = vperm.xlu1 %4725, %v5293_v3   ;;  %604 = vperm.xlu0 %4724, %v5286_v2  }
  0xf0   : > { %v4816_v28 = vpop.eup %4815  ;;  %v319_v29 = vadd.f32 %v314_v22, %v285_v26  ;;  %v332_v36 = vpop.permute.xlu1 %331 }
  0xf1   : > { %v4525_v31 = vpack.c.bf16 %v4816_v28, %v4814_v27 }
  0xf2   : > { %4817 = vtanh.f32 %v319_v29  ;;  %612 = vperm.xlu1 %4725, %v5281_v1   ;;  %616 = vperm.xlu0 %4724, %v5301_v5  }
  0xf3   : > { %4526 = vmatpush3.bf16.msra.mxu0 %v4525_v31 }
  0xf4   : > { %4029 = vmatprep.subr.mxu0 %v6659_v10  ;;  %v336_v40 = vpop.permute.xlu1 %335 }
  0xf6   : > { %620 = vperm.xlu1 %4725, %v5318_v8   ;;  %4728 = vset.pattern.permute.xlu0 %v5158_v0 }
  0xf7   : > { %1097 = vperm.xlu0 %4728, %v5293_v3  }
  0xf8   : > { %v344_v47 = vpop.permute.xlu1 %343 }
  0xfa   : > { %4726 = vset.pattern.permute.xlu1 %v5160_v6 }
  0xfb   : > { %1065 = vperm.xlu1 %4726, %v5293_v3   ;;  %4729 = vset.pattern.permute.xlu0 %v5160_v6 }
  0xfc   : > { %v4818_v33 = vpop.eup %4817  ;;  %v348_v53 = vpop.permute.xlu1 %347  ;;  %1060 = vperm.xlu0 %4729, %v5286_v2  }
  0xfd   : > { %4030 = vmatpush3.msra.mxu0 %v4818_v33 }
  0xfe   : > { %4032 = vmatmul.mubr.msk.f32.vlgmr.msra.gmra.mrb[0].mxu0 %vm350_vm1, %v5366_v32  ;;  %4533 = vmatprep.subr.bf16.mxu0 %v6661_v9 }
  0xff   : > { %4034 = vmatprep.mubr.msk.f32.mxu0 %vm5163_vm0, %v6659_v10  ;;  %4727 = vset.pattern.permute.xlu1 %v5158_v0 }
 0x100   : > { %1093 = vperm.xlu1 %4727, %v5286_v2   ;;  %1070 = vperm.xlu0 %4729, %v5281_v1  }
 0x102   : > { %4035 = vmatmul.mubr.msk.f32.gmra.mrb[2].mxu0 %vm350_vm1, %v5373_v23 }
 0x103   : > { %4037 = vmatprep.mubr.msk.f32.mxu0 %vm5163_vm0, %v6659_v10 }
 0x104   : > { %4730 = vset.pattern.permute.xlu1 %v5159_v4  ;;  %4734 = vset.pattern.permute.xlu0 %v5159_v4 }
 0x105   : > { %1118 = vperm.xlu1 %4730, %v5286_v2   ;;  %1126 = vperm.xlu0 %4734, %v5281_v1  }
 0x106   : > { %4038 = vmatmul.mubr.msk.f32.gmra.mrb[4].mxu0 %vm350_vm1, %v5379_v25 }
 0x107   : > { %4040 = vmatprep.mubr.msk.f32.mxu0 %vm5163_vm0, %v6659_v10 }
 0x109   : > { %1122 = vperm.xlu1 %4730, %v5293_v3   ;;  %4735 = vset.pattern.permute.xlu0 %v5161_v7 }
 0x10a   : > { %4041 = vmatmul.mubr.msk.f32.gmra.mrb[6].mxu0 %vm350_vm1, %v5385_v30  ;;  %1156 = vperm.xlu0 %4735, %v5293_v3  }
 0x10b   : > { %4043 = vmatprep.mubr.msk.f32.mxu0 %vm5163_vm0, %v6659_v10 }
 0x10d   : > { %4731 = vset.pattern.permute.xlu1 %v5160_v6 }
 0x10e   : > { %4044 = vmatmul.mubr.msk.f32.gmra.mrb[8].mxu0 %vm350_vm1, %v5391_v34  ;;  %1075 = vperm.xlu1 %4731, %v5301_v5  }
 0x10f   : > { %4081 = vmatprep.mubr.msk.f32.mxu0 %vm5163_vm0, %v6659_v10  ;;  %1164 = vperm.xlu0 %4735, %v5301_v5  }
 0x112   : > { %4732 = vset.pattern.permute.xlu1 %v5161_v7 }
 0x113   : > { %4740 = vset.pattern.permute.xlu0 %v5159_v4  ;;  %1152 = vperm.xlu1 %4732, %v5286_v2  }
 0x114   : > { %1134 = vperm.xlu0 %4740, %v5318_v8  }
 0x117   : > { %4733 = vset.pattern.permute.xlu1 %v5158_v0 }
 0x118   : > { %1101 = vperm.xlu1 %4733, %v5281_v1  }
 0x11c   : > { %1105 = vperm.xlu1 %4733, %v5301_v5  }
 0x120   : > { %4736 = vset.pattern.permute.xlu1 %v5159_v4 }
 0x121   : > { %1130 = vperm.xlu1 %4736, %v5301_v5  }
 0x125   : > { %4737 = vset.pattern.permute.xlu1 %v5161_v7 }
 0x126   : > { %1160 = vperm.xlu1 %4737, %v5281_v1  }
 0x12a   : > { %4738 = vset.pattern.permute.xlu1 %v5160_v6 }
 0x12b   : > { %1080 = vperm.xlu1 %4738, %v5318_v8  }
 0x12f   : > { %4739 = vset.pattern.permute.xlu1 %v5158_v0 }
 0x130   : > { %1109 = vperm.xlu1 %4739, %v5318_v8  }
 0x134   : > { %4741 = vset.pattern.permute.xlu1 %v5161_v7 }
 0x135   : > { %1168 = vperm.xlu1 %4741, %v5318_v8  }
 0x14e   : > { %v469_v20 = vpop.permute.xlu0 %468  ;;  %v473_v27 = vpop.permute.xlu1 %472 }
 0x1d1   : > { %v432_v37 = vpop.f32.mrb[0].mxu0 }
 0x1d2   : > { %v4033_v38 = vpop.f32.mrb[1].mxu0  ;;  %v433_v39 = vadd.f32 %v432_v37, %v332_v36  ;;  %v477_v36 = vpop.permute.xlu1 %476 }
 0x1d4   : > { %4819 = vtanh.f32 %v433_v39  ;;  %v481_v39 = vpop.permute.xlu0 %480 }
 0x1d5   : > { %v437_v41 = vpop.f32.mrb[2].mxu0 }
 0x1d6   : > { %v438_v42 = vadd.f32 %v437_v41, %v336_v40  ;;  %v4036_v43 = vpop.f32.mrb[3].mxu0 }
 0x1d8   : > { %4821 = vtanh.f32 %v438_v42 }
 0x1d9   : > { %v442_v45 = vpop.f32.mrb[4].mxu0 }
 0x1da   : > { %v4039_v46 = vpop.f32.mrb[5].mxu0  ;;  %v443_v48 = vadd.f32 %v442_v45, %v340_v44  ;;  %v485_v44 = vpop.permute.xlu1 %484 }
 0x1dc   : > { %4823 = vtanh.f32 %v443_v48 }
 0x1dd   : > { %v447_v49 = vpop.f32.mrb[6].mxu0 }
 0x1de   : > { %v448_v50 = vadd.f32 %v447_v49, %v344_v47  ;;  %v4042_v51 = vpop.f32.mrb[7].mxu0  ;;  %v4820_v52 = vpop.eup %4819 }
 0x1e0   : > { %4825 = vtanh.f32 %v448_v50 }
 0x1e1   : > { %v452_v54 = vpop.f32.mrb[8].mxu0 }
 0x1e2   : > { %v4822_v55 = vpop.eup %4821  ;;  %v453_v56 = vadd.f32 %v452_v54, %v348_v53  ;;  %v4045_v57 = vpop.f32.mrb[9].mxu0  ;;  %v598_v53 = vld [vmem:[#allocation2 + $0x50] sm:$0xff] }
 0x1e3   : > { %v4528_v58 = vpack.c.bf16 %v4822_v55, %v4820_v52  ;;  %v599_v55 = vld [vmem:[#allocation2 + $0x58] sm:$0xff]  ;;  %v601_v57 = vld [vmem:[#allocation2 + $0x68] sm:$0xff] }
 0x1e4   : > { %4827 = vtanh.f32 %v453_v56  ;;  %v600_v56 = vld [vmem:[#allocation2 + $0x60] sm:$0xff] }
 0x1e5   : > { %4529 = vmatpush3.bf16.msra.mxu1 %v4528_v58  ;;  %v602_v58 = vld [vmem:[#allocation2 + $0x70] sm:$0xff] }
 0x1e6   : > { %4530 = vmatprep.subr.bf16.mxu1 %v6661_v9  ;;  %v4824_v59 = vpop.eup %4823 }
 0x1ea   : > { %v4826_v60 = vpop.eup %4825 }
 0x1eb   : > { %v4531_v61 = vpack.c.bf16 %v4826_v60, %v4824_v59  ;;  %v5483_v59 = vpop.permute.xlu1 %608  ;;  %v5168_v60 = vmov 7  }
 0x1ec   : > { %4742 = vset.pattern.permute.xlu1 %v5168_v60  ;;  %4743 = vset.pattern.permute.xlu0 %v5168_v60 }
 0x1ed   : > { %4532 = vmatpush3.bf16.msra.mxu1 %v4531_v61  ;;  %740 = vperm.xlu1 %4742, %v5286_v2  }
 0x1ee   : > { %4054 = vmatprep.subr.mxu1 %v6659_v10  ;;  %v4828_v63 = vpop.eup %4827  ;;  %744 = vperm.xlu0 %4743, %v5293_v3  }
 0x1ef   : > { %v5489_v61 = vpop.permute.xlu1 %612 }
 0x1f1   : > { %4055 = vmatpush3.msra.mxu1 %v4828_v63  ;;  %748 = vperm.xlu1 %4742, %v5281_v1  }
 0x1f2   : > { %4057 = vmatmul.mubr.msk.f32.vlgmr.msra.gmra.mrb[0].mxu1 %vm350_vm1, %v462_v62  ;;  %4539 = vmatprep.subr.bf16.mxu1 %v6661_v9 }
 0x1f3   : > { %4059 = vmatprep.mubr.msk.f32.mxu1 %vm5163_vm0, %v6659_v10  ;;  %756 = vperm.xlu0 %4743, %v5318_v8   ;;  %v5495_v62 = vpop.permute.xlu1 %620 }
 0x1f5   : > { %752 = vperm.xlu1 %4742, %v5301_v5  }
 0x1f6   : > { %4060 = vmatmul.mubr.msk.f32.gmra.mrb[2].mxu1 %vm350_vm1, %v463_v12 }
 0x1f7   : > { %4062 = vmatprep.mubr.msk.f32.mxu1 %vm5163_vm0, %v6659_v10  ;;  %4745 = vset.pattern.permute.xlu0 %v5165_v11  ;;  %v1066_v63 = vpop.permute.xlu1 %1065 }
 0x1f8   : > { %1200 = vperm.xlu0 %4745, %v5293_v3  }
 0x1f9   : > { %4744 = vset.pattern.permute.xlu1 %v5165_v11 }
 0x1fa   : > { %4063 = vmatmul.mubr.msk.f32.gmra.mrb[4].mxu1 %vm350_vm1, %v464_v15  ;;  %1196 = vperm.xlu1 %4744, %v5286_v2  }
 0x1fb   : > { %4065 = vmatprep.mubr.msk.f32.mxu1 %vm5163_vm0, %v6659_v10  ;;  %v5504_v12 = vpop.permute.xlu1 %1093 }
 0x1fc   : > { %1212 = vperm.xlu0 %4745, %v5318_v8  }
 0x1fe   : > { %4066 = vmatmul.mubr.msk.f32.gmra.mrb[6].mxu1 %vm350_vm1, %v465_v16  ;;  %1204 = vperm.xlu1 %4744, %v5281_v1  }
 0x1ff   : > { %4068 = vmatprep.mubr.msk.f32.mxu1 %vm5163_vm0, %v6659_v10  ;;  %v5511_v15 = vpop.permute.xlu1 %1118 }
 0x200   : > { %4747 = vset.pattern.permute.xlu0 %v5166_v35 }
 0x201   : > { %1335 = vperm.xlu0 %4747, %v5293_v3  }
 0x202   : > { %4069 = vmatmul.mubr.msk.f32.gmra.mrb[8].mxu1 %vm350_vm1, %v466_v13  ;;  %1208 = vperm.xlu1 %4744, %v5301_v5   ;;  %v605_v13 = vpop.permute.xlu0 %604 }
 0x203   : > { %4106 = vmatprep.mubr.msk.f32.mxu1 %vm5163_vm0, %v6659_v10  ;;  %v1123_v16 = vpop.permute.xlu1 %1122 }
 0x205   : > { %1347 = vperm.xlu0 %4747, %v5318_v8  }
 0x206   : > { %4746 = vset.pattern.permute.xlu1 %v5166_v35 }
 0x207   : > { %1331 = vperm.xlu1 %4746, %v5286_v2  }
 0x209   : > { %4749 = vset.pattern.permute.xlu0 %v5167_v17 }
 0x20a   : > { %1470 = vperm.xlu0 %4749, %v5293_v3  }
 0x20b   : > { %1339 = vperm.xlu1 %4746, %v5281_v1  }
 0x20e   : > { %1482 = vperm.xlu0 %4749, %v5318_v8  }
 0x20f   : > { %1343 = vperm.xlu1 %4746, %v5301_v5  }
 0x212   : > { %4755 = vset.pattern.permute.xlu0 %v5158_v0 }
 0x213   : > { %1957 = vperm.xlu0 %4755, %v5281_v1   ;;  %4748 = vset.pattern.permute.xlu1 %v5167_v17 }
 0x214   : > { %1466 = vperm.xlu1 %4748, %v5286_v2  }
 0x217   : > { %4756 = vset.pattern.permute.xlu0 %v5159_v4 }
 0x218   : > { %1974 = vperm.xlu0 %4756, %v5286_v2   ;;  %1474 = vperm.xlu1 %4748, %v5281_v1  }
 0x21c   : > { %1986 = vperm.xlu0 %4756, %v5301_v5   ;;  %1478 = vperm.xlu1 %4748, %v5301_v5  }
 0x220   : > { %4759 = vset.pattern.permute.xlu0 %v5160_v6  ;;  %4750 = vset.pattern.permute.xlu1 %v5160_v6 }
 0x221   : > { %1921 = vperm.xlu0 %4759, %v5293_v3   ;;  %1916 = vperm.xlu1 %4750, %v5286_v2  }
 0x225   : > { %1931 = vperm.xlu0 %4759, %v5301_v5   ;;  %4751 = vset.pattern.permute.xlu1 %v5158_v0 }
 0x226   : > { %1949 = vperm.xlu1 %4751, %v5286_v2  }
 0x229   : > { %1936 = vperm.xlu0 %4759, %v5318_v8  }
 0x22a   : > { %1953 = vperm.xlu1 %4751, %v5293_v3  }
 0x22d   : > { %4763 = vset.pattern.permute.xlu0 %v5161_v7 }
 0x22e   : > { %2024 = vperm.xlu0 %4763, %v5318_v8   ;;  %4752 = vset.pattern.permute.xlu1 %v5159_v4 }
 0x22f   : > { %1978 = vperm.xlu1 %4752, %v5293_v3  }
 0x232   : > { %4765 = vset.pattern.permute.xlu0 %v5168_v60 }
 0x233   : > { %1609 = vperm.xlu0 %4765, %v5281_v1   ;;  %4753 = vset.pattern.permute.xlu1 %v5160_v6 }
 0x234   : > { %1926 = vperm.xlu1 %4753, %v5281_v1  }
 0x237   : > { %4766 = vset.pattern.permute.xlu0 %v5165_v11 }
 0x238   : > { %2052 = vperm.xlu0 %4766, %v5286_v2   ;;  %4754 = vset.pattern.permute.xlu1 %v5161_v7 }
 0x239   : > { %2008 = vperm.xlu1 %4754, %v5286_v2  }
 0x23c   : > { %2064 = vperm.xlu0 %4766, %v5301_v5  }
 0x23d   : > { %2012 = vperm.xlu1 %4754, %v5293_v3  }
 0x240   : > { %4768 = vset.pattern.permute.xlu0 %v5166_v35 }
 0x241   : > { %2187 = vperm.xlu0 %4768, %v5286_v2   ;;  %4757 = vset.pattern.permute.xlu1 %v5158_v0 }
 0x242   : > { %1961 = vperm.xlu1 %4757, %v5301_v5  }
 0x245   : > { %2199 = vperm.xlu0 %4768, %v5301_v5  }
 0x246   : > { %4758 = vset.pattern.permute.xlu1 %v5159_v4 }
 0x247   : > { %1982 = vperm.xlu1 %4758, %v5281_v1  }
 0x249   : > { %4770 = vset.pattern.permute.xlu0 %v5167_v17 }
 0x24a   : > { %2322 = vperm.xlu0 %4770, %v5286_v2   ;;  %v735_v2 = vld [vmem:[#allocation2 + $0x80] sm:$0xff] }
 0x24b   : > { %4760 = vset.pattern.permute.xlu1 %v5161_v7 }
 0x24c   : > { %2016 = vperm.xlu1 %4760, %v5281_v1  }
 0x24e   : > { %2334 = vperm.xlu0 %4770, %v5301_v5  }
 0x250   : > { %2020 = vperm.xlu1 %4760, %v5301_v5   ;;  %v5606_v5 = vld [vmem:[%s6652_s1] sm:$0xff] }
 0x252   : > { %4774 = vset.pattern.permute.xlu0 %v5158_v0 }
 0x253   : > { %2809 = vperm.xlu0 %4774, %v5293_v3   ;;  %v737_v3 = vld [vmem:[#allocation2 + $0x90] sm:$0xff] }
 0x254   : > { %4761 = vset.pattern.permute.xlu1 %v5158_v0 }
 0x255   : > { %1965 = vperm.xlu1 %4761, %v5318_v8  }
 0x257   : > { %4775 = vset.pattern.permute.xlu0 %v5160_v6 }
 0x258   : > { %2772 = vperm.xlu0 %4775, %v5606_v5  }
 0x259   : > { %4762 = vset.pattern.permute.xlu1 %v5159_v4 }
 0x25a   : > { %1990 = vperm.xlu1 %4762, %v5318_v8  }
 0x25e   : > { %4764 = vset.pattern.permute.xlu1 %v5168_v60 }
 0x2c5   : > { %v568_v21 = vpop.f32.mrb[0].mxu1 }
 0x2c6   : > { %v4058_v22 = vpop.f32.mrb[1].mxu1  ;;  %v569_v26 = vadd.f32 %v568_v21, %v469_v20  ;;  %v1076_v20 = vpop.permute.xlu1 %1075 }
 0x2c7   : > { %v5522_v21 = vpop.permute.xlu0 %616 }
 0x2c8   : > { %4829 = vtanh.f32 %v569_v26 }
 0x2c9   : > { %v573_v28 = vpop.f32.mrb[2].mxu1 }
 0x2ca   : > { %v574_v29 = vadd.f32 %v573_v28, %v473_v27  ;;  %v4061_v31 = vpop.f32.mrb[3].mxu1  ;;  %v5526_v22 = vpop.permute.xlu1 %1152 }
 0x2cb   : > { %v1098_v26 = vpop.permute.xlu0 %1097 }
 0x2cc   : > { %4831 = vtanh.f32 %v574_v29 }
 0x2cd   : > { %v578_v33 = vpop.f32.mrb[4].mxu1 }
 0x2ce   : > { %v4064_v37 = vpop.f32.mrb[5].mxu1  ;;  %v579_v38 = vadd.f32 %v578_v33, %v477_v36  ;;  %v1102_v27 = vpop.permute.xlu1 %1101  ;;  %v1052_v33 = vld [vmem:[%s5352_s9 + $0x4] sm:$0x7] }
 0x2cf   : > { %v1061_v28 = vpop.permute.xlu0 %1060  ;;  %v1086_v37 = vrot.slane %v1052_v33, %v5354_v18 }
 0x2d0   : > { %4833 = vtanh.f32 %v579_v38 }
 0x2d1   : > { %v583_v40 = vpop.f32.mrb[6].mxu1 }
 0x2d2   : > { %v584_v41 = vadd.f32 %v583_v40, %v481_v39  ;;  %v4067_v42 = vpop.f32.mrb[7].mxu1  ;;  %v4830_v43 = vpop.eup %4829 }
 0x2d3   : > { %v1106_v29 = vpop.permute.xlu1 %1105  ;;  %v1071_v31 = vpop.permute.xlu0 %1070  ;;  %v1140_v42 = vrot.slane %v1052_v33, %v5356_v19 }
 0x2d4   : > { %4835 = vtanh.f32 %v584_v41  ;;  %v1088_v41 = vmul.f32 %v1086_v37, %v1066_v63 }
 0x2d5   : > { %v588_v45 = vpop.f32.mrb[8].mxu1 }
 0x2d6   : > { %v4832_v46 = vpop.eup %4831  ;;  %v589_v47 = vadd.f32 %v588_v45, %v485_v44  ;;  %v4070_v48 = vpop.f32.mrb[9].mxu1  ;;  %v1087_v45 = vmul.f32 %v1086_v37, %v1061_v28 }
 0x2d7   : > { %v4534_v49 = vpack.c.bf16 %v4832_v46, %v4830_v43  ;;  %v1131_v36 = vpop.permute.xlu1 %1130  ;;  %v1127_v38 = vpop.permute.xlu0 %1126 }
 0x2d8   : > { %4837 = vtanh.f32 %v589_v47  ;;  %v5549_v47 = vrot.slane %v1052_v33, %v5360_v24 }
 0x2d9   : > { %4535 = vmatpush3.bf16.msra.mxu0 %v4534_v49 }
 0x2da   : > { %4536 = vmatprep.subr.bf16.mxu0 %v6661_v9  ;;  %v4834_v50 = vpop.eup %4833 }
 0x2db   : > { %v1161_v44 = vpop.permute.xlu1 %1160 }
 0x2de   : > { %v4836_v51 = vpop.eup %4835 }
 0x2df   : > { %v4537_v52 = vpack.c.bf16 %v4836_v51, %v4834_v50  ;;  %v1113_v50 = vadd.f32 %v1098_v26, %v1088_v41  ;;  %v1142_v51 = vmul.f32 %v1140_v42, %v1123_v16 }
 0x2e1   : > { %4538 = vmatpush3.bf16.msra.mxu0 %v4537_v52  ;;  %v1090_v52 = vmul.f32 %v1086_v37, %v1076_v20  ;;  %v1147_v16 = vadd.f32 %v1142_v51, %v1113_v50  ;;  %v1144_v20 = vmul.f32 %v1140_v42, %v1131_v36 }
 0x2e2   : > { %4079 = vmatprep.subr.mxu0 %v6659_v10  ;;  %v4838_v54 = vpop.eup %4837 }
 0x2e5   : > { %4080 = vmatpush3.msra.mxu0 %v4838_v54  ;;  %v1081_v54 = vpop.permute.xlu1 %1080 }
 0x2e6   : > { %4082 = vmatmul.mubr.msk.f32.vlgmr.msra.gmra.mrb[10].mxu0 %vm350_vm1, %v598_v53  ;;  %4545 = vmatprep.subr.bf16.mxu0 %v6661_v9  ;;  %v1157_v53 = vpop.permute.xlu0 %1156  ;;  %v1091_v41 = vmul.f32 %v1086_v37, %v1081_v54 }
 0x2e7   : > { %4084 = vmatprep.mubr.msk.f32.mxu0 %vm5163_vm0, %v6659_v10 }
 0x2ea   : > { %4085 = vmatmul.mubr.msk.f32.gmra.mrb[12].mxu0 %vm350_vm1, %v599_v55  ;;  %v1112_v55 = vadd.f32 %v5504_v12, %v1087_v45  ;;  %v1165_v26 = vpop.permute.xlu0 %1164 }
 0x2eb   : > { %4087 = vmatprep.mubr.msk.f32.mxu0 %vm5163_vm0, %v6659_v10  ;;  %v1178_v45 = vmul.f32 %v5549_v47, %v1165_v26 }
 0x2ee   : > { %4088 = vmatmul.mubr.msk.f32.gmra.mrb[14].mxu0 %vm350_vm1, %v600_v56  ;;  %v1141_v56 = vmul.f32 %v1140_v42, %v5511_v15  ;;  %v1143_v15 = vmul.f32 %v1140_v42, %v1127_v38  ;;  %v1135_v38 = vpop.permute.xlu0 %1134 }
 0x2ef   : > { %4090 = vmatprep.mubr.msk.f32.mxu0 %vm5163_vm0, %v6659_v10 }
 0x2f0   : > { %v1146_v12 = vadd.f32 %v1141_v56, %v1112_v55 }
 0x2f2   : > { %4091 = vmatmul.mubr.msk.f32.gmra.mrb[16].mxu0 %vm350_vm1, %v601_v57  ;;  %v1089_v57 = vmul.f32 %v1086_v37, %v1071_v31  ;;  %v1175_v31 = vmul.f32 %v5549_v47, %v5526_v22  ;;  %v1177_v22 = vmul.f32 %v5549_v47, %v1161_v44 }
 0x2f3   : > { %4093 = vmatprep.mubr.msk.f32.mxu0 %vm5163_vm0, %v6659_v10 }
 0x2f4   : > { %v1114_v33 = vadd.f32 %v1102_v27, %v1089_v57 }
 0x2f6   : > { %4094 = vmatmul.mubr.msk.f32.gmra.mrb[18].mxu0 %vm350_vm1, %v602_v58 }
 0x2f7   : > { %4131 = vmatprep.mubr.msk.f32.mxu0 %vm5163_vm0, %v6659_v10 }
 0x3b9   : > { %v704_v39 = vpop.f32.mrb[10].mxu0 }
 0x3ba   : > { %v4083_v40 = vpop.f32.mrb[11].mxu0  ;;  %v705_v43 = vadd.f32 %v704_v39, %v605_v13  ;;  %v1115_v13 = vadd.f32 %v1106_v29, %v1090_v52  ;;  %v1145_v52 = vmul.f32 %v1140_v42, %v1135_v38 }
 0x3bb   : > { %v1110_v40 = vpop.permute.xlu1 %1109 }
 0x3bc   : > { %4839 = vtanh.f32 %v705_v43  ;;  %v1116_v51 = vadd.f32 %v1110_v40, %v1091_v41 }
 0x3bd   : > { %v709_v46 = vpop.f32.mrb[12].mxu0 }
 0x3be   : > { %v710_v48 = vadd.f32 %v709_v46, %v5483_v59  ;;  %v4086_v49 = vpop.f32.mrb[13].mxu0  ;;  %v1176_v59 = vmul.f32 %v5549_v47, %v1157_v53  ;;  %v1180_v46 = vadd.f32 %v1175_v31, %v1146_v12  ;;  %v736_v12 = vld [vmem:[#allocation2 + $0x88] sm:$0xff]  ;;  %v738_v31 = vld [vmem:[#allocation2 + $0x98] sm:$0xff] }
 0x3bf   : > { %v1169_v55 = vpop.permute.xlu1 %1168 }
 0x3c0   : > { %4841 = vtanh.f32 %v710_v48  ;;  %v1181_v43 = vadd.f32 %v1176_v59, %v1147_v16  ;;  %v1148_v48 = vadd.f32 %v1143_v15, %v1114_v33  ;;  %v1179_v56 = vmul.f32 %v5549_v47, %v1169_v55  ;;  %v734_v47 = vld [vmem:[#allocation2 + $0x78] sm:$0xff]  ;;  %v5622_v33 = vld [vmem:[%s6652_s1] sm:$0xff] }
 0x3c1   : > { %v714_v58 = vpop.f32.mrb[14].mxu0  ;;  %1601 = vperm.xlu1 %4764, %v5622_v33  }
 0x3c2   : > { %v4089_v63 = vpop.f32.mrb[15].mxu0  ;;  %v715_v28 = vadd.f32 %v714_v58, %v5489_v61  ;;  %v1149_v61 = vadd.f32 %v1144_v20, %v1115_v13  ;;  %v1182_v44 = vadd.f32 %v1177_v22, %v1148_v48 }
 0x3c4   : > { %4843 = vtanh.f32 %v715_v28  ;;  %v1183_v53 = vadd.f32 %v1178_v45, %v1149_v61 }
 0x3c5   : > { %v719_v39 = vpop.f32.mrb[16].mxu0 }
 0x3c6   : > { %v720_v29 = vadd.f32 %v719_v39, %v5522_v21  ;;  %v4092_v36 = vpop.f32.mrb[17].mxu0  ;;  %v4840_v27 = vpop.eup %4839  ;;  %v5632_v39 = vld [vmem:[%s6652_s1 + $0x8] sm:$0xff] }
 0x3c7   : > { %1605 = vperm.xlu1 %4764, %v5632_v39  }
 0x3c8   : > { %4845 = vtanh.f32 %v720_v29 }
 0x3c9   : > { %v724_v49 = vpop.f32.mrb[18].mxu0  ;;  %4847 = vtanh.f32 %v1181_v43  ;;  %v5704_v43 = vld [vmem:[%s6652_s1 + $0x18] sm:$0xff] }
 0x3ca   : > { %v4842_v21 = vpop.eup %4841  ;;  %v725_v37 = vadd.f32 %v724_v49, %v5495_v62  ;;  %v4095_v50 = vpop.f32.mrb[19].mxu0  ;;  %4849 = vtanh.f32 %v1180_v46  ;;  %v1150_v62 = vadd.f32 %v1145_v52, %v1116_v51  ;;  %v5719_v46 = vld [vmem:[%s6652_s1 + $0x10] sm:$0xff] }
 0x3cb   : > { %v4540_v54 = vpack.c.bf16 %v4842_v21, %v4840_v27  ;;  %2782 = vperm.xlu0 %4775, %v5719_v46  }
 0x3cc   : > { %4851 = vtanh.f32 %v725_v37  ;;  %v1184_v58 = vadd.f32 %v1179_v56, %v1150_v62  ;;  %v5747_v37 = vld [vmem:[%s6652_s1 + $0x20] sm:$0xff] }
 0x3cd   : > { %4541 = vmatpush3.bf16.msra.mxu1 %v4540_v54  ;;  %4853 = vtanh.f32 %v1183_v53 }
 0x3ce   : > { %4542 = vmatprep.subr.bf16.mxu1 %v6661_v9  ;;  %4855 = vtanh.f32 %v1182_v44  ;;  %v4844_v42 = vpop.eup %4843 }
 0x3cf   : > { %4857 = vtanh.f32 %v1184_v58  ;;  %4780 = vset.pattern.permute.xlu0 %v5159_v4 }
 0x3d0   : > { %2838 = vperm.xlu0 %4780, %v5719_v46  }
 0x3d2   : > { %v4846_v57 = vpop.eup %4845 }
 0x3d3   : > { %v4543_v59 = vpack.c.bf16 %v4846_v57, %v4844_v42  ;;  %v4848_v63 = vpop.eup %4847 }
 0x3d4   : > { %v4850_v16 = vpop.eup %4849  ;;  %4781 = vset.pattern.permute.xlu0 %v5161_v7 }
 0x3d5   : > { %4544 = vmatpush3.bf16.msra.mxu1 %v4543_v59  ;;  %v4552_v26 = vpack.c.bf16 %v4848_v63, %v4850_v16  ;;  %2868 = vperm.xlu0 %4781, %v5632_v39  }
 0x3d6   : > { %4104 = vmatprep.subr.mxu1 %v6659_v10  ;;  %v4852_v13 = vpop.eup %4851 }
 0x3d7   : > { %v4854_v20 = vpop.eup %4853 }
 0x3d8   : > { %v4856_v28 = vpop.eup %4855 }
 0x3d9   : > { %4105 = vmatpush3.msra.mxu1 %v4852_v13  ;;  %v4555_v1 = vpack.c.bf16 %v4854_v20, %v4856_v28  ;;  %v4858_v15 = vpop.eup %4857  ;;  %2876 = vperm.xlu0 %4781, %v5704_v43   ;;  %v6663_v13 = vmov 8  }
 0x3da   : > { %4107 = vmatmul.mubr.msk.f32.vlgmr.msra.gmra.mrb[10].mxu1 %vm350_vm1, %v734_v47  ;;  %4551 = vmatprep.subr.bf16.mxu1 %v6661_v9 }
 0x3db   : > { %4553 = vmatpush3.bf16.msra.mxu1 %v4552_v26  ;;  %4109 = vmatprep.mubr.msk.f32.mxu1 %vm5163_vm0, %v6659_v10 }
 0x3dc   : > { %4554 = vmatprep.subr.bf16.mxu1 %v6661_v9 }
 0x3dd   : > { %4786 = vset.pattern.permute.xlu0 %v5159_v4 }
 0x3de   : > { %4110 = vmatmul.mubr.msk.f32.gmra.mrb[12].mxu1 %vm350_vm1, %v735_v2  ;;  %2846 = vperm.xlu0 %4786, %v5747_v37  }
 0x3df   : > { %4556 = vmatpush3.bf16.msra.mxu1 %v4555_v1  ;;  %4112 = vmatprep.mubr.msk.f32.mxu1 %vm5163_vm0, %v6659_v10  ;;  %v1908_v1 = vld [vmem:[%s5352_s9 + $0x8] sm:$0x7] }
 0x3e0   : > { %4154 = vmatprep.subr.mxu1 %v6659_v10 }
 0x3e2   : > { %4113 = vmatmul.mubr.msk.f32.gmra.mrb[14].mxu1 %vm350_vm1, %v736_v12  ;;  %4789 = vset.pattern.permute.xlu0 %v5168_v60 }
 0x3e3   : > { %4115 = vmatprep.mubr.msk.f32.mxu1 %vm5163_vm0, %v6659_v10  ;;  %4155 = vmatpush3.msra.mxu1 %v4858_v15 }
 0x3e4   : > { %4563 = vmatprep.subr.bf16.mxu1 %v6661_v9  ;;  %2461 = vperm.xlu0 %4789, %v5632_v39  }
 0x3e6   : > { %4116 = vmatmul.mubr.msk.f32.gmra.mrb[16].mxu1 %vm350_vm1, %v737_v3  ;;  %v5845_v3 = vrot.slane %v1908_v1, %v5356_v19 }
 0x3e7   : > { %4118 = vmatprep.mubr.msk.f32.mxu1 %vm5163_vm0, %v6659_v10 }
 0x3ea   : > { %4119 = vmatmul.mubr.msk.f32.gmra.mrb[18].mxu1 %vm350_vm1, %v738_v31 }
 0x3eb   : > { %4156 = vmatprep.mubr.msk.f32.mxu1 %vm5163_vm0, %v6659_v10 }
 0x3ee   : > { %4157 = vmatmul.mubr.msk.f32.vlgmr.msra.gmra.mrb[20].mxu1 %vm350_vm1, %v5366_v32  ;;  %v5642_v32 = vld [vmem:[%s6652_s1 + $0x18] sm:$0xff] }
 0x3ef   : > { %4159 = vmatprep.mubr.msk.f32.mxu1 %vm5163_vm0, %v6659_v10  ;;  %1613 = vperm.xlu1 %4764, %v5642_v32  }
 0x3f2   : > { %4160 = vmatmul.mubr.msk.f32.gmra.mrb[22].mxu1 %vm350_vm1, %v5373_v23  ;;  %v5663_v23 = vld [vmem:[%s6652_s1 + $0x10] sm:$0xff] }
 0x3f3   : > { %4162 = vmatprep.mubr.msk.f32.mxu1 %vm5163_vm0, %v6659_v10  ;;  %1617 = vperm.xlu1 %4764, %v5318_v8  }
 0x3f6   : > { %4163 = vmatmul.mubr.msk.f32.gmra.mrb[24].mxu1 %vm350_vm1, %v5379_v25  ;;  %v5669_v25 = vpop.permute.xlu1 %740 }
 0x3f7   : > { %4165 = vmatprep.mubr.msk.f32.mxu1 %vm5163_vm0, %v6659_v10  ;;  %4767 = vset.pattern.permute.xlu1 %v5165_v11 }
 0x3f8   : > { %2056 = vperm.xlu1 %4767, %v5632_v39  }
 0x3fa   : > { %4166 = vmatmul.mubr.msk.f32.gmra.mrb[26].mxu1 %vm350_vm1, %v5385_v30  ;;  %v5675_v30 = vld [vmem:[%s6652_s1 + $0x20] sm:$0xff] }
 0x3fb   : > { %4168 = vmatprep.mubr.msk.f32.mxu1 %vm5163_vm0, %v6659_v10  ;;  %2473 = vperm.xlu0 %4789, %v5675_v30  }
 0x3fc   : > { %2060 = vperm.xlu1 %4767, %v5663_v23  }
 0x3fe   : > { %4169 = vmatmul.mubr.msk.f32.gmra.mrb[28].mxu1 %vm350_vm1, %v5391_v34  ;;  %v5678_v34 = vpop.permute.xlu1 %748 }
 0x3ff   : > { %4206 = vmatprep.mubr.msk.f32.mxu1 %vm5163_vm0, %v6659_v10  ;;  %4791 = vset.pattern.permute.xlu0 %v5165_v11 }
 0x400   : > { %2068 = vperm.xlu1 %4767, %v5318_v8   ;;  %2912 = vperm.xlu0 %4791, %v5632_v39  }
 0x402   : > { %v5682_v8 = vpop.permute.xlu1 %752 }
 0x404   : > { %4769 = vset.pattern.permute.xlu1 %v5166_v35  ;;  %2924 = vperm.xlu0 %4791, %v5747_v37  }
 0x405   : > { %2191 = vperm.xlu1 %4769, %v5632_v39  }
 0x406   : > { %v5686_v40 = vpop.permute.xlu1 %1196 }
 0x408   : > { %4793 = vset.pattern.permute.xlu0 %v5166_v35 }
 0x409   : > { %2195 = vperm.xlu1 %4769, %v5663_v23   ;;  %3047 = vperm.xlu0 %4793, %v5632_v39  }
 0x40a   : > { %v5690_v29 = vpop.permute.xlu1 %1204 }
 0x40d   : > { %2203 = vperm.xlu1 %4769, %v5675_v30   ;;  %3059 = vperm.xlu0 %4793, %v5747_v37  }
 0x40e   : > { %v5694_v36 = vpop.permute.xlu1 %1208 }
 0x411   : > { %4771 = vset.pattern.permute.xlu1 %v5167_v17  ;;  %4795 = vset.pattern.permute.xlu0 %v5167_v17 }
 0x412   : > { %2326 = vperm.xlu1 %4771, %v5632_v39   ;;  %v5698_v41 = vpop.permute.xlu1 %1331  ;;  %3182 = vperm.xlu0 %4795, %v5632_v39  }
 0x416   : > { %2330 = vperm.xlu1 %4771, %v5663_v23   ;;  %v5706_v61 = vpop.permute.xlu1 %1339  ;;  %3194 = vperm.xlu0 %4795, %v5747_v37  }
 0x41a   : > { %2338 = vperm.xlu1 %4771, %v5675_v30   ;;  %v5710_v45 = vpop.permute.xlu1 %1343  ;;  %4797 = vset.pattern.permute.xlu0 %v5168_v60 }
 0x41b   : > { %3317 = vperm.xlu0 %4797, %v5632_v39  }
 0x41e   : > { %4772 = vset.pattern.permute.xlu1 %v5160_v6  ;;  %v5714_v38 = vpop.permute.xlu1 %1466 }
 0x41f   : > { %2777 = vperm.xlu1 %4772, %v5632_v39   ;;  %3329 = vperm.xlu0 %4797, %v5747_v37  }
 0x422   : > { %v5724_v48 = vpop.permute.xlu1 %1474 }
 0x423   : > { %4773 = vset.pattern.permute.xlu1 %v5158_v0  ;;  %6676 = vst [vmem:[#allocation8_spill] sm:$0xff] %v5724_v48  ;;  %4799 = vset.pattern.permute.xlu0 %v6663_v13 }
 0x424   : > { %2805 = vperm.xlu1 %4773, %v5606_v5   ;;  %880 = vperm.xlu0 %4799, %v5632_v39  }
 0x426   : > { %v5728_v22 = vpop.permute.xlu1 %1478 }
 0x427   : > { %6677 = vst [vmem:[#allocation9_spill] sm:$0xff] %v5728_v22 }
 0x428   : > { %4776 = vset.pattern.permute.xlu1 %v5159_v4  ;;  %892 = vperm.xlu0 %4799, %v5675_v30  }
 0x429   : > { %2830 = vperm.xlu1 %4776, %v5606_v5  }
 0x42a   : > { %v5732_v27 = vpop.permute.xlu1 %1916 }
 0x42c   : > { %1736 = vperm.xlu0 %4799, %v5622_v33  }
 0x42d   : > { %2834 = vperm.xlu1 %4776, %v5632_v39  }
 0x42e   : > { %v5737_v49 = vpop.permute.xlu1 %1949 }
 0x430   : > { %1748 = vperm.xlu0 %4799, %v5642_v32  }
 0x431   : > { %4777 = vset.pattern.permute.xlu1 %v5160_v6 }
 0x432   : > { %2787 = vperm.xlu1 %4777, %v5704_v43   ;;  %v5742_v21 = vpop.permute.xlu1 %1953 }
 0x434   : > { %2592 = vperm.xlu0 %4799, %v5622_v33  }
 0x436   : > { %4778 = vset.pattern.permute.xlu1 %v5161_v7  ;;  %v5753_v50 = vpop.permute.xlu1 %1978 }
 0x437   : > { %2864 = vperm.xlu1 %4778, %v5606_v5  }
 0x438   : > { %3452 = vperm.xlu0 %4799, %v5632_v39  }
 0x43a   : > { %v5759_v51 = vpop.permute.xlu1 %1926 }
 0x43b   : > { %4779 = vset.pattern.permute.xlu1 %v5158_v0 }
 0x43c   : > { %2813 = vperm.xlu1 %4779, %v5719_v46   ;;  %3456 = vperm.xlu0 %4799, %v5719_v46  }
 0x440   : > { %2817 = vperm.xlu1 %4779, %v5704_v43   ;;  %3460 = vperm.xlu0 %4799, %v5704_v43  }
 0x444   : > { %4782 = vset.pattern.permute.xlu1 %v5159_v4  ;;  %v5763_v4 = vpop.permute.xlu1 %2008  ;;  %3464 = vperm.xlu0 %4799, %v5747_v37  }
 0x445   : > { %2842 = vperm.xlu1 %4782, %v5704_v43  }
 0x448   : > { %v5769_v52 = vpop.permute.xlu1 %2012 }
 0x449   : > { %4783 = vset.pattern.permute.xlu1 %v5161_v7 }
 0x44a   : > { %2872 = vperm.xlu1 %4783, %v5719_v46  }
 0x44c   : > { %v1962_v53 = vpop.permute.xlu1 %1961 }
 0x44e   : > { %4784 = vset.pattern.permute.xlu1 %v5160_v6  ;;  %v5766_v6 = vpop.permute.xlu0 %744 }
 0x44f   : > { %2792 = vperm.xlu1 %4784, %v5747_v37  }
 0x450   : > { %v5780_v54 = vpop.permute.xlu1 %1982 }
 0x453   : > { %4785 = vset.pattern.permute.xlu1 %v5158_v0  ;;  %v5774_v0 = vpop.permute.xlu0 %756 }
 0x454   : > { %2821 = vperm.xlu1 %4785, %v5747_v37   ;;  %v5785_v55 = vpop.permute.xlu1 %2016 }
 0x458   : > { %4787 = vset.pattern.permute.xlu1 %v5161_v7  ;;  %v5778_v7 = vpop.permute.xlu0 %1200  ;;  %v5792_v62 = vpop.permute.xlu1 %2020 }
 0x459   : > { %2880 = vperm.xlu1 %4787, %v5747_v37  }
 0x45c   : > { %v5788_v44 = vpop.permute.xlu0 %1212  ;;  %v1966_v42 = vpop.permute.xlu1 %1965 }
 0x45d   : > { %4788 = vset.pattern.permute.xlu1 %v5168_v60 }
 0x45e   : > { %2457 = vperm.xlu1 %4788, %v5622_v33  }
 0x460   : > { %v5796_v56 = vpop.permute.xlu0 %1335 }
 0x462   : > { %2465 = vperm.xlu1 %4788, %v5663_v23  }
 0x464   : > { %v5800_v57 = vpop.permute.xlu0 %1347 }
 0x466   : > { %2469 = vperm.xlu1 %4788, %v5642_v32  }
 0x468   : > { %v5804_v58 = vpop.permute.xlu0 %1470 }
 0x46a   : > { %4790 = vset.pattern.permute.xlu1 %v5165_v11  ;;  %v1991_v11 = vpop.permute.xlu1 %1990 }
 0x46b   : > { %2908 = vperm.xlu1 %4790, %v5606_v5  }
 0x46c   : > { %v5811_v63 = vpop.permute.xlu0 %1482 }
 0x46d   : > { %6679 = vst [vmem:[#allocation11_spill] sm:$0xff] %v5811_v63 }
 0x46e   : > { %v5809_v59 = vpop.permute.xlu1 %1601 }
 0x46f   : > { %2916 = vperm.xlu1 %4790, %v5719_v46   ;;  %6678 = vst [vmem:[#allocation10_spill] sm:$0xff] %v5809_v59 }
 0x470   : > { %v5817_v47 = vpop.permute.xlu0 %1957 }
 0x472   : > { %v5815_v16 = vpop.permute.xlu1 %1605 }
 0x473   : > { %2920 = vperm.xlu1 %4790, %v5704_v43   ;;  %6680 = vst [vmem:[#allocation12_spill] sm:$0xff] %v5815_v16 }
 0x474   : > { %v5824_v20 = vpop.permute.xlu0 %1974 }
 0x477   : > { %4792 = vset.pattern.permute.xlu1 %v5166_v35  ;;  %v5821_v35 = vpop.permute.xlu1 %1613 }
 0x478   : > { %3043 = vperm.xlu1 %4792, %v5606_v5   ;;  %6681 = vst [vmem:[#allocation13_spill] sm:$0xff] %v5821_v35  ;;  %v1987_v28 = vpop.permute.xlu0 %1986 }
 0x479   : > { %v2000_v14 = vmul.f32 %v5845_v3, %v1987_v28  ;;  %v5863_v28 = vrot.slane %v1908_v1, %v5360_v24 }
 0x47b   : > { %v5827_v26 = vpop.permute.xlu1 %1617 }
 0x47c   : > { %3051 = vperm.xlu1 %4792, %v5719_v46   ;;  %6682 = vst [vmem:[#allocation14_spill] sm:$0xff] %v5827_v26  ;;  %v5836_v12 = vpop.permute.xlu0 %1921 }
 0x47f   : > { %v5831_v2 = vpop.permute.xlu1 %2056 }
 0x480   : > { %3055 = vperm.xlu1 %4792, %v5704_v43   ;;  %6683 = vst [vmem:[#allocation15_spill] sm:$0xff] %v5831_v2  ;;  %v1932_v31 = vpop.permute.xlu0 %1931  ;;  %v2001_v2 = vmul.f32 %v5845_v3, %v1991_v11 }
 0x483   : > { %v5838_v15 = vpop.permute.xlu1 %2060 }
 0x484   : > { %4794 = vset.pattern.permute.xlu1 %v5167_v17  ;;  %6684 = vst [vmem:[#allocation16_spill] sm:$0xff] %v5838_v15  ;;  %v5842_v17 = vrot.slane %v1908_v1, %v5354_v18  ;;  %v1937_v15 = vpop.permute.xlu0 %1936 }
 0x485   : > { %3178 = vperm.xlu1 %4794, %v5606_v5  }
 0x486   : > { %v1946_v10 = vmul.f32 %v5842_v17, %v1932_v31  ;;  %v1947_v35 = vmul.f32 %v5842_v17, %v1937_v15 }
 0x487   : > { %v5850_v9 = vpop.permute.xlu1 %2068 }
 0x488   : > { %6685 = vst [vmem:[#allocation17_spill] sm:$0xff] %v5850_v9  ;;  %v1971_v13 = vadd.f32 %v1962_v53, %v1946_v10  ;;  %v1972_v31 = vadd.f32 %v1966_v42, %v1947_v35  ;;  %v2025_v10 = vpop.permute.xlu0 %2024  ;;  %v6691_v42 = vmov 8  }
 0x489   : > { %3186 = vperm.xlu1 %4794, %v5719_v46   ;;  %v2035_v53 = vmul.f32 %v5863_v28, %v2025_v10 }
 0x48a   : > { %v5856_v26 = vadd.f32 %v2000_v14, %v1971_v13 }
 0x48b   : > { %v5859_v16 = vpop.permute.xlu1 %2191 }
 0x48c   : > { %6686 = vst [vmem:[#allocation18_spill] sm:$0xff] %v5859_v16  ;;  %v5873_v11 = vpop.permute.xlu0 %1609 }
 0x48d   : > { %3190 = vperm.xlu1 %4794, %v5704_v43   ;;  %6689 = vst [vmem:[#allocation21_spill] sm:$0xff] %v5873_v11 }
 0x48f   : > { %v5867_v9 = vpop.permute.xlu1 %2195 }
 0x490   : > { %6687 = vst [vmem:[#allocation19_spill] sm:$0xff] %v5867_v9  ;;  %v5879_v35 = vpop.permute.xlu0 %2052 }
 0x491   : > { %4796 = vset.pattern.permute.xlu1 %v5168_v60  ;;  %v2006_v60 = vadd.f32 %v2001_v2, %v1972_v31  ;;  %6692 = vst [vmem:[#allocation23_spill] sm:$0xff] %v5879_v35  ;;  %v6665_v31 = vmov 9   ;;  %v2764_v35 = vld [vmem:[%s5352_s9 + $0xc] sm:$0x7]  ;;  %s177_s9 = sand.u32 1, %s5145_s13  }
 0x492   : > { %3313 = vperm.xlu1 %4796, %v5606_v5   ;;  %4805 = vset.pattern.permute.xlu0 %v6665_v31  ;;  %v5932_v22 = vrot.slane %v2764_v35, %v5360_v24  ;;  %s3712_s19 = sshll.u32 %s177_s9, 2  ;;  %s3621_s8 = scalar_lea.sflag [#allocation4], %s177_s9 }
 0x493   : > { %v5870_v14 = vadd.f32 %v2035_v53, %v2006_v60  ;;  %v5875_v13 = vpop.permute.xlu1 %2203  ;;  %1010 = vperm.xlu0 %4805, %v5632_v39   ;;  %s6115_s20 = scalar_lea.vmem [#allocation5], %s3712_s19 }
 0x494   : > { %6690 = vst [vmem:[#allocation22_spill] sm:$0xff] %v5875_v13  ;;  %v5885_v1 = vpop.permute.xlu0 %2064  ;;  %s3635_s4 = sshll.u32 %s6115_s20, 4  ;;  %s6606_s4 = int_to_ptr.vmem [resolvable:$true] %s3635_s4 }
 0x495   : > { %6688 = vst [vmem:[#allocation20_spill] sm:$0xff] %v5870_v14  ;;  %6694 = vst [vmem:[#allocation25_spill] sm:$0xff] %v5885_v1  ;;  %s5087_s16 = scalar_lea.vmem %s6606_s4, 64  ;;  %p5094_p2 = scmp.lt.s32.totalorder %s6606_s4, %s5092_s11 }
 0x496   : > { %3321 = vperm.xlu1 %4796, %v5719_v46   ;;  %p5088_p6 = scmp.ne.s32.totalorder %s6606_s4, %s5087_s16  ;;  %p5095_p3 = scmp.lt.s32.totalorder %s5093_s17, %s5087_s16 }
 0x497   : > { %v5882_v2 = vpop.permute.xlu1 %2326  ;;  %1022 = vperm.xlu0 %4805, %v5675_v30  }
 0x498   : > { %6693 = vst [vmem:[#allocation24_spill] sm:$0xff] %v5882_v2  ;;  %v5892_v10 = vpop.permute.xlu0 %2187  ;;  %p5089_p10 = pnand %p5088_p6, %p6790_p9  ;;  %p5096_p4 = por %p5095_p3, %p5094_p2 }
 0x499   : > { %6696 = vst [vmem:[#allocation27_spill] sm:$0xff] %v5892_v10 }
 0x49a   : > { %3325 = vperm.xlu1 %4796, %v5704_v43   ;;  %p5090_p12 = pneg %p5089_p10 }
 0x49b   : > { %v5888_v15 = vpop.permute.xlu1 %2330  ;;  %1866 = vperm.xlu0 %4805, %v5622_v33  }
 0x49c   : > { %6695 = vst [vmem:[#allocation26_spill] sm:$0xff] %v5888_v15  ;;  %v5898_v13 = vpop.permute.xlu0 %2199  ;;  %p5097_p7 = pnand %p5096_p4, %p5090_p12 }
 0x49d   : > { %6698 = vst [vmem:[#allocation29_spill] sm:$0xff] %v5898_v13 }
 0x49e   : > { %4798 = vset.pattern.permute.xlu1 %v6691_v42 }
 0x49f   : > { %876 = vperm.xlu1 %4798, %v5622_v33   ;;  %v5895_v60 = vpop.permute.xlu1 %2338  ;;  %2726 = vperm.xlu0 %4805, %v5632_v39  }
 0x4a0   : > { %6697 = vst [vmem:[#allocation28_spill] sm:$0xff] %v5895_v60  ;;  %v5905_v1 = vpop.permute.xlu0 %2322 }
 0x4a1   : > { %6699 = vst [vmem:[#allocation30_spill] sm:$0xff] %v5905_v1 }
 0x4a3   : > { %884 = vperm.xlu1 %4798, %v5663_v23   ;;  %v2778_v15 = vpop.permute.xlu1 %2777  ;;  %2730 = vperm.xlu0 %4805, %v5663_v23  }
 0x4a7   : > { %888 = vperm.xlu1 %4798, %v5642_v32   ;;  %1878 = vperm.xlu0 %4805, %v5642_v32  }
 0x4ab   : > { %4800 = vset.pattern.permute.xlu1 %v6665_v31  ;;  %v5909_v31 = vpop.permute.xlu0 %2334  ;;  %3590 = vperm.xlu0 %4805, %v5704_v43  }
 0x4ac   : > { %1006 = vperm.xlu1 %4800, %v5622_v33   ;;  %6700 = vst [vmem:[#allocation31_spill] sm:$0xff] %v5909_v31  ;;  %v6667_v31 = vmov 10  }
 0x4ad   : > { %v840_v53 = vpop.f32.mrb[10].mxu1 }
 0x4ae   : > { %v4108_v2 = vpop.f32.mrb[11].mxu1  ;;  %v841_v9 = vadd.f32 %v840_v53, %v5669_v25 }
 0x4af   : > { %v2806_v2 = vpop.permute.xlu1 %2805  ;;  %2738 = vperm.xlu0 %4805, %v5675_v30  }
 0x4b0   : > { %4859 = vtanh.f32 %v841_v9  ;;  %1014 = vperm.xlu1 %4800, %v5663_v23  }
 0x4b1   : > { %v845_v16 = vpop.f32.mrb[12].mxu1 }
 0x4b2   : > { %v846_v10 = vadd.f32 %v845_v16, %v5766_v6  ;;  %v4111_v60 = vpop.f32.mrb[13].mxu1 }
 0x4b3   : > { %v2831_v11 = vpop.permute.xlu1 %2830  ;;  %v1040_v60 = vld [vmem:[%s6652_s1] sm:$0x1] }
 0x4b4   : > { %4861 = vtanh.f32 %v846_v10  ;;  %1018 = vperm.xlu1 %4800, %v5642_v32   ;;  %v2810_v10 = vpop.permute.xlu0 %2809 }
 0x4b5   : > { %v850_v25 = vpop.f32.mrb[14].mxu1 }
 0x4b6   : > { %v4114_v53 = vpop.f32.mrb[15].mxu1  ;;  %v851_v13 = vadd.f32 %v850_v25, %v5678_v34  ;;  %v5923_v34 = vrot.slane %v2764_v35, %v5356_v19 }
 0x4b7   : > { %v5920_v53 = vrot.slane %v2764_v35, %v5354_v18  ;;  %v2835_v25 = vpop.permute.xlu1 %2834 }
 0x4b8   : > { %4863 = vtanh.f32 %v851_v13  ;;  %4801 = vset.pattern.permute.xlu1 %v6667_v31  ;;  %v2773_v59 = vpop.permute.xlu0 %2772  ;;  %v2853_v14 = vmul.f32 %v5923_v34, %v2831_v11  ;;  %v2854_v24 = vmul.f32 %v5923_v34, %v2835_v25 }
 0x4b9   : > { %v855_v6 = vpop.f32.mrb[16].mxu1  ;;  %1043 = vperm.xlu1 %4801, %v1040_v60   ;;  %v2799_v19 = vmul.f32 %v5920_v53, %v2773_v59  ;;  %v2800_v31 = vmul.f32 %v5920_v53, %v2778_v15 }
 0x4ba   : > { %v856_v9 = vadd.f32 %v855_v6, %v5682_v8  ;;  %v4117_v16 = vpop.f32.mrb[17].mxu1  ;;  %v4860_v1 = vpop.eup %4859 }
 0x4bb   : > { %v2824_v60 = vadd.f32 %v2806_v2, %v2799_v19  ;;  %v2825_v2 = vadd.f32 %v2810_v10, %v2800_v31 }
 0x4bc   : > { %4865 = vtanh.f32 %v856_v9  ;;  %v2788_v9 = vpop.permute.xlu1 %2787 }
 0x4bd   : > { %v860_v8 = vpop.f32.mrb[18].mxu1  ;;  %4802 = vset.pattern.permute.xlu1 %v6691_v42  ;;  %v2858_v11 = vadd.f32 %v2853_v14, %v2824_v60  ;;  %v2859_v10 = vadd.f32 %v2854_v24, %v2825_v2 }
 0x4be   : > { %v4862_v6 = vpop.eup %4861  ;;  %v861_v16 = vadd.f32 %v860_v8, %v5774_v0  ;;  %v4120_v13 = vpop.f32.mrb[19].mxu1  ;;  %v6701_v8 = vmov 0.0|0.0   ;;  %1740 = vperm.xlu1 %4802, %v5632_v39  }
 0x4bf   : > { %v4546_v18 = vpack.c.bf16 %v4862_v6, %v4860_v1  ;;  %v2783_v1 = vpop.permute.xlu0 %2782 }
 0x4c0   : > { %4867 = vtanh.f32 %v861_v16  ;;  %v2865_v6 = vpop.permute.xlu1 %2864  ;;  %v2801_v16 = vmul.f32 %v5920_v53, %v2783_v1 }
 0x4c1   : > { %4547 = vmatpush3.bf16.msra.mxu0 %v4546_v18  ;;  %v1296_v63 = vpop.f32.mrb[20].mxu1  ;;  %v2887_v35 = vmul.f32 %v5932_v22, %v2865_v6 }
 0x4c2   : > { %v4158_v0 = vpop.f32.mrb[21].mxu1  ;;  %4548 = vmatprep.subr.bf16.mxu0 %v6701_v8  ;;  %v1297_v59 = vadd.f32 %v1296_v63, %v5686_v40  ;;  %v4864_v15 = vpop.eup %4863  ;;  %1744 = vperm.xlu1 %4802, %v5663_v23  }
 0x4c3   : > { %v2839_v48 = vpop.permute.xlu0 %2838  ;;  %v5944_v43 = vadd.f32 %v2887_v35, %v2858_v11  ;;  %v5951_v11 = vld [vmem:[#allocation2 + $0xa0] sm:$0xff] }
 0x4c4   : > { %4869 = vtanh.f32 %v1297_v59  ;;  %v2855_v63 = vmul.f32 %v5923_v34, %v2839_v48  ;;  %v2814_v14 = vpop.permute.xlu1 %2813  ;;  %v2802_v48 = vmul.f32 %v5920_v53, %v2788_v9  ;;  %v5964_v9 = vld [vmem:[#allocation2 + $0xa8] sm:$0xff] }
 0x4c5   : > { %v1301_v13 = vpop.f32.mrb[22].mxu1  ;;  %v2826_v25 = vadd.f32 %v2814_v14, %v2801_v16 }
 0x4c6   : > { %v4866_v18 = vpop.eup %4865  ;;  %v1302_v19 = vadd.f32 %v1301_v13, %v5778_v7  ;;  %v4161_v0 = vpop.f32.mrb[23].mxu1  ;;  %v6702_v7 = vmov 0.0   ;;  %1752 = vperm.xlu1 %4802, %v5675_v30   ;;  %v6703_v13 = vmov 10  }
 0x4c7   : > { %v4549_v40 = vpack.c.bf16 %v4866_v18, %v4864_v15  ;;  %v2869_v1 = vpop.permute.xlu0 %2868  ;;  %v2860_v6 = vadd.f32 %v2855_v63, %v2826_v25  ;;  %4807 = vset.pattern.permute.xlu0 %v6703_v13  ;;  %v6704_v0 = vmov 9  }
 0x4c8   : > { %4871 = vtanh.f32 %v1302_v19  ;;  %v2888_v15 = vmul.f32 %v5932_v22, %v2869_v1  ;;  %v2818_v24 = vpop.permute.xlu1 %2817 }
 0x4c9   : > { %4550 = vmatpush3.bf16.msra.mxu0 %v4549_v40  ;;  %v1306_v31 = vpop.f32.mrb[24].mxu1  ;;  %v2827_v19 = vadd.f32 %v2818_v24, %v2802_v48  ;;  %v5975_v48 = vld [vmem:[#allocation2 + $0xb0] sm:$0xff] }
 0x4ca   : > { %v4164_v60 = vpop.f32.mrb[25].mxu1  ;;  %4129 = vmatprep.subr.mxu0 %v6702_v7  ;;  %v1307_v59 = vadd.f32 %v1306_v31, %v5690_v29  ;;  %v4868_v35 = vpop.eup %4867  ;;  %v5956_v16 = vadd.f32 %v2888_v15, %v2859_v10  ;;  %4803 = vset.pattern.permute.xlu1 %v6704_v0 }
 0x4cb   : > { %v2877_v63 = vpop.permute.xlu0 %2876  ;;  %1870 = vperm.xlu1 %4803, %v5632_v39  }
 0x4cc   : > { %4873 = vtanh.f32 %v1307_v59  ;;  %v2843_v40 = vpop.permute.xlu1 %2842  ;;  %v2890_v10 = vmul.f32 %v5932_v22, %v2877_v63 }
 0x4cd   : > { %4130 = vmatpush3.msra.mxu0 %v4868_v35  ;;  %v1311_v2 = vpop.f32.mrb[26].mxu1  ;;  %v2856_v31 = vmul.f32 %v5923_v34, %v2843_v40 }
 0x4ce   : > { %v1312_v18 = vadd.f32 %v1311_v2, %v5694_v36  ;;  %4132 = vmatmul.mubr.msk.f32.vlgmr.msra.gmra.mrb[20].mxu0 %vm350_vm1, %v5951_v11  ;;  %v4167_v29 = vpop.f32.mrb[27].mxu1  ;;  %4557 = vmatprep.subr.bf16.mxu0 %v6701_v8  ;;  %v4870_v36 = vpop.eup %4869 }
 0x4cf   : > { %4134 = vmatprep.mubr.msk.f32.mxu0 %vm5163_vm0, %v6702_v7  ;;  %v2861_v15 = vadd.f32 %v2856_v31, %v2827_v19  ;;  %1874 = vperm.xlu1 %4803, %v5663_v23   ;;  %v5997_v31 = vld [vmem:[#allocation2 + $0xc0] sm:$0xff] }
 0x4d0   : > { %4875 = vtanh.f32 %v1312_v18  ;;  %v2873_v35 = vpop.permute.xlu1 %2872 }
 0x4d1   : > { %v1316_v14 = vpop.f32.mrb[28].mxu1  ;;  %v2889_v24 = vmul.f32 %v5932_v22, %v2873_v35  ;;  %v5979_v2 = vadd.f32 %v2890_v10, %v2861_v15  ;;  %v5055_v15 = vld [vmem:[#allocation2 + $0x30] sm:$0xff]  ;;  %v5058_v35 = vld [vmem:[#allocation2 + $0x48] sm:$0xff] }
 0x4d2   : > { %v4872_v25 = vpop.eup %4871  ;;  %v1317_v60 = vadd.f32 %v1316_v14, %v5788_v44  ;;  %4135 = vmatmul.mubr.msk.f32.gmra.mrb[22].mxu0 %vm350_vm1, %v5964_v9  ;;  %v4170_v1 = vpop.f32.mrb[29].mxu1  ;;  %v5986_v44 = vld [vmem:[#allocation2 + $0xb8] sm:$0xff] }
 0x4d3   : > { %4137 = vmatprep.mubr.msk.f32.mxu0 %vm5163_vm0, %v6702_v7  ;;  %v4558_v59 = vpack.c.bf16 %v4872_v25, %v4870_v36  ;;  %v5988_v18 = vadd.f32 %v2889_v24, %v2860_v6  ;;  %4804 = vset.pattern.permute.xlu1 %v6691_v42  ;;  %v2847_v36 = vpop.permute.xlu0 %2846 }
 0x4d4   : > { %4877 = vtanh.f32 %v1317_v60  ;;  %v2793_v29 = vpop.permute.xlu1 %2792  ;;  %2596 = vperm.xlu1 %4804, %v5632_v39   ;;  %v2857_v6 = vmul.f32 %v5923_v34, %v2847_v36  ;;  %v5054_v34 = vld [vmem:[#allocation2 + $0x28] sm:$0xff] }
 0x4d5   : > { %4559 = vmatpush3.bf16.msra.mxu0 %v4558_v59  ;;  %v2803_v40 = vmul.f32 %v5920_v53, %v2793_v29 }
 0x4d6   : > { %4138 = vmatmul.mubr.msk.f32.gmra.mrb[24].mxu0 %vm350_vm1, %v5975_v48  ;;  %4560 = vmatprep.subr.bf16.mxu0 %v6701_v8  ;;  %v4874_v19 = vpop.eup %4873 }
 0x4d7   : > { %4140 = vmatprep.mubr.msk.f32.mxu0 %vm5163_vm0, %v6702_v7 }
 0x4d8   : > { %v2822_v10 = vpop.permute.xlu1 %2821  ;;  %3448 = vperm.xlu1 %4804, %v5606_v5  }
 0x4d9   : > { %v2828_v42 = vadd.f32 %v2822_v10, %v2803_v40 }
 0x4da   : > { %v4876_v63 = vpop.eup %4875  ;;  %4141 = vmatmul.mubr.msk.f32.gmra.mrb[26].mxu0 %vm350_vm1, %v5986_v44 }
 0x4db   : > { %4143 = vmatprep.mubr.msk.f32.mxu0 %vm5163_vm0, %v6702_v7  ;;  %v4561_v14 = vpack.c.bf16 %v4876_v63, %v4874_v19  ;;  %v2862_v53 = vadd.f32 %v2857_v6, %v2828_v42 }
 0x4dc   : > { %v2881_v60 = vpop.permute.xlu1 %2880  ;;  %2600 = vperm.xlu1 %4804, %v5663_v23   ;;  %v5056_v23 = vld [vmem:[#allocation2 + $0x38] sm:$0xff] }
 0x4dd   : > { %4562 = vmatpush3.bf16.msra.mxu0 %v4561_v14  ;;  %v2891_v1 = vmul.f32 %v5932_v22, %v2881_v60  ;;  %v5057_v22 = vld [vmem:[#allocation2 + $0x40] sm:$0xff] }
 0x4de   : > { %4144 = vmatmul.mubr.msk.f32.gmra.mrb[28].mxu0 %vm350_vm1, %v5997_v31  ;;  %4179 = vmatprep.subr.mxu0 %v6702_v7  ;;  %v4878_v25 = vpop.eup %4877 }
 0x4df   : > { %4181 = vmatprep.mubr.msk.f32.mxu0 %vm5163_vm0, %v6702_v7  ;;  %v6012_v59 = vadd.f32 %v2891_v1, %v2862_v53 }
 0x4e0   : > { %2604 = vperm.xlu1 %4804, %v5642_v32  }
 0x4e1   : > { %4180 = vmatpush3.msra.mxu0 %v4878_v25 }
 0x4e2   : > { %4182 = vmatmul.mubr.msk.f32.vlgmr.msra.gmra.mrb[30].mxu0 %vm350_vm1, %v5054_v34  ;;  %4569 = vmatprep.subr.bf16.mxu0 %v6701_v8 }
 0x4e3   : > { %4184 = vmatprep.mubr.msk.f32.mxu0 %vm5163_vm0, %v6702_v7 }
 0x4e4   : > { %2608 = vperm.xlu1 %4804, %v5675_v30  }
 0x4e6   : > { %4185 = vmatmul.mubr.msk.f32.gmra.mrb[32].mxu0 %vm350_vm1, %v5055_v15 }
 0x4e7   : > { %4187 = vmatprep.mubr.msk.f32.mxu0 %vm5163_vm0, %v6702_v7 }
 0x4e8   : > { %4806 = vset.pattern.permute.xlu1 %v6704_v0  ;;  %v6039_v0 = vpop.permute.xlu1 %2457 }
 0x4e9   : > { %2722 = vperm.xlu1 %4806, %v5622_v33   ;;  %v6037_v33 = vpop.permute.xlu0 %2461 }
 0x4ea   : > { %4188 = vmatmul.mubr.msk.f32.gmra.mrb[34].mxu0 %vm350_vm1, %v5056_v23 }
 0x4eb   : > { %4190 = vmatprep.mubr.msk.f32.mxu0 %vm5163_vm0, %v6702_v7 }
 0x4ec   : > { %v6043_v24 = vpop.permute.xlu1 %2465 }
 0x4ed   : > { %3578 = vperm.xlu1 %4806, %v5606_v5   ;;  %v6041_v5 = vpop.permute.xlu0 %2473 }
 0x4ee   : > { %4191 = vmatmul.mubr.msk.f32.gmra.mrb[36].mxu0 %vm350_vm1, %v5057_v22  ;;  %6705 = vst [vmem:[#allocation32_spill] sm:$0xff] %v6041_v5 }
 0x4ef   : > { %4193 = vmatprep.mubr.msk.f32.mxu0 %vm5163_vm0, %v6702_v7 }
 0x4f1   : > { %3582 = vperm.xlu1 %4806, %v5632_v39   ;;  %v6045_v29 = vpop.permute.xlu0 %2912  ;;  %v6047_v39 = vpop.permute.xlu1 %2469 }
 0x4f2   : > { %4194 = vmatmul.mubr.msk.f32.gmra.mrb[38].mxu0 %vm350_vm1, %v5058_v35  ;;  %6706 = vst [vmem:[#allocation33_spill] sm:$0xff] %v6045_v29  ;;  %6707 = vst [vmem:[#allocation34_spill] sm:$0xff] %v6047_v39 }
 0x4f3   : > { %4231 = vmatprep.mubr.msk.f32.mxu0 %vm5163_vm0, %v6702_v7 }
 0x4f5   : > { %3586 = vperm.xlu1 %4806, %v5719_v46   ;;  %v6049_v46 = vpop.permute.xlu0 %2924 }
 0x4f6   : > { %6708 = vst [vmem:[#allocation35_spill] sm:$0xff] %v6049_v46 }
 0x4f9   : > { %2734 = vperm.xlu1 %4806, %v5642_v32   ;;  %v6051_v32 = vpop.permute.xlu1 %2908 }
 0x4fa   : > { %6709 = vst [vmem:[#allocation36_spill] sm:$0xff] %v6051_v32 }
 0x4fd   : > { %1882 = vperm.xlu1 %4806, %v5675_v30   ;;  %v6053_v30 = vpop.permute.xlu0 %3047 }
 0x4fe   : > { %6710 = vst [vmem:[#allocation37_spill] sm:$0xff] %v6053_v30 }
 0x501   : > { %3594 = vperm.xlu1 %4806, %v5747_v37   ;;  %v6055_v37 = vpop.permute.xlu1 %2916 }
 0x502   : > { %6711 = vst [vmem:[#allocation38_spill] sm:$0xff] %v6055_v37 }
 0x505   : > { %4808 = vset.pattern.permute.xlu1 %v6703_v13  ;;  %v6057_v13 = vpop.permute.xlu0 %3059  ;;  %v6059_v19 = vpop.permute.xlu1 %2920 }
 0x506   : > { %6712 = vst [vmem:[#allocation39_spill] sm:$0xff] %v6057_v13  ;;  %6713 = vst [vmem:[#allocation40_spill] sm:$0xff] %v6059_v19 }
 0x509   : > { %v6061_v40 = vpop.permute.xlu0 %3182  ;;  %v6063_v63 = vpop.permute.xlu1 %3043 }
 0x50a   : > { %6714 = vst [vmem:[#allocation41_spill] sm:$0xff] %v6061_v40  ;;  %6715 = vst [vmem:[#allocation42_spill] sm:$0xff] %v6063_v63 }
 0x50d   : > { %v6065_v36 = vpop.permute.xlu0 %3194  ;;  %v6067_v14 = vpop.permute.xlu1 %3051 }
 0x50e   : > { %6716 = vst [vmem:[#allocation43_spill] sm:$0xff] %v6065_v36  ;;  %6717 = vst [vmem:[#allocation44_spill] sm:$0xff] %v6067_v14 }
 0x511   : > { %v6069_v6 = vpop.permute.xlu0 %3317  ;;  %v6071_v10 = vpop.permute.xlu1 %3055 }
 0x512   : > { %6718 = vst [vmem:[#allocation45_spill] sm:$0xff] %v6069_v6  ;;  %6719 = vst [vmem:[#allocation46_spill] sm:$0xff] %v6071_v10 }
 0x515   : > { %v6073_v42 = vpop.permute.xlu0 %3329  ;;  %v6075_v53 = vpop.permute.xlu1 %3178 }
 0x516   : > { %6720 = vst [vmem:[#allocation47_spill] sm:$0xff] %v6073_v42  ;;  %6721 = vst [vmem:[#allocation48_spill] sm:$0xff] %v6075_v53 }
 0x519   : > { %v881_v25 = vpop.permute.xlu0 %880  ;;  %v6077_v60 = vpop.permute.xlu1 %3186 }
 0x51a   : > { %6722 = vst [vmem:[#allocation49_spill] sm:$0xff] %v6077_v60 }
 0x51d   : > { %v893_v1 = vpop.permute.xlu0 %892  ;;  %v6079_v34 = vpop.permute.xlu1 %3190 }
 0x51e   : > { %6723 = vst [vmem:[#allocation50_spill] sm:$0xff] %v6079_v34 }
 0x521   : > { %v6081_v15 = vpop.permute.xlu0 %1736  ;;  %v6083_v23 = vpop.permute.xlu1 %3313 }
 0x522   : > { %6724 = vst [vmem:[#allocation51_spill] sm:$0xff] %v6083_v23 }
 0x525   : > { %v6085_v22 = vpop.permute.xlu0 %1748  ;;  %v6087_v35 = vpop.permute.xlu1 %3321 }
 0x526   : > { %6725 = vst [vmem:[#allocation52_spill] sm:$0xff] %v6087_v35 }
 0x529   : > { %v6089_v6 = vpop.permute.xlu0 %2592  ;;  %v6091_v36 = vpop.permute.xlu1 %3325 }
 0x52a   : > { %6726 = vst [vmem:[#allocation53_spill] sm:$0xff] %v6089_v6  ;;  %6727 = vst [vmem:[#allocation54_spill] sm:$0xff] %v6091_v36 }
 0x52d   : > { %v6093_v42 = vpop.permute.xlu0 %3452  ;;  %v877_v40 = vpop.permute.xlu1 %876 }
 0x52e   : > { %6728 = vst [vmem:[#allocation55_spill] sm:$0xff] %v6093_v42 }
 0x531   : > { %v6095_v53 = vpop.permute.xlu0 %3456  ;;  %v885_v10 = vpop.permute.xlu1 %884 }
 0x532   : > { %6729 = vst [vmem:[#allocation56_spill] sm:$0xff] %v6095_v53 }
 0x535   : > { %v6097_v14 = vpop.permute.xlu0 %3460  ;;  %v889_v35 = vpop.permute.xlu1 %888 }
 0x536   : > { %6730 = vst [vmem:[#allocation57_spill] sm:$0xff] %v6097_v14 }
 0x539   : > { %v6099_v19 = vpop.permute.xlu0 %3464  ;;  %v1007_v37 = vpop.permute.xlu1 %1006 }
 0x53a   : > { %6731 = vst [vmem:[#allocation58_spill] sm:$0xff] %v6099_v19 }
 0x5a1   : > { %v976_v60 = vpop.f32.mrb[20].mxu0 }
 0x5a2   : > { %v977_v13 = vadd.f32 %v976_v60, %v877_v40  ;;  %v4133_v34 = vpop.f32.mrb[21].mxu0 }
 0x5a3   : > { %v1011_v34 = vpop.permute.xlu0 %1010 }
 0x5a4   : > { %4879 = vtanh.f32 %v977_v13 }
 0x5a5   : > { %v981_v23 = vpop.f32.mrb[22].mxu0 }
 0x5a6   : > { %v982_v30 = vadd.f32 %v981_v23, %v881_v25  ;;  %v4136_v63 = vpop.f32.mrb[23].mxu0 }
 0x5a7   : > { %v1015_v63 = vpop.permute.xlu1 %1014 }
 0x5a8   : > { %4881 = vtanh.f32 %v982_v30 }
 0x5a9   : > { %v986_v6 = vpop.f32.mrb[24].mxu0 }
 0x5aa   : > { %v987_v46 = vadd.f32 %v986_v6, %v885_v10  ;;  %v4139_v36 = vpop.f32.mrb[25].mxu0 }
 0x5ac   : > { %4883 = vtanh.f32 %v987_v46 }
 0x5ad   : > { %v991_v42 = vpop.f32.mrb[26].mxu0 }
 0x5ae   : > { %v992_v53 = vadd.f32 %v991_v42, %v889_v35  ;;  %v4142_v40 = vpop.f32.mrb[27].mxu0  ;;  %v4880_v60 = vpop.eup %4879 }
 0x5af   : > { %v1025_v30 = vmul.f32 %v4880_v60, %v1007_v37  ;;  %v1019_v35 = vpop.permute.xlu1 %1018  ;;  %v1023_v37 = vpop.permute.xlu0 %1022 }
 0x5b0   : > { %4885 = vtanh.f32 %v992_v53 }
 0x5b1   : > { %v996_v14 = vpop.f32.mrb[28].mxu0 }
 0x5b2   : > { %v4882_v29 = vpop.eup %4881  ;;  %v997_v13 = vadd.f32 %v996_v14, %v893_v1  ;;  %v4145_v25 = vpop.f32.mrb[29].mxu0 }
 0x5b3   : > { %v1026_v23 = vmul.f32 %v4882_v29, %v1011_v34 }
 0x5b4   : > { %4887 = vtanh.f32 %v997_v13 }
 0x5b5   : > { %v1030_v6 = vadd.f32 %v1026_v23, %v1025_v30  ;;  %v1431_v36 = vpop.f32.mrb[30].mxu0 }
 0x5b6   : > { %v4884_v10 = vpop.eup %4883  ;;  %v4183_v19 = vpop.f32.mrb[31].mxu0  ;;  %v1432_v46 = vadd.f32 %v1431_v36, %v5698_v41 }
 0x5b7   : > { %v1027_v42 = vmul.f32 %v4884_v10, %v1015_v63 }
 0x5b8   : > { %4889 = vtanh.f32 %v1432_v46 }
 0x5b9   : > { %v1031_v40 = vadd.f32 %v1030_v6, %v1027_v42  ;;  %v1436_v32 = vpop.f32.mrb[32].mxu0  ;;  %v1044_v42 = vpop.permute.xlu1 %1043 }
 0x5ba   : > { %v4886_v53 = vpop.eup %4885  ;;  %v1437_v5 = vadd.f32 %v1436_v32, %v5796_v56  ;;  %v4186_v39 = vpop.f32.mrb[33].mxu0 }
 0x5bb   : > { %v1028_v14 = vmul.f32 %v4886_v53, %v1019_v35 }
 0x5bc   : > { %4891 = vtanh.f32 %v1437_v5 }
 0x5bd   : > { %v1032_v29 = vadd.f32 %v1031_v40, %v1028_v14  ;;  %v1441_v1 = vpop.f32.mrb[34].mxu0  ;;  %v6732_v14 = vlaneseq }
 0x5be   : > { %v4888_v60 = vpop.eup %4887  ;;  %v4189_v34 = vpop.f32.mrb[35].mxu0  ;;  %v1442_v19 = vadd.f32 %v1441_v1, %v5706_v61  ;;  %v6121_v1 = vld [vmem:[#allocation2 + $0x50] sm:$0xff] }
 0x5bf   : > { %v1029_v13 = vmul.f32 %v4888_v60, %v1023_v37  ;;  %vm6111_vm2 = vcmp.lt.s32.totalorder %v6732_v14, 128  ;;  %v6128_v34 = vld [vmem:[#allocation2 + $0x58] sm:$0xff]  ;;  %v6735_v14 = vld [vmem:[#allocation8_spill] sm:$0xff] }
 0x5c0   : > { %4893 = vtanh.f32 %v1442_v19  ;;  %v6134_v19 = vld [vmem:[#allocation2 + $0x60] sm:$0xff] }
 0x5c1   : > { %v1033_v41 = vadd.f32 %v1032_v29, %v1029_v13  ;;  %v1446_v25 = vpop.f32.mrb[36].mxu0  ;;  %v6140_v13 = vld [vmem:[#allocation2 + $0x68] sm:$0xff] }
 0x5c2   : > { %v1447_v63 = vadd.f32 %v1446_v25, %v5710_v45  ;;  %v4192_v30 = vpop.f32.mrb[37].mxu0  ;;  %v4890_v39 = vpop.eup %4889  ;;  %v1943_v25 = vmul.f32 %v5842_v17, %v5732_v27  ;;  %v2032_v27 = vmul.f32 %v5863_v28, %v5769_v52  ;;  %v2034_v52 = vmul.f32 %v5863_v28, %v5792_v62 }
 0x5c3   : > { %v1034_v56 = vrot.slane %v1033_v41, 4 }
 0x5c4   : > { %4895 = vtanh.f32 %v1447_v63  ;;  %v1944_v63 = vmul.f32 %v5842_v17, %v5836_v12  ;;  %v1968_v30 = vadd.f32 %v5737_v49, %v1943_v25  ;;  %v1945_v49 = vmul.f32 %v5842_v17, %v5759_v51 }
 0x5c5   : > { %v1035_v5 = vadd.f32 %v1034_v56, %v1033_v41  ;;  %v1451_v32 = vpop.f32.mrb[38].mxu0  ;;  %v6146_v41 = vld [vmem:[#allocation2 + $0x70] sm:$0xff]  ;;  %v1997_v56 = vmul.f32 %v5845_v3, %v5824_v20 }
 0x5c6   : > { %v4892_v23 = vpop.eup %4891  ;;  %v1452_v6 = vadd.f32 %v1451_v32, %v5800_v57  ;;  %v4195_v36 = vpop.f32.mrb[39].mxu0  ;;  %v2031_v32 = vmul.f32 %v5863_v28, %v5763_v4  ;;  %v2033_v4 = vmul.f32 %v5863_v28, %v5785_v55 }
 0x5c7   : > { %v4564_v10 = vpack.c.bf16 %v4892_v23, %v4890_v39  ;;  %v1036_v61 = vrot.slane %v1035_v5, 2  ;;  %v1998_v39 = vmul.f32 %v5845_v3, %v5753_v50  ;;  %v2002_v23 = vadd.f32 %v1997_v56, %v1968_v30 }
 0x5c8   : > { %4897 = vtanh.f32 %v1452_v6  ;;  %v1999_v50 = vmul.f32 %v5845_v3, %v5780_v54 }
 0x5c9   : > { %4565 = vmatpush3.bf16.msra.mxu1 %v4564_v10  ;;  %v1037_v46 = vadd.f32 %v1036_v61, %v1035_v5  ;;  %v1969_v5 = vadd.f32 %v5742_v21, %v1944_v63  ;;  %v2036_v36 = vadd.f32 %v2031_v32, %v2002_v23  ;;  %v1970_v21 = vadd.f32 %v5817_v47, %v1945_v49  ;;  %v6191_v49 = vld [vmem:[#allocation2 + $0x80] sm:$0xff] }
 0x5ca   : > { %4566 = vmatprep.subr.bf16.mxu1 %v6701_v8  ;;  %v4894_v35 = vpop.eup %4893 }
 0x5cb   : > { %v1038_v45 = vrot.slane %v1037_v46, 1  ;;  %v2003_v6 = vadd.f32 %v1998_v39, %v1969_v5  ;;  %4899 = vtanh.f32 %v2036_v36  ;;  %v2004_v61 = vadd.f32 %v1999_v50, %v1970_v21  ;;  %v6184_v36 = vld [vmem:[#allocation2 + $0x78] sm:$0xff]  ;;  %v6198_v50 = vld [vmem:[#allocation2 + $0x88] sm:$0xff] }
 0x5cd   : > { %v1039_v40 = vadd.f32 %v1038_v45, %v1037_v46  ;;  %v2037_v12 = vadd.f32 %v2032_v27, %v2003_v6  ;;  %v2038_v45 = vadd.f32 %v2033_v4, %v2004_v61  ;;  %v6738_v6 = vld [vmem:[#allocation20_spill] sm:$0xff]  ;;  %v6218_v4 = vld [vmem:[#allocation2] sm:$0xff]  ;;  %v6224_v61 = vld [vmem:[#allocation2 + $0x8] sm:$0xff] }
 0x5ce   : > { %v4896_v53 = vpop.eup %4895 }
 0x5cf   : > { %v1046_v57 = vadd.f32 %v1044_v42, %v1039_v40  ;;  %v4567_v29 = vpack.c.bf16 %v4896_v53, %v4894_v35  ;;  %4901 = vtanh.f32 %v2037_v12  ;;  %v2039_v42 = vadd.f32 %v2034_v52, %v5856_v26  ;;  %v6230_v52 = vld [vmem:[#allocation2 + $0x10] sm:$0xff] }
 0x5d0   : > { %4903 = vtanh.f32 %v2038_v45  ;;  %v6242_v45 = vld [vmem:[#allocation2 + $0x20] sm:$0xff] }
 0x5d1   : > { %1051 = vst.msk [vmem:[%s6115_s20] sm:$0x1] %vm6111_vm2, %v1046_v57  ;;  %4568 = vmatpush3.bf16.msra.mxu1 %v4567_v29  ;;  %4905 = vtanh.f32 %v2039_v42  ;;  %v6736_v29 = vld [vmem:[#allocation9_spill] sm:$0xff]  ;;  %v1900_v42 = vld [vmem:[%s6652_s1] sm:$0x1] }
 0x5d2   : > { %4204 = vmatprep.subr.mxu1 %v6702_v7  ;;  %v4898_v60 = vpop.eup %4897  ;;  %1903 = vperm.xlu0 %4807, %v1900_v42   ;;  %v6745_v42 = vld [vmem:[#allocation15_spill] sm:$0xff] }
 0x5d5   : > { %4205 = vmatpush3.msra.mxu1 %v4898_v60  ;;  %v4900_v20 = vpop.eup %4899 }
 0x5d6   : > { %4207 = vmatmul.mubr.msk.f32.vlgmr.msra.gmra.mrb[30].mxu1 %vm350_vm1, %v6121_v1  ;;  %4575 = vmatprep.subr.bf16.mxu1 %v6701_v8 }
 0x5d7   : > { %4209 = vmatprep.mubr.msk.f32.mxu1 %vm5163_vm0, %v6702_v7 }
 0x5d9   : > { %v4902_v10 = vpop.eup %4901 }
 0x5da   : > { %4210 = vmatmul.mubr.msk.f32.gmra.mrb[32].mxu1 %vm350_vm1, %v6128_v34  ;;  %v4582_v46 = vpack.c.bf16 %v4902_v10, %v4900_v20  ;;  %v4904_v51 = vpop.eup %4903  ;;  %v6205_v20 = vld [vmem:[#allocation2 + $0x90] sm:$0xff]  ;;  %v6212_v10 = vld [vmem:[#allocation2 + $0x98] sm:$0xff] }
 0x5db   : > { %4212 = vmatprep.mubr.msk.f32.mxu1 %vm5163_vm0, %v6702_v7  ;;  %v4906_v17 = vpop.eup %4905 }
 0x5dc   : > { %v4585_v54 = vpack.c.bf16 %v4906_v17, %v4904_v51 }
 0x5de   : > { %4213 = vmatmul.mubr.msk.f32.gmra.mrb[34].mxu1 %vm350_vm1, %v6134_v19 }
 0x5df   : > { %4215 = vmatprep.mubr.msk.f32.mxu1 %vm5163_vm0, %v6702_v7 }
 0x5e2   : > { %4216 = vmatmul.mubr.msk.f32.gmra.mrb[36].mxu1 %vm350_vm1, %v6140_v13 }
 0x5e3   : > { %4218 = vmatprep.mubr.msk.f32.mxu1 %vm5163_vm0, %v6702_v7 }
 0x5e6   : > { %4219 = vmatmul.mubr.msk.f32.gmra.mrb[38].mxu1 %vm350_vm1, %v6146_v41 }
 0x5e7   : > { %4256 = vmatprep.mubr.msk.f32.mxu1 %vm5163_vm0, %v6702_v7 }
 0x6a9   : > { %v1566_v3 = vpop.f32.mrb[30].mxu1 }
 0x6aa   : > { %v4208_v47 = vpop.f32.mrb[31].mxu1  ;;  %v1567_v35 = vadd.f32 %v1566_v3, %v5714_v38  ;;  %v6737_v38 = vld [vmem:[#allocation11_spill] sm:$0xff] }
 0x6ac   : > { %4907 = vtanh.f32 %v1567_v35  ;;  %v6740_v35 = vld [vmem:[#allocation12_spill] sm:$0xff] }
 0x6ad   : > { %v1571_v40 = vpop.f32.mrb[32].mxu1 }
 0x6ae   : > { %v1572_v55 = vadd.f32 %v1571_v40, %v5804_v58  ;;  %v4211_v53 = vpop.f32.mrb[33].mxu1 }
 0x6b0   : > { %4909 = vtanh.f32 %v1572_v55 }
 0x6b1   : > { %v1576_v62 = vpop.f32.mrb[34].mxu1 }
 0x6b2   : > { %v4214_v28 = vpop.f32.mrb[35].mxu1  ;;  %v1577_v57 = vadd.f32 %v1576_v62, %v6735_v14 }
 0x6b3   : > { %v6741_v28 = vld [vmem:[#allocation21_spill] sm:$0xff] }
 0x6b4   : > { %4911 = vtanh.f32 %v1577_v57 }
 0x6b5   : > { %v1581_v26 = vpop.f32.mrb[36].mxu1 }
 0x6b6   : > { %v1582_v60 = vadd.f32 %v1581_v26, %v6736_v29  ;;  %v4217_v25 = vpop.f32.mrb[37].mxu1  ;;  %v4908_v63 = vpop.eup %4907  ;;  %v6742_v26 = vld [vmem:[#allocation13_spill] sm:$0xff] }
 0x6b8   : > { %4913 = vtanh.f32 %v1582_v60 }
 0x6b9   : > { %v1586_v30 = vpop.f32.mrb[38].mxu1 }
 0x6ba   : > { %v4910_v56 = vpop.eup %4909  ;;  %v1587_v39 = vadd.f32 %v1586_v30, %v6737_v38  ;;  %v4220_v5 = vpop.f32.mrb[39].mxu1 }
 0x6bb   : > { %v4570_v58 = vpack.c.bf16 %v4910_v56, %v4908_v63  ;;  %v6743_v56 = vld [vmem:[#allocation14_spill] sm:$0xff] }
 0x6bc   : > { %4915 = vtanh.f32 %v1587_v39 }
 0x6bd   : > { %4571 = vmatpush3.bf16.msra.mxu0 %v4570_v58  ;;  %4917 = vtanh.f32 %v6738_v6 }
 0x6be   : > { %4572 = vmatprep.subr.bf16.mxu0 %v6701_v8  ;;  %v4912_v32 = vpop.eup %4911 }
 0x6c2   : > { %v4914_v23 = vpop.eup %4913 }
 0x6c3   : > { %v4573_v27 = vpack.c.bf16 %v4914_v23, %v4912_v32  ;;  %v6744_v23 = vld [vmem:[#allocation23_spill] sm:$0xff] }
 0x6c5   : > { %4574 = vmatpush3.bf16.msra.mxu0 %v4573_v27 }
 0x6c6   : > { %4229 = vmatprep.subr.mxu0 %v6702_v7  ;;  %v4916_v12 = vpop.eup %4915 }
 0x6c7   : > { %v4918_v21 = vpop.eup %4917 }
 0x6c9   : > { %4230 = vmatpush3.msra.mxu0 %v4916_v12 }
 0x6ca   : > { %4232 = vmatmul.mubr.msk.f32.vlgmr.msra.gmra.mrb[40].mxu0 %vm350_vm1, %v6184_v36  ;;  %4581 = vmatprep.subr.bf16.mxu0 %v6701_v8 }
 0x6cb   : > { %4583 = vmatpush3.bf16.msra.mxu0 %v4582_v46  ;;  %4234 = vmatprep.mubr.msk.f32.mxu0 %vm5163_vm0, %v6702_v7  ;;  %v6236_v46 = vld [vmem:[#allocation2 + $0x18] sm:$0xff] }
 0x6cc   : > { %4584 = vmatprep.subr.bf16.mxu0 %v6701_v8 }
 0x6ce   : > { %4235 = vmatmul.mubr.msk.f32.gmra.mrb[42].mxu0 %vm350_vm1, %v6191_v49 }
 0x6cf   : > { %4586 = vmatpush3.bf16.msra.mxu0 %v4585_v54  ;;  %4237 = vmatprep.mubr.msk.f32.mxu0 %vm5163_vm0, %v6702_v7  ;;  %v6739_v54 = vld [vmem:[#allocation10_spill] sm:$0xff] }
 0x6d0   : > { %4279 = vmatprep.subr.mxu0 %v6702_v7 }
 0x6d2   : > { %4238 = vmatmul.mubr.msk.f32.gmra.mrb[44].mxu0 %vm350_vm1, %v6198_v50 }
 0x6d3   : > { %4280 = vmatpush3.msra.mxu0 %v4918_v21  ;;  %4240 = vmatprep.mubr.msk.f32.mxu0 %vm5163_vm0, %v6702_v7 }
 0x6d4   : > { %4593 = vmatprep.subr.bf16.mxu0 %v6701_v8 }
 0x6d6   : > { %4241 = vmatmul.mubr.msk.f32.gmra.mrb[46].mxu0 %vm350_vm1, %v6205_v20 }
 0x6d7   : > { %4243 = vmatprep.mubr.msk.f32.mxu0 %vm5163_vm0, %v6702_v7 }
 0x6da   : > { %4244 = vmatmul.mubr.msk.f32.gmra.mrb[48].mxu0 %vm350_vm1, %v6212_v10 }
 0x6db   : > { %4281 = vmatprep.mubr.msk.f32.mxu0 %vm5163_vm0, %v6702_v7 }
 0x6de   : > { %4282 = vmatmul.mubr.msk.f32.vlgmr.msra.gmra.mrb[50].mxu0 %vm350_vm1, %v6218_v4 }
 0x6df   : > { %4284 = vmatprep.mubr.msk.f32.mxu0 %vm5163_vm0, %v6702_v7 }
 0x6e2   : > { %4285 = vmatmul.mubr.msk.f32.gmra.mrb[52].mxu0 %vm350_vm1, %v6224_v61 }
 0x6e3   : > { %4287 = vmatprep.mubr.msk.f32.mxu0 %vm5163_vm0, %v6702_v7 }
 0x6e6   : > { %4288 = vmatmul.mubr.msk.f32.gmra.mrb[54].mxu0 %vm350_vm1, %v6230_v52 }
 0x6e7   : > { %4290 = vmatprep.mubr.msk.f32.mxu0 %vm5163_vm0, %v6702_v7 }
 0x6ea   : > { %4291 = vmatmul.mubr.msk.f32.gmra.mrb[56].mxu0 %vm350_vm1, %v6236_v46 }
 0x6eb   : > { %4293 = vmatprep.mubr.msk.f32.mxu0 %vm5163_vm0, %v6702_v7 }
 0x6ee   : > { %4294 = vmatmul.mubr.msk.f32.gmra.mrb[58].mxu0 %vm350_vm1, %v6242_v45 }
 0x6ef   : > { %4331 = vmatprep.mubr.msk.f32.mxu0 %vm5163_vm0, %v6702_v7 }
 0x79d   : > { %v1701_v51 = vpop.f32.mrb[40].mxu0 }
 0x79e   : > { %v4233_v17 = vpop.f32.mrb[41].mxu0  ;;  %v1702_v3 = vadd.f32 %v1701_v51, %v6739_v54 }
 0x7a0   : > { %4919 = vtanh.f32 %v1702_v3 }
 0x7a1   : > { %v1706_v47 = vpop.f32.mrb[42].mxu0 }
 0x7a2   : > { %v1707_v40 = vadd.f32 %v1706_v47, %v6740_v35  ;;  %v4236_v55 = vpop.f32.mrb[43].mxu0  ;;  %v6746_v35 = vld [vmem:[#allocation16_spill] sm:$0xff] }
 0x7a4   : > { %4921 = vtanh.f32 %v1707_v40 }
 0x7a5   : > { %v1711_v53 = vpop.f32.mrb[44].mxu0 }
 0x7a6   : > { %v4239_v62 = vpop.f32.mrb[45].mxu0  ;;  %v1712_v14 = vadd.f32 %v1711_v53, %v6741_v28 }
 0x7a7   : > { %v6747_v62 = vld [vmem:[#allocation25_spill] sm:$0xff] }
 0x7a8   : > { %4923 = vtanh.f32 %v1712_v14 }
 0x7a9   : > { %v1716_v57 = vpop.f32.mrb[46].mxu0 }
 0x7aa   : > { %v1717_v29 = vadd.f32 %v1716_v57, %v6742_v26  ;;  %v4242_v60 = vpop.f32.mrb[47].mxu0  ;;  %v4920_v25 = vpop.eup %4919 }
 0x7ab   : > { %v6748_v60 = vld [vmem:[#allocation17_spill] sm:$0xff] }
 0x7ac   : > { %4925 = vtanh.f32 %v1717_v29 }
 0x7ad   : > { %v1721_v63 = vpop.f32.mrb[48].mxu0 }
 0x7ae   : > { %v4922_v30 = vpop.eup %4921  ;;  %v1722_v38 = vadd.f32 %v1721_v63, %v6743_v56  ;;  %v4245_v39 = vpop.f32.mrb[49].mxu0 }
 0x7af   : > { %v4576_v5 = vpack.c.bf16 %v4922_v30, %v4920_v25  ;;  %v6305_v39 = vld [vmem:[#allocation2 + $0x40] sm:$0xff] }
 0x7b0   : > { %4927 = vtanh.f32 %v1722_v38 }
 0x7b1   : > { %4577 = vmatpush3.bf16.msra.mxu1 %v4576_v5  ;;  %v2152_v58 = vpop.f32.mrb[50].mxu0  ;;  %v6311_v5 = vld [vmem:[#allocation2 + $0x48] sm:$0xff] }
 0x7b2   : > { %v4283_v32 = vpop.f32.mrb[51].mxu0  ;;  %4578 = vmatprep.subr.bf16.mxu1 %v6701_v8  ;;  %v2153_v27 = vadd.f32 %v2152_v58, %v6744_v23  ;;  %v4924_v6 = vpop.eup %4923 }
 0x7b3   : > { %v1741_v58 = vpop.permute.xlu1 %1740 }
 0x7b4   : > { %4929 = vtanh.f32 %v2153_v27 }
 0x7b5   : > { %v2157_v12 = vpop.f32.mrb[52].mxu0 }
 0x7b6   : > { %v4926_v21 = vpop.eup %4925  ;;  %v2158_v51 = vadd.f32 %v2157_v12, %v6745_v42  ;;  %v4286_v17 = vpop.f32.mrb[53].mxu0 }
 0x7b7   : > { %v4579_v54 = vpack.c.bf16 %v4926_v21, %v4924_v6  ;;  %v1745_v32 = vpop.permute.xlu1 %1744 }
 0x7b8   : > { %4931 = vtanh.f32 %v2158_v51 }
 0x7b9   : > { %4580 = vmatpush3.bf16.msra.mxu1 %v4579_v54  ;;  %v2162_v3 = vpop.f32.mrb[54].mxu0 }
 0x7ba   : > { %v4289_v47 = vpop.f32.mrb[55].mxu0  ;;  %4254 = vmatprep.subr.mxu1 %v6702_v7  ;;  %v2163_v40 = vadd.f32 %v2162_v3, %v6746_v35  ;;  %v4928_v55 = vpop.eup %4927 }
 0x7bb   : > { %v1753_v23 = vpop.permute.xlu1 %1752 }
 0x7bc   : > { %4933 = vtanh.f32 %v2163_v40 }
 0x7bd   : > { %4255 = vmatpush3.msra.mxu1 %v4928_v55  ;;  %v2167_v53 = vpop.f32.mrb[56].mxu0 }
 0x7be   : > { %v2168_v28 = vadd.f32 %v2167_v53, %v6747_v62  ;;  %4257 = vmatmul.mubr.msk.f32.vlgmr.msra.gmra.mrb[40].mxu1 %vm350_vm1, %v5951_v11  ;;  %v4292_v14 = vpop.f32.mrb[57].mxu0  ;;  %4587 = vmatprep.subr.bf16.mxu1 %v6701_v8  ;;  %v4930_v57 = vpop.eup %4929 }
 0x7bf   : > { %4259 = vmatprep.mubr.msk.f32.mxu1 %vm5163_vm0, %v6702_v7  ;;  %v1871_v27 = vpop.permute.xlu1 %1870 }
 0x7c0   : > { %4935 = vtanh.f32 %v2168_v28  ;;  %v1867_v28 = vpop.permute.xlu0 %1866 }
 0x7c1   : > { %v2172_v26 = vpop.f32.mrb[58].mxu0 }
 0x7c2   : > { %v4932_v29 = vpop.eup %4931  ;;  %v2173_v25 = vadd.f32 %v2172_v26, %v6748_v60  ;;  %4260 = vmatmul.mubr.msk.f32.gmra.mrb[42].mxu1 %vm350_vm1, %v5964_v9  ;;  %v4295_v63 = vpop.f32.mrb[59].mxu0 }
 0x7c3   : > { %4262 = vmatprep.mubr.msk.f32.mxu1 %vm5163_vm0, %v6702_v7  ;;  %v4588_v11 = vpack.c.bf16 %v4932_v29, %v4930_v57  ;;  %v1875_v6 = vpop.permute.xlu1 %1874 }
 0x7c4   : > { %4937 = vtanh.f32 %v2173_v25  ;;  %v6334_v60 = vpop.permute.xlu0 %2726 }
 0x7c5   : > { %4589 = vmatpush3.bf16.msra.mxu1 %v4588_v11 }
 0x7c6   : > { %4263 = vmatmul.mubr.msk.f32.gmra.mrb[44].mxu1 %vm350_vm1, %v5975_v48  ;;  %4590 = vmatprep.subr.bf16.mxu1 %v6701_v8  ;;  %v4934_v30 = vpop.eup %4933  ;;  %v6286_v48 = vld [vmem:[#allocation2 + $0x28] sm:$0xff] }
 0x7c7   : > { %4265 = vmatprep.mubr.msk.f32.mxu1 %vm5163_vm0, %v6702_v7  ;;  %v6317_v12 = vpop.permute.xlu1 %2596 }
 0x7ca   : > { %v4936_v56 = vpop.eup %4935  ;;  %4266 = vmatmul.mubr.msk.f32.gmra.mrb[46].mxu1 %vm350_vm1, %v5986_v44  ;;  %v6293_v44 = vld [vmem:[#allocation2 + $0x30] sm:$0xff] }
 0x7cb   : > { %4268 = vmatprep.mubr.msk.f32.mxu1 %vm5163_vm0, %v6702_v7  ;;  %v4591_v9 = vpack.c.bf16 %v4936_v56, %v4934_v30  ;;  %v6319_v21 = vpop.permute.xlu1 %3448 }
 0x7cd   : > { %4592 = vmatpush3.bf16.msra.mxu1 %v4591_v9 }
 0x7ce   : > { %4269 = vmatmul.mubr.msk.f32.gmra.mrb[48].mxu1 %vm350_vm1, %v5997_v31  ;;  %4304 = vmatprep.subr.mxu1 %v6702_v7  ;;  %v4938_v38 = vpop.eup %4937  ;;  %v6299_v31 = vld [vmem:[#allocation2 + $0x38] sm:$0xff] }
 0x7cf   : > { %4306 = vmatprep.mubr.msk.f32.mxu1 %vm5163_vm0, %v6702_v7  ;;  %v6321_v42 = vpop.permute.xlu1 %2600 }
 0x7d1   : > { %4305 = vmatpush3.msra.mxu1 %v4938_v38 }
 0x7d2   : > { %4307 = vmatmul.mubr.msk.f32.vlgmr.msra.gmra.mrb[50].mxu1 %vm350_vm1, %v6286_v48  ;;  %4599 = vmatprep.subr.bf16.mxu1 %v6701_v8 }
 0x7d3   : > { %4309 = vmatprep.mubr.msk.f32.mxu1 %vm5163_vm0, %v6702_v7  ;;  %v6323_v51 = vpop.permute.xlu1 %2604 }
 0x7d6   : > { %4310 = vmatmul.mubr.msk.f32.gmra.mrb[52].mxu1 %vm350_vm1, %v6293_v44 }
 0x7d7   : > { %4312 = vmatprep.mubr.msk.f32.mxu1 %vm5163_vm0, %v6702_v7  ;;  %v6325_v17 = vpop.permute.xlu1 %2608 }
 0x7da   : > { %4313 = vmatmul.mubr.msk.f32.gmra.mrb[54].mxu1 %vm350_vm1, %v6299_v31 }
 0x7db   : > { %4315 = vmatprep.mubr.msk.f32.mxu1 %vm5163_vm0, %v6702_v7  ;;  %v6327_v54 = vpop.permute.xlu1 %2722 }
 0x7de   : > { %4316 = vmatmul.mubr.msk.f32.gmra.mrb[56].mxu1 %vm350_vm1, %v6305_v39 }
 0x7df   : > { %4318 = vmatprep.mubr.msk.f32.mxu1 %vm5163_vm0, %v6702_v7  ;;  %v6330_v40 = vpop.permute.xlu1 %3578 }
 0x7e2   : > { %4319 = vmatmul.mubr.msk.f32.gmra.mrb[58].mxu1 %vm350_vm1, %v6311_v5 }
 0x7e3   : > { %4356 = vmatprep.mubr.msk.f32.mxu1 %vm5163_vm0, %v6702_v7  ;;  %v6332_v29 = vpop.permute.xlu1 %3582 }
 0x7e4   : > { %6749 = vst [vmem:[#allocation8_spill] sm:$0xff] %v6332_v29 }
 0x7e7   : > { %v6337_v30 = vpop.permute.xlu1 %3586 }
 0x7e8   : > { %6750 = vst [vmem:[#allocation9_spill] sm:$0xff] %v6337_v30 }
 0x891   : > { %v1836_v3 = vpop.f32.mrb[40].mxu1 }
 0x892   : > { %v1837_v47 = vadd.f32 %v1836_v3, %v6081_v15  ;;  %v4258_v35 = vpop.f32.mrb[41].mxu1  ;;  %v6339_v3 = vpop.permute.xlu0 %2730 }
 0x894   : > { %4939 = vtanh.f32 %v1837_v47 }
 0x895   : > { %v1841_v55 = vpop.f32.mrb[42].mxu1 }
 0x896   : > { %v1842_v53 = vadd.f32 %v1841_v55, %v1741_v58  ;;  %v4261_v62 = vpop.f32.mrb[43].mxu1 }
 0x898   : > { %4941 = vtanh.f32 %v1842_v53 }
 0x899   : > { %v1846_v14 = vpop.f32.mrb[44].mxu1 }
 0x89a   : > { %v1847_v57 = vadd.f32 %v1846_v14, %v1745_v32  ;;  %v4264_v26 = vpop.f32.mrb[45].mxu1  ;;  %v6341_v14 = vpop.permute.xlu1 %2734 }
 0x89c   : > { %4943 = vtanh.f32 %v1847_v57 }
 0x89d   : > { %v1851_v25 = vpop.f32.mrb[46].mxu1 }
 0x89e   : > { %v1852_v15 = vadd.f32 %v1851_v25, %v6085_v22  ;;  %v4267_v63 = vpop.f32.mrb[47].mxu1  ;;  %v4940_v11 = vpop.eup %4939  ;;  %v6751_v22 = vld [vmem:[#allocation27_spill] sm:$0xff] }
 0x89f   : > { %v1885_v32 = vmul.f32 %v4940_v11, %v1867_v28  ;;  %v1879_v25 = vpop.permute.xlu0 %1878 }
 0x8a0   : > { %4945 = vtanh.f32 %v1852_v15 }
 0x8a1   : > { %v1856_v56 = vpop.f32.mrb[48].mxu1 }
 0x8a2   : > { %v4942_v9 = vpop.eup %4941  ;;  %v1857_v38 = vadd.f32 %v1856_v56, %v1753_v23  ;;  %v4270_v58 = vpop.f32.mrb[49].mxu1  ;;  %v6752_v23 = vld [vmem:[#allocation18_spill] sm:$0xff] }
 0x8a3   : > { %v1886_v47 = vmul.f32 %v4942_v9, %v1871_v27  ;;  %v1883_v27 = vpop.permute.xlu1 %1882 }
 0x8a4   : > { %4947 = vtanh.f32 %v1857_v38 }
 0x8a5   : > { %v1890_v35 = vadd.f32 %v1886_v47, %v1885_v32  ;;  %v2287_v55 = vpop.f32.mrb[50].mxu1  ;;  %v6753_v47 = vld [vmem:[#allocation19_spill] sm:$0xff] }
 0x8a6   : > { %v4944_v53 = vpop.eup %4943  ;;  %v4308_v62 = vpop.f32.mrb[51].mxu1  ;;  %v2288_v57 = vadd.f32 %v2287_v55, %v6751_v22 }
 0x8a7   : > { %v1887_v26 = vmul.f32 %v4944_v53, %v1875_v6  ;;  %v6346_v55 = vpop.permute.xlu0 %3590 }
 0x8a8   : > { %4949 = vtanh.f32 %v2288_v57 }
 0x8a9   : > { %v2292_v15 = vpop.f32.mrb[52].mxu1  ;;  %v1891_v63 = vadd.f32 %v1890_v35, %v1887_v26  ;;  %v6754_v35 = vld [vmem:[#allocation29_spill] sm:$0xff] }
 0x8aa   : > { %v4946_v30 = vpop.eup %4945  ;;  %v2293_v56 = vadd.f32 %v2292_v15, %v6752_v23  ;;  %v4311_v58 = vpop.f32.mrb[53].mxu1  ;;  %v6755_v23 = vld [vmem:[#allocation22_spill] sm:$0xff] }
 0x8ab   : > { %v1888_v28 = vmul.f32 %v4946_v30, %v1879_v25 }
 0x8ac   : > { %4951 = vtanh.f32 %v2293_v56 }
 0x8ad   : > { %v1892_v11 = vadd.f32 %v1891_v63, %v1888_v28  ;;  %v2297_v9 = vpop.f32.mrb[54].mxu1  ;;  %v6350_v28 = vpop.permute.xlu0 %2738 }
 0x8ae   : > { %v4948_v38 = vpop.eup %4947  ;;  %v4314_v32 = vpop.f32.mrb[55].mxu1  ;;  %v2298_v62 = vadd.f32 %v2297_v9, %v6753_v47 }
 0x8af   : > { %v1889_v29 = vmul.f32 %v4948_v38, %v1883_v27 }
 0x8b0   : > { %4953 = vtanh.f32 %v2298_v62 }
 0x8b1   : > { %v1893_v6 = vadd.f32 %v1892_v11, %v1889_v29  ;;  %v2302_v53 = vpop.f32.mrb[56].mxu1  ;;  %v1904_v38 = vpop.permute.xlu0 %1903 }
 0x8b2   : > { %v2303_v22 = vadd.f32 %v2302_v53, %v6754_v35  ;;  %v4317_v26 = vpop.f32.mrb[57].mxu1  ;;  %v4950_v30 = vpop.eup %4949 }
 0x8b3   : > { %v1894_v15 = vrot.slane %v1893_v6, 4 }
 0x8b4   : > { %4955 = vtanh.f32 %v2303_v22 }
 0x8b5   : > { %v1895_v57 = vadd.f32 %v1894_v15, %v1893_v6  ;;  %v2307_v25 = vpop.f32.mrb[58].mxu1 }
 0x8b6   : > { %v4952_v63 = vpop.eup %4951  ;;  %v2308_v56 = vadd.f32 %v2307_v25, %v6755_v23  ;;  %v4320_v58 = vpop.f32.mrb[59].mxu1 }
 0x8b7   : > { %v4594_v27 = vpack.c.bf16 %v4952_v63, %v4950_v30  ;;  %v1896_v9 = vrot.slane %v1895_v57, 2  ;;  %v6757_v63 = vld [vmem:[#allocation24_spill] sm:$0xff]  ;;  %v6758_v58 = vld [vmem:[#allocation26_spill] sm:$0xff] }
 0x8b8   : > { %4957 = vtanh.f32 %v2308_v56 }
 0x8b9   : > { %4595 = vmatpush3.bf16.msra.mxu0 %v4594_v27  ;;  %v1897_v29 = vadd.f32 %v1896_v9, %v1895_v57  ;;  %4959 = vtanh.f32 %v5944_v43  ;;  %v6759_v9 = vld [vmem:[#allocation31_spill] sm:$0xff] }
 0x8ba   : > { %4596 = vmatprep.subr.bf16.mxu0 %v6701_v8  ;;  %v4954_v32 = vpop.eup %4953  ;;  %4961 = vtanh.f32 %v5956_v16 }
 0x8bb   : > { %v1898_v11 = vrot.slane %v1897_v29, 1  ;;  %4963 = vtanh.f32 %v5979_v2 }
 0x8bc   : > { %4965 = vtanh.f32 %v5988_v18 }
 0x8bd   : > { %v1899_v47 = vadd.f32 %v1898_v11, %v1897_v29 }
 0x8be   : > { %v4956_v62 = vpop.eup %4955 }
 0x8bf   : > { %v1906_v6 = vadd.f32 %v1904_v38, %v1899_v47  ;;  %v4597_v53 = vpack.c.bf16 %v4956_v62, %v4954_v32  ;;  %v6760_v47 = vld [vmem:[#allocation28_spill] sm:$0xff] }
 0x8c1   : > { %1907 = vst.msk [vmem:[%s6115_s20 + $0x1] sm:$0x1] %vm6111_vm2, %v1906_v6  ;;  %4598 = vmatpush3.bf16.msra.mxu0 %v4597_v53 }
 0x8c2   : > { %4329 = vmatprep.subr.mxu0 %v6702_v7  ;;  %v4958_v35 = vpop.eup %4957 }
 0x8c5   : > { %4330 = vmatpush3.msra.mxu0 %v4958_v35 }
 0x8c6   : > { %4332 = vmatmul.mubr.msk.f32.vlgmr.msra.gmra.mrb[60].mxu0 %vm350_vm1, %v6121_v1  ;;  %4605 = vmatprep.subr.bf16.mxu0 %v6701_v8  ;;  %v4960_v1 = vpop.eup %4959 }
 0x8c7   : > { %4334 = vmatprep.mubr.msk.f32.mxu0 %vm5163_vm0, %v6702_v7 }
 0x8ca   : > { %4335 = vmatmul.mubr.msk.f32.gmra.mrb[62].mxu0 %vm350_vm1, %v6128_v34  ;;  %v4962_v34 = vpop.eup %4961 }
 0x8cb   : > { %4337 = vmatprep.mubr.msk.f32.mxu0 %vm5163_vm0, %v6702_v7 }
 0x8ce   : > { %4338 = vmatmul.mubr.msk.f32.gmra.mrb[64].mxu0 %vm350_vm1, %v6134_v19  ;;  %v4612_v19 = vpack.c.bf16 %v4962_v34, %v4960_v1 }
 0x8cf   : > { %4340 = vmatprep.mubr.msk.f32.mxu0 %vm5163_vm0, %v6702_v7 }
 0x8d2   : > { %4341 = vmatmul.mubr.msk.f32.gmra.mrb[66].mxu0 %vm350_vm1, %v6140_v13  ;;  %v4964_v13 = vpop.eup %4963 }
 0x8d3   : > { %4343 = vmatprep.mubr.msk.f32.mxu0 %vm5163_vm0, %v6702_v7  ;;  %v4966_v22 = vpop.eup %4965 }
 0x8d4   : > { %v4615_v26 = vpack.c.bf16 %v4964_v13, %v4966_v22  ;;  %v6761_v22 = vld [vmem:[#allocation34_spill] sm:$0xff] }
 0x8d6   : > { %4344 = vmatmul.mubr.msk.f32.gmra.mrb[68].mxu0 %vm350_vm1, %v6146_v41  ;;  %v6756_v41 = vld [vmem:[#allocation30_spill] sm:$0xff] }
 0x8d7   : > { %4381 = vmatprep.mubr.msk.f32.mxu0 %vm5163_vm0, %v6702_v7 }
 0x999   : > { %v2422_v15 = vpop.f32.mrb[60].mxu0 }
 0x99a   : > { %v4333_v30 = vpop.f32.mrb[61].mxu0  ;;  %v2423_v57 = vadd.f32 %v2422_v15, %v6756_v41 }
 0x99c   : > { %4967 = vtanh.f32 %v2423_v57 }
 0x99d   : > { %v2427_v25 = vpop.f32.mrb[62].mxu0 }
 0x99e   : > { %v2428_v23 = vadd.f32 %v2427_v25, %v6757_v63  ;;  %v4336_v43 = vpop.f32.mrb[63].mxu0 }
 0x9a0   : > { %4969 = vtanh.f32 %v2428_v23 }
 0x9a1   : > { %v2432_v16 = vpop.f32.mrb[64].mxu0 }
 0x9a2   : > { %v4339_v56 = vpop.f32.mrb[65].mxu0  ;;  %v2433_v27 = vadd.f32 %v2432_v16, %v6758_v58 }
 0x9a4   : > { %4971 = vtanh.f32 %v2433_v27 }
 0x9a5   : > { %v2437_v2 = vpop.f32.mrb[66].mxu0 }
 0x9a6   : > { %v2438_v18 = vadd.f32 %v2437_v2, %v6759_v9  ;;  %v4342_v29 = vpop.f32.mrb[67].mxu0  ;;  %v4968_v11 = vpop.eup %4967  ;;  %v6764_v2 = vld [vmem:[#allocation33_spill] sm:$0xff] }
 0x9a8   : > { %4973 = vtanh.f32 %v2438_v18 }
 0x9a9   : > { %v2442_v38 = vpop.f32.mrb[68].mxu0 }
 0x9aa   : > { %v4970_v32 = vpop.eup %4969  ;;  %v2443_v62 = vadd.f32 %v2442_v38, %v6760_v47  ;;  %v4345_v6 = vpop.f32.mrb[69].mxu0 }
 0x9ab   : > { %v4600_v53 = vpack.c.bf16 %v4970_v32, %v4968_v11  ;;  %v6765_v32 = vld [vmem:[#allocation38_spill] sm:$0xff] }
 0x9ac   : > { %4975 = vtanh.f32 %v2443_v62  ;;  %v6447_v62 = vld [vmem:[#allocation2 + $0xa0] sm:$0xff] }
 0x9ad   : > { %4601 = vmatpush3.bf16.msra.mxu1 %v4600_v53  ;;  %4977 = vtanh.f32 %v6012_v59 }
 0x9ae   : > { %4602 = vmatprep.subr.bf16.mxu1 %v6701_v8  ;;  %v4972_v35 = vpop.eup %4971 }
 0x9b2   : > { %v4974_v1 = vpop.eup %4973 }
 0x9b3   : > { %v4603_v34 = vpack.c.bf16 %v4974_v1, %v4972_v35  ;;  %v6766_v35 = vld [vmem:[#allocation40_spill] sm:$0xff] }
 0x9b5   : > { %4604 = vmatpush3.bf16.msra.mxu1 %v4603_v34 }
 0x9b6   : > { %4354 = vmatprep.subr.mxu1 %v6702_v7  ;;  %v4976_v13 = vpop.eup %4975 }
 0x9b7   : > { %v4978_v59 = vpop.eup %4977 }
 0x9b9   : > { %4355 = vmatpush3.msra.mxu1 %v4976_v13  ;;  %v6455_v13 = vld [vmem:[#allocation2 + $0xa8] sm:$0xff] }
 0x9ba   : > { %4357 = vmatmul.mubr.msk.f32.vlgmr.msra.gmra.mrb[60].mxu1 %vm350_vm1, %v6184_v36  ;;  %4611 = vmatprep.subr.bf16.mxu1 %v6701_v8  ;;  %v2756_v36 = vld [vmem:[%s6652_s1] sm:$0x1] }
 0x9bb   : > { %4613 = vmatpush3.bf16.msra.mxu1 %v4612_v19  ;;  %4359 = vmatprep.mubr.msk.f32.mxu1 %vm5163_vm0, %v6702_v7 }
 0x9bc   : > { %4614 = vmatprep.subr.bf16.mxu1 %v6701_v8  ;;  %2759 = vperm.xlu1 %4808, %v2756_v36  }
 0x9be   : > { %4360 = vmatmul.mubr.msk.f32.gmra.mrb[62].mxu1 %vm350_vm1, %v6191_v49 }
 0x9bf   : > { %4616 = vmatpush3.bf16.msra.mxu1 %v4615_v26  ;;  %4362 = vmatprep.mubr.msk.f32.mxu1 %vm5163_vm0, %v6702_v7 }
 0x9c0   : > { %4404 = vmatprep.subr.mxu1 %v6702_v7 }
 0x9c2   : > { %4363 = vmatmul.mubr.msk.f32.gmra.mrb[64].mxu1 %vm350_vm1, %v6198_v50 }
 0x9c3   : > { %4365 = vmatprep.mubr.msk.f32.mxu1 %vm5163_vm0, %v6702_v7  ;;  %4405 = vmatpush3.msra.mxu1 %v4978_v59 }
 0x9c4   : > { %4623 = vmatprep.subr.bf16.mxu1 %v6701_v8 }
 0x9c6   : > { %4366 = vmatmul.mubr.msk.f32.gmra.mrb[66].mxu1 %vm350_vm1, %v6205_v20 }
 0x9c7   : > { %4368 = vmatprep.mubr.msk.f32.mxu1 %vm5163_vm0, %v6702_v7 }
 0x9ca   : > { %4369 = vmatmul.mubr.msk.f32.gmra.mrb[68].mxu1 %vm350_vm1, %v6212_v10 }
 0x9cb   : > { %4406 = vmatprep.mubr.msk.f32.mxu1 %vm5163_vm0, %v6702_v7 }
 0x9ce   : > { %4407 = vmatmul.mubr.msk.f32.vlgmr.msra.gmra.mrb[70].mxu1 %vm350_vm1, %v6218_v4 }
 0x9cf   : > { %4409 = vmatprep.mubr.msk.f32.mxu1 %vm5163_vm0, %v6702_v7 }
 0x9d2   : > { %4410 = vmatmul.mubr.msk.f32.gmra.mrb[72].mxu1 %vm350_vm1, %v6224_v61 }
 0x9d3   : > { %4412 = vmatprep.mubr.msk.f32.mxu1 %vm5163_vm0, %v6702_v7 }
 0x9d6   : > { %4413 = vmatmul.mubr.msk.f32.gmra.mrb[74].mxu1 %vm350_vm1, %v6230_v52 }
 0x9d7   : > { %4415 = vmatprep.mubr.msk.f32.mxu1 %vm5163_vm0, %v6702_v7 }
 0x9da   : > { %4416 = vmatmul.mubr.msk.f32.gmra.mrb[76].mxu1 %vm350_vm1, %v6236_v46 }
 0x9db   : > { %4418 = vmatprep.mubr.msk.f32.mxu1 %vm5163_vm0, %v6702_v7 }
 0x9de   : > { %4419 = vmatmul.mubr.msk.f32.gmra.mrb[78].mxu1 %vm350_vm1, %v6242_v45 }
 0x9df   : > { %4456 = vmatprep.mubr.msk.f32.mxu1 %vm5163_vm0, %v6702_v7 }
 0xa8d   : > { %v2557_v49 = vpop.f32.mrb[60].mxu1 }
 0xa8e   : > { %v4358_v50 = vpop.f32.mrb[61].mxu1  ;;  %v2558_v20 = vadd.f32 %v2557_v49, %v6039_v0  ;;  %v6762_v0 = vld [vmem:[#allocation32_spill] sm:$0xff] }
 0xa8f   : > { %v6767_v50 = vld [vmem:[#allocation35_spill] sm:$0xff] }
 0xa90   : > { %4979 = vtanh.f32 %v2558_v20 }
 0xa91   : > { %v2562_v10 = vpop.f32.mrb[62].mxu1 }
 0xa92   : > { %v2563_v4 = vadd.f32 %v2562_v10, %v6037_v33  ;;  %v4361_v61 = vpop.f32.mrb[63].mxu1 }
 0xa93   : > { %v6462_v61 = vld [vmem:[#allocation2 + $0xb0] sm:$0xff] }
 0xa94   : > { %4981 = vtanh.f32 %v2563_v4 }
 0xa95   : > { %v2567_v52 = vpop.f32.mrb[64].mxu1 }
 0xa96   : > { %v4364_v46 = vpop.f32.mrb[65].mxu1  ;;  %v2568_v45 = vadd.f32 %v2567_v52, %v6043_v24  ;;  %v6763_v24 = vld [vmem:[#allocation36_spill] sm:$0xff]  ;;  %v6469_v52 = vld [vmem:[#allocation2 + $0xb8] sm:$0xff] }
 0xa98   : > { %4983 = vtanh.f32 %v2568_v45 }
 0xa99   : > { %v2572_v19 = vpop.f32.mrb[66].mxu1 }
 0xa9a   : > { %v2573_v26 = vadd.f32 %v2572_v19, %v6761_v22  ;;  %v4367_v15 = vpop.f32.mrb[67].mxu1  ;;  %v4980_v30 = vpop.eup %4979  ;;  %v6475_v22 = vld [vmem:[#allocation2 + $0xc0] sm:$0xff] }
 0xa9c   : > { %4985 = vtanh.f32 %v2573_v26 }
 0xa9d   : > { %v2577_v41 = vpop.f32.mrb[68].mxu1 }
 0xa9e   : > { %v4982_v57 = vpop.eup %4981  ;;  %v2578_v25 = vadd.f32 %v2577_v41, %v6762_v0  ;;  %v4370_v63 = vpop.f32.mrb[69].mxu1 }
 0xa9f   : > { %v4606_v33 = vpack.c.bf16 %v4982_v57, %v4980_v30 }
 0xaa0   : > { %4987 = vtanh.f32 %v2578_v25 }
 0xaa1   : > { %4607 = vmatpush3.bf16.msra.mxu0 %v4606_v33  ;;  %v3008_v23 = vpop.f32.mrb[70].mxu1 }
 0xaa2   : > { %v4408_v43 = vpop.f32.mrb[71].mxu1  ;;  %4608 = vmatprep.subr.bf16.mxu0 %v6701_v8  ;;  %v3009_v16 = vadd.f32 %v3008_v23, %v6763_v24  ;;  %v4984_v56 = vpop.eup %4983 }
 0xaa4   : > { %4989 = vtanh.f32 %v3009_v16 }
 0xaa5   : > { %v3013_v58 = vpop.f32.mrb[72].mxu1 }
 0xaa6   : > { %v4986_v27 = vpop.eup %4985  ;;  %v3014_v9 = vadd.f32 %v3013_v58, %v6764_v2  ;;  %v4411_v18 = vpop.f32.mrb[73].mxu1 }
 0xaa7   : > { %v4609_v29 = vpack.c.bf16 %v4986_v27, %v4984_v56 }
 0xaa8   : > { %4991 = vtanh.f32 %v3014_v9 }
 0xaa9   : > { %4610 = vmatpush3.bf16.msra.mxu0 %v4609_v29  ;;  %v3018_v11 = vpop.f32.mrb[74].mxu1 }
 0xaaa   : > { %v4414_v38 = vpop.f32.mrb[75].mxu1  ;;  %4379 = vmatprep.subr.mxu0 %v6702_v7  ;;  %v3019_v47 = vadd.f32 %v3018_v11, %v6765_v32  ;;  %v4988_v6 = vpop.eup %4987 }
 0xaac   : > { %4993 = vtanh.f32 %v3019_v47  ;;  %v6770_v47 = vld [vmem:[#allocation37_spill] sm:$0xff] }
 0xaad   : > { %4380 = vmatpush3.msra.mxu0 %v4988_v6  ;;  %v3023_v53 = vpop.f32.mrb[76].mxu1 }
 0xaae   : > { %v3024_v1 = vadd.f32 %v3023_v53, %v6766_v35  ;;  %4382 = vmatmul.mubr.msk.f32.vlgmr.msra.gmra.mrb[70].mxu0 %vm350_vm1, %v6447_v62  ;;  %v4417_v34 = vpop.f32.mrb[77].mxu1  ;;  %4617 = vmatprep.subr.bf16.mxu0 %v6701_v8  ;;  %v4990_v59 = vpop.eup %4989 }
 0xaaf   : > { %4384 = vmatprep.mubr.msk.f32.mxu0 %vm5163_vm0, %v6702_v7  ;;  %v6771_v34 = vld [vmem:[#allocation44_spill] sm:$0xff] }
 0xab0   : > { %4995 = vtanh.f32 %v3024_v1 }
 0xab1   : > { %v3028_v36 = vpop.f32.mrb[78].mxu1 }
 0xab2   : > { %v4992_v49 = vpop.eup %4991  ;;  %v3029_v20 = vadd.f32 %v3028_v36, %v6767_v50  ;;  %4385 = vmatmul.mubr.msk.f32.gmra.mrb[72].mxu0 %vm350_vm1, %v6455_v13  ;;  %v4420_v10 = vpop.f32.mrb[79].mxu1  ;;  %v6772_v50 = vld [vmem:[#allocation46_spill] sm:$0xff] }
 0xab3   : > { %4387 = vmatprep.mubr.msk.f32.mxu0 %vm5163_vm0, %v6702_v7  ;;  %v4618_v4 = vpack.c.bf16 %v4992_v49, %v4990_v59 }
 0xab4   : > { %4997 = vtanh.f32 %v3029_v20 }
 0xab5   : > { %4619 = vmatpush3.bf16.msra.mxu0 %v4618_v4 }
 0xab6   : > { %4388 = vmatmul.mubr.msk.f32.gmra.mrb[74].mxu0 %vm350_vm1, %v6462_v61  ;;  %4620 = vmatprep.subr.bf16.mxu0 %v6701_v8  ;;  %v4994_v46 = vpop.eup %4993 }
 0xab7   : > { %4390 = vmatprep.mubr.msk.f32.mxu0 %vm5163_vm0, %v6702_v7 }
 0xaba   : > { %v4996_v45 = vpop.eup %4995  ;;  %4391 = vmatmul.mubr.msk.f32.gmra.mrb[76].mxu0 %vm350_vm1, %v6469_v52 }
 0xabb   : > { %4393 = vmatprep.mubr.msk.f32.mxu0 %vm5163_vm0, %v6702_v7  ;;  %v4621_v19 = vpack.c.bf16 %v4996_v45, %v4994_v46 }
 0xabd   : > { %4622 = vmatpush3.bf16.msra.mxu0 %v4621_v19 }
 0xabe   : > { %4394 = vmatmul.mubr.msk.f32.gmra.mrb[78].mxu0 %vm350_vm1, %v6475_v22  ;;  %4429 = vmatprep.subr.mxu0 %v6702_v7  ;;  %v4998_v26 = vpop.eup %4997 }
 0xabf   : > { %4431 = vmatprep.mubr.msk.f32.mxu0 %vm5163_vm0, %v6702_v7 }
 0xac1   : > { %4430 = vmatpush3.msra.mxu0 %v4998_v26  ;;  %v6773_v26 = vld [vmem:[#allocation39_spill] sm:$0xff] }
 0xac2   : > { %4432 = vmatmul.mubr.msk.f32.vlgmr.msra.gmra.mrb[80].mxu0 %vm350_vm1, %v6286_v48  ;;  %4629 = vmatprep.subr.bf16.mxu0 %v6701_v8 }
 0xac3   : > { %4434 = vmatprep.mubr.msk.f32.mxu0 %vm5163_vm0, %v6702_v7 }
 0xac6   : > { %4435 = vmatmul.mubr.msk.f32.gmra.mrb[82].mxu0 %vm350_vm1, %v6293_v44  ;;  %v6768_v44 = vld [vmem:[#allocation53_spill] sm:$0xff] }
 0xac7   : > { %4437 = vmatprep.mubr.msk.f32.mxu0 %vm5163_vm0, %v6702_v7 }
 0xaca   : > { %4438 = vmatmul.mubr.msk.f32.gmra.mrb[84].mxu0 %vm350_vm1, %v6299_v31 }
 0xacb   : > { %4440 = vmatprep.mubr.msk.f32.mxu0 %vm5163_vm0, %v6702_v7 }
 0xace   : > { %4441 = vmatmul.mubr.msk.f32.gmra.mrb[86].mxu0 %vm350_vm1, %v6305_v39 }
 0xacf   : > { %4443 = vmatprep.mubr.msk.f32.mxu0 %vm5163_vm0, %v6702_v7 }
 0xad2   : > { %4444 = vmatmul.mubr.msk.f32.gmra.mrb[88].mxu0 %vm350_vm1, %v6311_v5 }
 0xad3   : > { %4481 = vmatprep.mubr.msk.f32.mxu0 %vm5163_vm0, %v6702_v7 }
 0xb81   : > { %v2692_v48 = vpop.f32.mrb[70].mxu0 }
 0xb82   : > { %v2693_v15 = vadd.f32 %v2692_v48, %v6768_v44  ;;  %v4383_v30 = vpop.f32.mrb[71].mxu0 }
 0xb84   : > { %4999 = vtanh.f32 %v2693_v15  ;;  %v6518_v15 = vpop.permute.xlu1 %3594 }
 0xb85   : > { %v2697_v31 = vpop.f32.mrb[72].mxu0 }
 0xb86   : > { %v2698_v41 = vadd.f32 %v2697_v31, %v6317_v12  ;;  %v4386_v57 = vpop.f32.mrb[73].mxu0 }
 0xb88   : > { %5001 = vtanh.f32 %v2698_v41  ;;  %v2760_v57 = vpop.permute.xlu1 %2759 }
 0xb89   : > { %v2702_v39 = vpop.f32.mrb[74].mxu0 }
 0xb8a   : > { %v2703_v0 = vadd.f32 %v2702_v39, %v6321_v42  ;;  %v4389_v25 = vpop.f32.mrb[75].mxu0 }
 0xb8c   : > { %5003 = vtanh.f32 %v2703_v0 }
 0xb8d   : > { %v2707_v63 = vpop.f32.mrb[76].mxu0 }
 0xb8e   : > { %v2708_v5 = vadd.f32 %v2707_v63, %v6323_v51  ;;  %v4392_v33 = vpop.f32.mrb[77].mxu0  ;;  %v5000_v23 = vpop.eup %4999  ;;  %v6769_v51 = vld [vmem:[#allocation42_spill] sm:$0xff] }
 0xb8f   : > { %v2741_v12 = vmul.f32 %v5000_v23, %v6327_v54  ;;  %v3172_v33 = vld [vmem:[#allocation2 + $0x50] sm:$0xff] }
 0xb90   : > { %5005 = vtanh.f32 %v2708_v5 }
 0xb91   : > { %v2712_v43 = vpop.f32.mrb[78].mxu0 }
 0xb92   : > { %v5002_v24 = vpop.eup %5001  ;;  %v2713_v16 = vadd.f32 %v2712_v43, %v6325_v17  ;;  %v4395_v56 = vpop.f32.mrb[79].mxu0  ;;  %v3173_v43 = vld [vmem:[#allocation2 + $0x58] sm:$0xff] }
 0xb93   : > { %v2742_v58 = vmul.f32 %v5002_v24, %v6334_v60  ;;  %v3174_v24 = vld [vmem:[#allocation2 + $0x60] sm:$0xff]  ;;  %v3176_v56 = vld [vmem:[#allocation2 + $0x70] sm:$0xff] }
 0xb94   : > { %5007 = vtanh.f32 %v2713_v16  ;;  %v3175_v16 = vld [vmem:[#allocation2 + $0x68] sm:$0xff] }
 0xb95   : > { %v2746_v27 = vadd.f32 %v2742_v58, %v2741_v12  ;;  %v3143_v42 = vpop.f32.mrb[80].mxu0 }
 0xb96   : > { %v5004_v2 = vpop.eup %5003  ;;  %v4433_v9 = vpop.f32.mrb[81].mxu0  ;;  %v3144_v29 = vadd.f32 %v3143_v42, %v6769_v51 }
 0xb97   : > { %v2743_v18 = vmul.f32 %v5004_v2, %v6339_v3  ;;  %v6775_v9 = vld [vmem:[#allocation41_spill] sm:$0xff] }
 0xb98   : > { %5009 = vtanh.f32 %v3144_v29 }
 0xb99   : > { %v3148_v11 = vpop.f32.mrb[82].mxu0  ;;  %v2747_v38 = vadd.f32 %v2746_v27, %v2743_v18  ;;  %v6774_v27 = vld [vmem:[#allocation48_spill] sm:$0xff] }
 0xb9a   : > { %v5006_v32 = vpop.eup %5005  ;;  %v3149_v6 = vadd.f32 %v3148_v11, %v6770_v47  ;;  %v4436_v17 = vpop.f32.mrb[83].mxu0 }
 0xb9b   : > { %v2744_v53 = vmul.f32 %v5006_v32, %v6341_v14 }
 0xb9c   : > { %5011 = vtanh.f32 %v3149_v6  ;;  %v6777_v6 = vld [vmem:[#allocation50_spill] sm:$0xff] }
 0xb9d   : > { %v3153_v54 = vpop.f32.mrb[84].mxu0  ;;  %v2748_v60 = vadd.f32 %v2747_v38, %v2744_v53  ;;  %v6776_v38 = vld [vmem:[#allocation49_spill] sm:$0xff] }
 0xb9e   : > { %v5008_v35 = vpop.eup %5007  ;;  %v4439_v1 = vpop.f32.mrb[85].mxu0  ;;  %v3154_v59 = vadd.f32 %v3153_v54, %v6771_v34 }
 0xb9f   : > { %v2745_v3 = vmul.f32 %v5008_v35, %v6350_v28  ;;  %v6778_v1 = vld [vmem:[#allocation43_spill] sm:$0xff] }
 0xba0   : > { %5013 = vtanh.f32 %v3154_v59 }
 0xba1   : > { %v3158_v36 = vpop.f32.mrb[86].mxu0  ;;  %v2749_v49 = vadd.f32 %v2748_v60, %v2745_v3 }
 0xba2   : > { %v3159_v20 = vadd.f32 %v3158_v36, %v6772_v50  ;;  %v4442_v10 = vpop.f32.mrb[87].mxu0  ;;  %v5010_v46 = vpop.eup %5009 }
 0xba3   : > { %v2750_v4 = vrot.slane %v2749_v49, 4 }
 0xba4   : > { %5015 = vtanh.f32 %v3159_v20  ;;  %v3307_v20 = vld [vmem:[#allocation2 + $0x78] sm:$0xff] }
 0xba5   : > { %v3163_v14 = vpop.f32.mrb[88].mxu0  ;;  %v2751_v45 = vadd.f32 %v2750_v4, %v2749_v49  ;;  %v3308_v4 = vld [vmem:[#allocation2 + $0x80] sm:$0xff] }
 0xba6   : > { %v5012_v19 = vpop.eup %5011  ;;  %v3164_v48 = vadd.f32 %v3163_v14, %v6773_v26  ;;  %v4445_v44 = vpop.f32.mrb[89].mxu0  ;;  %v3310_v14 = vld [vmem:[#allocation2 + $0x90] sm:$0xff] }
 0xba7   : > { %v4624_v30 = vpack.c.bf16 %v5012_v19, %v5010_v46  ;;  %v2752_v28 = vrot.slane %v2751_v45, 2  ;;  %v3309_v46 = vld [vmem:[#allocation2 + $0x88] sm:$0xff]  ;;  %v3612_v19 = vld [vmem:[%s6652_s1] sm:$0x1] }
 0xba8   : > { %5017 = vtanh.f32 %v3164_v48  ;;  %3615 = vperm.xlu1 %4808, %v3612_v19   ;;  %v6779_v44 = vld [vmem:[#allocation51_spill] sm:$0xff] }
 0xba9   : > { %4625 = vmatpush3.bf16.msra.mxu1 %v4624_v30  ;;  %v2753_v31 = vadd.f32 %v2752_v28, %v2751_v45  ;;  %v3311_v45 = vld [vmem:[#allocation2 + $0x98] sm:$0xff] }
 0xbaa   : > { %4626 = vmatprep.subr.bf16.mxu1 %v6701_v8  ;;  %v5014_v39 = vpop.eup %5013 }
 0xbab   : > { %v2754_v41 = vrot.slane %v2753_v31, 1 }
 0xbad   : > { %v2755_v0 = vadd.f32 %v2754_v41, %v2753_v31  ;;  %v6780_v31 = vld [vmem:[#allocation45_spill] sm:$0xff] }
 0xbae   : > { %v5016_v25 = vpop.eup %5015 }
 0xbaf   : > { %v2762_v63 = vadd.f32 %v2760_v57, %v2755_v0  ;;  %v4627_v5 = vpack.c.bf16 %v5016_v25, %v5014_v39  ;;  %v6781_v25 = vld [vmem:[#allocation52_spill] sm:$0xff] }
 0xbb1   : > { %2763 = vst.msk [vmem:[%s6115_s20 + $0x2] sm:$0x1] %vm6111_vm2, %v2762_v63  ;;  %4628 = vmatpush3.bf16.msra.mxu1 %v4627_v5 }
 0xbb2   : > { %4454 = vmatprep.subr.mxu1 %v6702_v7  ;;  %v5018_v23 = vpop.eup %5017 }
 0xbb5   : > { %4455 = vmatpush3.msra.mxu1 %v5018_v23 }
 0xbb6   : > { %4457 = vmatmul.mubr.msk.f32.vlgmr.msra.gmra.mrb[80].mxu1 %vm350_vm1, %v3172_v33  ;;  %4635 = vmatprep.subr.bf16.mxu1 %v6701_v8  ;;  %v6782_v33 = vld [vmem:[#allocation54_spill] sm:$0xff] }
 0xbb7   : > { %4459 = vmatprep.mubr.msk.f32.mxu1 %vm5163_vm0, %v6702_v7 }
 0xbba   : > { %4460 = vmatmul.mubr.msk.f32.gmra.mrb[82].mxu1 %vm350_vm1, %v3173_v43 }
 0xbbb   : > { %4462 = vmatprep.mubr.msk.f32.mxu1 %vm5163_vm0, %v6702_v7 }
 0xbbe   : > { %4463 = vmatmul.mubr.msk.f32.gmra.mrb[84].mxu1 %vm350_vm1, %v3174_v24 }
 0xbbf   : > { %4465 = vmatprep.mubr.msk.f32.mxu1 %vm5163_vm0, %v6702_v7 }
 0xbc2   : > { %4466 = vmatmul.mubr.msk.f32.gmra.mrb[86].mxu1 %vm350_vm1, %v3175_v16 }
 0xbc3   : > { %4468 = vmatprep.mubr.msk.f32.mxu1 %vm5163_vm0, %v6702_v7 }
 0xbc6   : > { %4469 = vmatmul.mubr.msk.f32.gmra.mrb[88].mxu1 %vm350_vm1, %v3176_v56 }
 0xbc7   : > { %4506 = vmatprep.mubr.msk.f32.mxu1 %vm5163_vm0, %v6702_v7 }
 0xc89   : > { %v3278_v12 = vpop.f32.mrb[80].mxu1 }
 0xc8a   : > { %v4458_v58 = vpop.f32.mrb[81].mxu1  ;;  %v3279_v42 = vadd.f32 %v3278_v12, %v6774_v27  ;;  %v6783_v12 = vld [vmem:[#allocation47_spill] sm:$0xff] }
 0xc8c   : > { %5019 = vtanh.f32 %v3279_v42 }
 0xc8d   : > { %v3283_v2 = vpop.f32.mrb[82].mxu1 }
 0xc8e   : > { %v3284_v18 = vadd.f32 %v3283_v2, %v6775_v9  ;;  %v4461_v51 = vpop.f32.mrb[83].mxu1 }
 0xc90   : > { %5021 = vtanh.f32 %v3284_v18 }
 0xc91   : > { %v3288_v29 = vpop.f32.mrb[84].mxu1 }
 0xc92   : > { %v4464_v11 = vpop.f32.mrb[85].mxu1  ;;  %v3289_v32 = vadd.f32 %v3288_v29, %v6776_v38 }
 0xc93   : > { %v6784_v11 = vld [vmem:[#allocation55_spill] sm:$0xff] }
 0xc94   : > { %5023 = vtanh.f32 %v3289_v32 }
 0xc95   : > { %v3293_v47 = vpop.f32.mrb[86].mxu1 }
 0xc96   : > { %v3294_v17 = vadd.f32 %v3293_v47, %v6777_v6  ;;  %v4467_v53 = vpop.f32.mrb[87].mxu1  ;;  %v5020_v54 = vpop.eup %5019  ;;  %v6785_v47 = vld [vmem:[#allocation56_spill] sm:$0xff] }
 0xc98   : > { %5025 = vtanh.f32 %v3294_v17 }
 0xc99   : > { %v3298_v60 = vpop.f32.mrb[88].mxu1 }
 0xc9a   : > { %v5022_v35 = vpop.eup %5021  ;;  %v3299_v34 = vadd.f32 %v3298_v60, %v6778_v1  ;;  %v4470_v59 = vpop.f32.mrb[89].mxu1 }
 0xc9b   : > { %v4630_v3 = vpack.c.bf16 %v5022_v35, %v5020_v54  ;;  %v6787_v35 = vld [vmem:[#allocation58_spill] sm:$0xff] }
 0xc9c   : > { %5027 = vtanh.f32 %v3299_v34 }
 0xc9d   : > { %4631 = vmatpush3.bf16.msra.mxu0 %v4630_v3  ;;  %v6788_v3 = vld [vmem:[#allocation8_spill] sm:$0xff] }
 0xc9e   : > { %4632 = vmatprep.subr.bf16.mxu0 %v6701_v8  ;;  %v5024_v36 = vpop.eup %5023 }
 0xca2   : > { %v5026_v49 = vpop.eup %5025 }
 0xca3   : > { %v4633_v50 = vpack.c.bf16 %v5026_v49, %v5024_v36 }
 0xca5   : > { %4634 = vmatpush3.bf16.msra.mxu0 %v4633_v50 }
 0xca6   : > { %4479 = vmatprep.subr.mxu0 %v6702_v7  ;;  %v5028_v10 = vpop.eup %5027 }
 0xca9   : > { %4480 = vmatpush3.msra.mxu0 %v5028_v10 }
 0xcaa   : > { %4482 = vmatmul.mubr.msk.f32.vlgmr.msra.gmra.mrb[90].mxu0 %vm350_vm1, %v3307_v20  ;;  %v6789_v20 = vld [vmem:[#allocation9_spill] sm:$0xff] }
 0xcab   : > { %4484 = vmatprep.mubr.msk.f32.mxu0 %vm5163_vm0, %v6702_v7 }
 0xcae   : > { %4485 = vmatmul.mubr.msk.f32.gmra.mrb[92].mxu0 %vm350_vm1, %v3308_v4 }
 0xcaf   : > { %4487 = vmatprep.mubr.msk.f32.mxu0 %vm5163_vm0, %v6702_v7 }
 0xcb2   : > { %4488 = vmatmul.mubr.msk.f32.gmra.mrb[94].mxu0 %vm350_vm1, %v3309_v46 }
 0xcb3   : > { %4490 = vmatprep.mubr.msk.f32.mxu0 %vm5163_vm0, %v6702_v7 }
 0xcb6   : > { %4491 = vmatmul.mubr.msk.f32.gmra.mrb[96].mxu0 %vm350_vm1, %v3310_v14 }
 0xcb7   : > { %4493 = vmatprep.mubr.msk.f32.mxu0 %vm5163_vm0, %v6702_v7 }
 0xcba   : > { %4494 = vmatmul.mubr.msk.f32.gmra.mrb[98].mxu0 %vm350_vm1, %v3311_v45 }
 0xd7d   : > { %v3413_v26 = vpop.f32.mrb[90].mxu0 }
 0xd7e   : > { %v4483_v48 = vpop.f32.mrb[91].mxu0  ;;  %v3414_v30 = vadd.f32 %v3413_v26, %v6779_v44 }
 0xd80   : > { %5029 = vtanh.f32 %v3414_v30 }
 0xd81   : > { %v3418_v28 = vpop.f32.mrb[92].mxu0 }
 0xd82   : > { %v3419_v41 = vadd.f32 %v3418_v28, %v6780_v31  ;;  %v4486_v57 = vpop.f32.mrb[93].mxu0 }
 0xd83   : > { %v3616_v57 = vpop.permute.xlu1 %3615 }
 0xd84   : > { %5031 = vtanh.f32 %v3419_v41 }
 0xd85   : > { %v3423_v39 = vpop.f32.mrb[94].mxu0 }
 0xd86   : > { %v4489_v0 = vpop.f32.mrb[95].mxu0  ;;  %v3424_v63 = vadd.f32 %v3423_v39, %v6781_v25 }
 0xd88   : > { %5033 = vtanh.f32 %v3424_v63 }
 0xd89   : > { %v3428_v5 = vpop.f32.mrb[96].mxu0 }
 0xd8a   : > { %v3429_v23 = vadd.f32 %v3428_v5, %v6782_v33  ;;  %v4492_v43 = vpop.f32.mrb[97].mxu0  ;;  %v5030_v24 = vpop.eup %5029 }
 0xd8c   : > { %5035 = vtanh.f32 %v3429_v23 }
 0xd8d   : > { %v3433_v16 = vpop.f32.mrb[98].mxu0 }
 0xd8e   : > { %v5032_v56 = vpop.eup %5031  ;;  %v3434_v58 = vadd.f32 %v3433_v16, %v6783_v12  ;;  %v4495_v27 = vpop.f32.mrb[99].mxu0 }
 0xd8f   : > { %v4636_v42 = vpack.c.bf16 %v5032_v56, %v5030_v24 }
 0xd90   : > { %5037 = vtanh.f32 %v3434_v58 }
 0xd91   : > { %4637 = vmatpush3.bf16.msra.mxu1 %v4636_v42 }
 0xd92   : > { %4638 = vmatprep.subr.bf16.mxu1 %v6701_v8  ;;  %v5034_v2 = vpop.eup %5033 }
 0xd96   : > { %v5036_v9 = vpop.eup %5035 }
 0xd97   : > { %v4639_v18 = vpack.c.bf16 %v5036_v9, %v5034_v2 }
 0xd99   : > { %4640 = vmatpush3.bf16.msra.mxu1 %v4639_v18 }
 0xd9a   : > { %4504 = vmatprep.subr.mxu1 %v6702_v7  ;;  %v5038_v51 = vpop.eup %5037 }
 0xd9d   : > { %4505 = vmatpush3.msra.mxu1 %v5038_v51 }
 0xd9e   : > { %4507 = vmatmul.mubr.msk.f32.vlgmr.msra.gmra.mrb[90].mxu1 %vm350_vm1, %v6447_v62 }
 0xd9f   : > { %4509 = vmatprep.mubr.msk.f32.mxu1 %vm5163_vm0, %v6702_v7 }
 0xda2   : > { %4510 = vmatmul.mubr.msk.f32.gmra.mrb[92].mxu1 %vm350_vm1, %v6455_v13 }
 0xda3   : > { %4512 = vmatprep.mubr.msk.f32.mxu1 %vm5163_vm0, %v6702_v7 }
 0xda6   : > { %4513 = vmatmul.mubr.msk.f32.gmra.mrb[94].mxu1 %vm350_vm1, %v6462_v61 }
 0xda7   : > { %4515 = vmatprep.mubr.msk.f32.mxu1 %vm5163_vm0, %v6702_v7 }
 0xdaa   : > { %4516 = vmatmul.mubr.msk.f32.gmra.mrb[96].mxu1 %vm350_vm1, %v6469_v52 }
 0xdab   : > { %4518 = vmatprep.mubr.msk.f32.mxu1 %vm5163_vm0, %v6702_v7  ;;  %v6786_v7 = vld [vmem:[#allocation57_spill] sm:$0xff] }
 0xdae   : > { %4519 = vmatmul.mubr.msk.f32.gmra.mrb[98].mxu1 %vm350_vm1, %v6475_v22 }
 0xe71   : > { %v3548_v8 = vpop.f32.mrb[90].mxu1 }
 0xe72   : > { %v3549_v62 = vadd.f32 %v3548_v8, %v6319_v21  ;;  %v4508_v13 = vpop.f32.mrb[91].mxu1 }
 0xe74   : > { %5039 = vtanh.f32 %v3549_v62 }
 0xe75   : > { %v3553_v29 = vpop.f32.mrb[92].mxu1 }
 0xe76   : > { %v3554_v61 = vadd.f32 %v3553_v29, %v6784_v11  ;;  %v4511_v38 = vpop.f32.mrb[93].mxu1 }
 0xe78   : > { %5041 = vtanh.f32 %v3554_v61 }
 0xe79   : > { %v3558_v32 = vpop.f32.mrb[94].mxu1 }
 0xe7a   : > { %v3559_v6 = vadd.f32 %v3558_v32, %v6785_v47  ;;  %v4514_v52 = vpop.f32.mrb[95].mxu1 }
 0xe7c   : > { %5043 = vtanh.f32 %v3559_v6 }
 0xe7d   : > { %v3563_v17 = vpop.f32.mrb[96].mxu1 }
 0xe7e   : > { %v3564_v53 = vadd.f32 %v3563_v17, %v6786_v7  ;;  %v4517_v54 = vpop.f32.mrb[97].mxu1  ;;  %v5040_v22 = vpop.eup %5039 }
 0xe7f   : > { %v3597_v59 = vmul.f32 %v5040_v22, %v6330_v40 }
 0xe80   : > { %5045 = vtanh.f32 %v3564_v53 }
 0xe81   : > { %v3568_v60 = vpop.f32.mrb[98].mxu1 }
 0xe82   : > { %v5042_v21 = vpop.eup %5041  ;;  %v3569_v1 = vadd.f32 %v3568_v60, %v6787_v35  ;;  %v4520_v34 = vpop.f32.mrb[99].mxu1 }
 0xe83   : > { %v3598_v36 = vmul.f32 %v5042_v21, %v6788_v3 }
 0xe84   : > { %5047 = vtanh.f32 %v3569_v1 }
 0xe85   : > { %v3602_v49 = vadd.f32 %v3598_v36, %v3597_v59 }
 0xe86   : > { %v5044_v50 = vpop.eup %5043 }
 0xe87   : > { %v3599_v10 = vmul.f32 %v5044_v50, %v6789_v20 }
 0xe89   : > { %v3603_v4 = vadd.f32 %v3602_v49, %v3599_v10 }
 0xe8a   : > { %v5046_v46 = vpop.eup %5045 }
 0xe8b   : > { %v3600_v14 = vmul.f32 %v5046_v46, %v6346_v55 }
 0xe8d   : > { %v3604_v45 = vadd.f32 %v3603_v4, %v3600_v14 }
 0xe8e   : > { %v5048_v19 = vpop.eup %5047 }
 0xe8f   : > { %v3601_v26 = vmul.f32 %v5048_v19, %v6518_v15 }
 0xe91   : > { %v3605_v40 = vadd.f32 %v3604_v45, %v3601_v26 }
 0xe93   : > { %v3606_v48 = vrot.slane %v3605_v40, 4 }
 0xe95   : > { %v3607_v44 = vadd.f32 %v3606_v48, %v3605_v40 }
 0xe97   : > { %v3608_v30 = vrot.slane %v3607_v44, 2 }
 0xe99   : > { %v3609_v28 = vadd.f32 %v3608_v30, %v3607_v44 }
 0xe9b   : > { %v3610_v31 = vrot.slane %v3609_v28, 1 }
 0xe9d   : > { %v3611_v41 = vadd.f32 %v3610_v31, %v3609_v28 }
 0xe9f   : > { %v3618_v39 = vadd.f32 %v3616_v57, %v3611_v41 }
 0xea1   : > { %3619 = vst.msk [vmem:[%s6115_s20 + $0x3] sm:$0x1] %vm6111_vm2, %v3618_v39 }
 0xea2   : > { %5100 = shalt.err (!%p5097_p7)
}
 0xea3   : > { %s5101_s9 = scalar_lea.hbm %s6604_s7, 64  ;;  %s5105_s25 = scalar_lea.hbm %s6654_s3, 128 }
 0xea4   : > { %p5102_p8 = scmp.ne.s32.totalorder %s6604_s7, %s5101_s9  ;;  %p5106_p1 = scmp.lt.u32.totalorder %s6604_s7, %s6654_s3 }
 0xea5   : > { %p5107_p0 = scmp.lt.u32.totalorder %s5105_s25, %s5101_s9  ;;  %p5109_p6 = scmp.lt.u32.totalorder %s5101_s9, %s6604_s7 }
 0xea6   : > { %p5103_p11 = pnand %p5102_p8, %p6790_p9 }
 0xea7   : > { %p5108_p5 = por %p5107_p0, %p5106_p1 }
 0xea8   : > { %p5104_p13 = pneg %p5103_p11 }
 0xea9   : > { %p5110_p10 = por %p5109_p6, %p5108_p5 }
 0xeab   : > { %p5111_p12 = pnand %p5110_p10, %p5104_p13 }
 0xead   : > { %5114 = shalt.err (!%p5111_p12)
}
 0xeae   : > { %4645 = dma.vmem_to_hbm [thread:$0]  (%p6790_p9), %s6606_s4, 64, %s6604_s7, %s3621_s8  }
 0xeaf PF: > { %p4657_p2 = scmp.ge.s32.totalorder %s5153_s15, 2  ;;  %s3647_s27 = sand.u32 1, %s5141_s12  }
 0xeb0   : > { %p6791_p3 = scmp.ne.s32.totalorder %s6670_s23, 0  ;;  %s3648_s28 = scalar_lea.sflag [#allocation4], %s3647_s27 }
 0xeb2   : > { %p4652_p4 = pnand %p4657_p2, %p6791_p3 }
 0xeb4   : > { %5136 = dma.done.wait (!%p4652_p4), %s3648_s28, 64  }
 0xeb5   : > { %5138 = vsyncadd (!%p4652_p4), %s3648_s28, 4294967232  ;;  %p14_p7 = scmp.ge.s32.totalorder %s5218_s18, 4   ;;  %s6792_s12 = smov %s5145_s13 }
 0xeb6   : > { %s6793_s13 = smov %s5149_s14  ;;  %s6794_s14 = smov %s5229_s21 }
 0xeb7   : > { %s6795_s15 = smov %s5218_s18  ;;  %16 = sbr.rel (!%p14_p7) target bundleno = 4 (0x4), region = 76 }
 0xebe   :  { %3653 = vsyncpa [#allocation3], 1 }
 0xebf   :  { %3655 = vsyncpa [#allocation3 + $0x1], 1 }
 0xec0   :  { %3656 = vsyncpa [#allocation4], 1 }
 0xec1   :  { %3658 = vsyncpa [#allocation4 + $0x1], 1 }

</bundles_post_ra>
